<compile_context>
chip_gen: v7x
topology: tpu7x:2x2x1
jax: 0.10.0
libtpu: 0.0.40
codegen_flags: <defaults>
</compile_context>

<pallas_src>
import functools
import numpy as np
import jax
import jax.numpy as jnp
from jax import lax
from jax.experimental import pallas as pl
from jax.experimental.pallas import tpu as pltpu


def _round_up(a, b):
    return (a + b - 1) // b * b


def _pick_tile(dim, tmax, unit):
    """Largest multiple of `unit` that divides `dim` (itself a multiple of
    `unit`) and is <= tmax.  Guarantees zero extra padding beyond `dim`."""
    if dim <= tmax:
        return dim
    n = dim // unit
    best = 1
    for d in range(1, n + 1):
        if n % d == 0 and d * unit <= tmax:
            best = d
    return best * unit


# ----------------------------------------------------------------------------
# Pallas kernel: tiled  out = act(x @ w + b)  with K-axis accumulation (P3).
# Operands arrive in bf16; accumulation + epilogue are f32.
# ----------------------------------------------------------------------------
def _matmul_bias_act_kernel(x_ref, w_ref, b_ref, o_ref, acc_ref, *, apply_relu):
    k = pl.program_id(2)

    @pl.when(k == 0)
    def _():
        acc_ref[...] = jnp.zeros_like(acc_ref)

    acc_ref[...] += jnp.dot(x_ref[...], w_ref[...],
                            preferred_element_type=jnp.float32)

    @pl.when(k == pl.num_programs(2) - 1)
    def _():
        r = acc_ref[...] + b_ref[...]
        if apply_relu:
            r = jnp.maximum(r, 0.0)
        o_ref[...] = r.astype(o_ref.dtype)


def matmul_bias_act(x, w, b, *, apply_relu, tm=256, tn=512, tk=2048):
    """act(x @ w + b) on the MXU.  x:(M,K), w:(K,N), b:(N,) -> (M,N) f32.

    bf16 operands / f32 accumulation.  Tile sizes are divisors of the
    128-rounded K/N so K is never padded past the next 128 boundary, and
    padding / output slicing is skipped when shapes already line up.
    """
    M, K = x.shape
    K2, N = w.shape
    assert K == K2 and b.shape == (N,)

    x = x.astype(jnp.bfloat16)
    w = w.astype(jnp.bfloat16)
    b = b.astype(jnp.float32)

    Mp = _round_up(M, 8)
    tm_ = Mp if Mp <= tm else _pick_tile(Mp, tm, 8)
    Kp = _round_up(K, 128)
    tk_ = Kp if Kp <= tk else _pick_tile(Kp, tk, 128)
    Np = _round_up(N, 128)           # lane-dense output tiles -> unmasked vst
    tn_ = Np if Np <= tn else _pick_tile(Np, tn, 128)

    if (Mp, Kp) != (M, K):
        x = jnp.pad(x, ((0, Mp - M), (0, Kp - K)))
    if (Kp, Np) != (K, N):
        w = jnp.pad(w, ((0, Kp - K), (0, Np - N)))
    b2 = b.reshape(1, N)
    if Np != N:
        b2 = jnp.pad(b2, ((0, 0), (0, Np - N)))

    grid = (Mp // tm_, Np // tn_, Kp // tk_)
    out = pl.pallas_call(
        functools.partial(_matmul_bias_act_kernel, apply_relu=apply_relu),
        out_shape=jax.ShapeDtypeStruct((Mp, Np), jnp.float32),
        grid_spec=pltpu.PrefetchScalarGridSpec(
            num_scalar_prefetch=0,
            grid=grid,
            in_specs=[
                pl.BlockSpec((tm_, tk_), lambda i, j, k: (i, k)),
                pl.BlockSpec((tk_, tn_), lambda i, j, k: (k, j)),
                pl.BlockSpec((1, tn_), lambda i, j, k: (0, j)),
            ],
            out_specs=pl.BlockSpec((tm_, tn_), lambda i, j, k: (i, j)),
            scratch_shapes=[pltpu.VMEM((tm_, tn_), jnp.float32)],
        ),
        compiler_params=pltpu.CompilerParams(
            dimension_semantics=("parallel", "parallel", "arbitrary"),
            vmem_limit_bytes=32 * 1024 * 1024),
    )(x, w, b2)
    if (Mp, Np) != (M, N):
        out = out[:M, :N]
    return out


# ----------------------------------------------------------------------------
# Glue: 3x3x3 / stride-1 / pad-1 conv as channels-last im2col + Pallas matmul.
# ----------------------------------------------------------------------------
# TODO(synk): fuse im2col + matmul (and conv1+conv2) into one kernel with
# shifted in-VMEM reads; at larger D/H/W the 27x patch materialization through
# HBM dominates the conv stages.
def _im2col_3d_ndhwc(x):
    # x: (N, D, H, W, C) -> (N*D*H*W, 27*C), patch-feature order (kd, kh, kw, c).
    N, D, H, W, C = x.shape
    xp = jnp.pad(x, ((0, 0), (1, 1), (1, 1), (1, 1), (0, 0)))
    taps = []
    for kd in range(3):
        for kh in range(3):
            for kw in range(3):
                taps.append(xp[:, kd:kd + D, kh:kh + H, kw:kw + W, :])
    p = jnp.stack(taps, axis=4)                   # (N, D, H, W, 27, C)
    return p.reshape(N * D * H * W, 27 * C)


def conv3d_relu_ndhwc(x, wmat, bias):
    # x: (N, D, H, W, Cin) channels-last; wmat: (27*Cin, Cout), rows (kd,kh,kw,ci).
    N, D, H, W, Cin = x.shape
    Cout = wmat.shape[1]
    patches = _im2col_3d_ndhwc(x.astype(jnp.bfloat16))
    y = matmul_bias_act(patches, wmat, bias, apply_relu=True)
    return y.reshape(N, D, H, W, Cout)            # stays NDHWC (no transpose)


# ----------------------------------------------------------------------------
# One-time layout plumbing (free at init).
# ----------------------------------------------------------------------------
def prepare_encoder_params(params, D, H, W):
    def conv_w_to_mat(w):
        # torch (Cout, Cin, kd, kh, kw) -> (kd, kh, kw, Cin, Cout) -> (27*Cin, Cout)
        Cout, Cin = w.shape[0], w.shape[1]
        return jnp.transpose(w, (2, 3, 4, 1, 0)).reshape(27 * Cin, Cout)

    # Permute fc1 rows from torch's NCDHW flatten order (c,d,h,w) to our
    # NDHWC flatten order (d,h,w,c) so no activation transpose is needed.
    wf1 = params["w_fc1"]                          # (128*D*H*W, 1024)
    nout = wf1.shape[1]
    wf1 = wf1.reshape(128, D, H, W, nout)
    wf1 = jnp.transpose(wf1, (1, 2, 3, 0, 4)).reshape(128 * D * H * W, nout)

    return {
        "w_conv1_mat": conv_w_to_mat(params["w_conv1"]),
        "b_conv1": params["b_conv1"],
        "w_conv2_mat": conv_w_to_mat(params["w_conv2"]),
        "b_conv2": params["b_conv2"],
        "w_fc1_ndhwc": wf1,
        "b_fc1": params["b_fc1"],
        "w_fc2": params["w_fc2"],
        "b_fc2": params["b_fc2"],
    }


# ----------------------------------------------------------------------------
# Encoder forward: (conv -> relu -> [maxpool k=1 == identity]) x2 -> flatten -> fc
# ----------------------------------------------------------------------------
@jax.jit
def encoder_forward(prep, x):
    # x: (B, Cin, D, H, W) NCDHW (torch layout).  Move to channels-last once;
    # everything downstream stays NDHWC.
    h = jnp.transpose(x, (0, 2, 3, 4, 1))
    h = conv3d_relu_ndhwc(h, prep["w_conv1_mat"], prep["b_conv1"])
    # MaxPool3d(kernel_size=1, stride=1) is the identity -> no op.
    h = conv3d_relu_ndhwc(h, prep["w_conv2_mat"], prep["b_conv2"])
    h = h.reshape(h.shape[0], -1)                  # NDHWC flatten (matches permuted w_fc1)
    h = matmul_bias_act(h, prep["w_fc1_ndhwc"], prep["b_fc1"], apply_relu=True)
    y = matmul_bias_act(h, prep["w_fc2"], prep["b_fc2"], apply_relu=False)
    return y


# Pure-JAX f32 reference following torch NCDHW semantics (independently
# exercises the fc1 row permutation).  Uses the same bf16-rounded weights.
def ref_forward(params, x):
    f = jnp.float32

    def conv(h, wgt, bias):
        y = lax.conv_general_dilated(
            h.astype(f), wgt.astype(f), window_strides=(1, 1, 1),
            padding=((1, 1), (1, 1), (1, 1)),
            dimension_numbers=("NCDHW", "OIDHW", "NCDHW"),
            precision=lax.Precision.HIGHEST)
        return jnp.maximum(y + bias.reshape(1, -1, 1, 1, 1), 0.0)

    h = conv(x, params["w_conv1"], params["b_conv1"])
    h = conv(h, params["w_conv2"], params["b_conv2"])
    h = h.reshape(h.shape[0], -1)                  # torch NCDHW flatten
    h = jnp.maximum(
        jnp.dot(h, params["w_fc1"].astype(f), precision=lax.Precision.HIGHEST)
        + params["b_fc1"], 0.0)
    return (jnp.dot(h, params["w_fc2"].astype(f), precision=lax.Precision.HIGHEST)
            + params["b_fc2"])


if __name__ == "__main__":
    # Small shapes consistent with the module (Conv3d expects NCDHW input).
    B, Cin, D, H, W = 2, 3, 2, 8, 8
    codebook_size, embedding_dim = 8, 16
    conv_out_size = 128 * D * H * W                # 128 channels after conv2

    key = jax.random.PRNGKey(0)
    ks = jax.random.split(key, 9)
    bf16 = jnp.bfloat16
    params = {
        # Weights stored in bf16 (HBM-resident matmul operands); biases f32.
        "w_conv1": (jax.random.normal(ks[0], (64, Cin, 3, 3, 3), jnp.float32)
                    * (1.0 / np.sqrt(Cin * 27))).astype(bf16),
        "b_conv1": jax.random.normal(ks[1], (64,), jnp.float32) * 0.1,
        "w_conv2": (jax.random.normal(ks[2], (128, 64, 3, 3, 3), jnp.float32)
                    * (1.0 / np.sqrt(64 * 27))).astype(bf16),
        "b_conv2": jax.random.normal(ks[3], (128,), jnp.float32) * 0.1,
        # Linear weights stored already transposed: (in_features, out_features),
        # rows in torch's NCDHW-flatten order.
        "w_fc1": (jax.random.normal(ks[4], (conv_out_size, 1024), jnp.float32)
                  * (1.0 / np.sqrt(conv_out_size))).astype(bf16),
        "b_fc1": jax.random.normal(ks[5], (1024,), jnp.float32) * 0.1,
        "w_fc2": (jax.random.normal(ks[6], (1024, codebook_size * embedding_dim),
                                    jnp.float32)
                  * (1.0 / np.sqrt(1024))).astype(bf16),
        "b_fc2": jax.random.normal(ks[7], (codebook_size * embedding_dim,),
                                   jnp.float32) * 0.1,
    }
    x = jax.random.normal(ks[8], (B, Cin, D, H, W), jnp.float32)

    prep = prepare_encoder_params(params, D, H, W)   # one-time layout plumbing

    out = jax.block_until_ready(encoder_forward(prep, x))
    assert out.shape == (B, codebook_size * embedding_dim)

    ref = jax.block_until_ready(ref_forward(params, x))
    np.testing.assert_allclose(np.asarray(out, dtype=np.float32),
                               np.asarray(ref, dtype=np.float32),
                               rtol=2e-2, atol=2e-2)
    print("KERNEL_OK")
</pallas_src>

<mosaic_0001>
module attributes {stable_mosaic.version = 11 : i64} {
  func.func @_matmul_bias_act_kernel(%arg0: i32, %arg1: i32, %arg2: i32, %arg3: memref<256x128xbf16, #tpu.memory_space<vmem>>, %arg4: memref<128x128xbf16, #tpu.memory_space<vmem>>, %arg5: memref<1x128xf32, #tpu.memory_space<vmem>>, %arg6: memref<256x128xf32, #tpu.memory_space<vmem>>, %arg7: memref<256x128xf32, #tpu.memory_space<vmem>>) attributes {dimension_semantics = [#tpu.dimension_semantics<parallel>, #tpu.dimension_semantics<parallel>, #tpu.dimension_semantics<arbitrary>], iteration_bounds = array<i64: 1, 1, 1>, scalar_prefetch = 0 : i64, scratch_operands = 1 : i64, tpu.core_type = #tpu.core_type<tc>, window_params = [{transform_indices = @transform_0, window_bounds = array<i64: 256, 128>}, {transform_indices = @transform_1, window_bounds = array<i64: 128, 128>}, {transform_indices = @transform_2, window_bounds = array<i64: 1, 128>}, {transform_indices = @transform_3, window_bounds = array<i64: 256, 128>}]} {
    %c0_i32 = arith.constant 0 : i32
    %0 = arith.cmpi eq, %arg2, %c0_i32 : i32
    %1 = arith.extui %0 : i1 to i32
    %c0_i32_0 = arith.constant 0 : i32
    %2 = arith.cmpi ne, %1, %c0_i32_0 : i32
    scf.if %2 {
      %cst_10 = arith.constant 0.000000e+00 : f32
      %12 = vector.broadcast %cst_10 : f32 to vector<256x128xf32>
      %c0_11 = arith.constant 0 : index
      %c0_12 = arith.constant 0 : index
      %13 = vector.load %arg7[%c0_11, %c0_12] : memref<256x128xf32, #tpu.memory_space<vmem>>, vector<256x128xf32>
      tpu.vector_store %arg7[%c0_11, %c0_12], %12 {strides = array<i32>} : memref<256x128xf32, #tpu.memory_space<vmem>>, vector<256x128xf32>,
    } else {
    }
    %c0 = arith.constant 0 : index
    %c0_1 = arith.constant 0 : index
    %3 = vector.load %arg7[%c0, %c0_1] : memref<256x128xf32, #tpu.memory_space<vmem>>, vector<256x128xf32>
    %c0_2 = arith.constant 0 : index
    %c0_3 = arith.constant 0 : index
    %4 = vector.load %arg3[%c0_2, %c0_3] : memref<256x128xbf16, #tpu.memory_space<vmem>>, vector<256x128xbf16>
    %c0_4 = arith.constant 0 : index
    %c0_5 = arith.constant 0 : index
    %5 = vector.load %arg4[%c0_4, %c0_5] : memref<128x128xbf16, #tpu.memory_space<vmem>>, vector<128x128xbf16>
    %cst = arith.constant dense<0.000000e+00> : vector<256x128xf32>
    %6 = tpu.matmul %4, %5, %cst {dimension_numbers = #tpu.dot_dimension_numbers<[1], [0], [0], [1], [0, 0, 1, 1], [], []>} : vector<256x128xbf16>, vector<128x128xbf16>, vector<256x128xf32> -> vector<256x128xf32>
    %7 = arith.addf %3, %6 : vector<256x128xf32>
    %c0_6 = arith.constant 0 : index
    %c0_7 = arith.constant 0 : index
    %8 = vector.load %arg7[%c0_6, %c0_7] : memref<256x128xf32, #tpu.memory_space<vmem>>, vector<256x128xf32>
    tpu.vector_store %arg7[%c0_6, %c0_7], %7 {strides = array<i32>} : memref<256x128xf32, #tpu.memory_space<vmem>>, vector<256x128xf32>,
    %c0_i32_8 = arith.constant 0 : i32
    %9 = arith.cmpi eq, %arg2, %c0_i32_8 : i32
    %10 = arith.extui %9 : i1 to i32
    %c0_i32_9 = arith.constant 0 : i32
    %11 = arith.cmpi ne, %10, %c0_i32_9 : i32
    scf.if %11 {
      %c0_10 = arith.constant 0 : index
      %c0_11 = arith.constant 0 : index
      %12 = vector.load %arg7[%c0_10, %c0_11] : memref<256x128xf32, #tpu.memory_space<vmem>>, vector<256x128xf32>
      %c0_12 = arith.constant 0 : index
      %c0_13 = arith.constant 0 : index
      %13 = vector.load %arg5[%c0_12, %c0_13] : memref<1x128xf32, #tpu.memory_space<vmem>>, vector<1x128xf32>
      %14 = vector.broadcast %13 : vector<1x128xf32> to vector<256x128xf32>
      %15 = arith.addf %12, %14 : vector<256x128xf32>
      %cst_14 = arith.constant 0.000000e+00 : f32
      %16 = vector.broadcast %cst_14 : f32 to vector<256x128xf32>
      %17 = arith.maximumf %15, %16 : vector<256x128xf32>
      %c0_15 = arith.constant 0 : index
      %c0_16 = arith.constant 0 : index
      %18 = vector.load %arg6[%c0_15, %c0_16] : memref<256x128xf32, #tpu.memory_space<vmem>>, vector<256x128xf32>
      tpu.vector_store %arg6[%c0_15, %c0_16], %17 {strides = array<i32>} : memref<256x128xf32, #tpu.memory_space<vmem>>, vector<256x128xf32>,
    } else {
    }
    return
  }
  func.func @transform_0(%arg0: i32, %arg1: i32, %arg2: i32) -> (i32, i32) {
    %c0_i32 = arith.constant 0 : i32
    return %arg0, %arg2 : i32, i32
  }
  func.func @transform_1(%arg0: i32, %arg1: i32, %arg2: i32) -> (i32, i32) {
    %c0_i32 = arith.constant 0 : i32
    return %arg2, %arg1 : i32, i32
  }
  func.func @transform_2(%arg0: i32, %arg1: i32, %arg2: i32) -> (i32, i32) {
    %c0_i32 = arith.constant 0 : i32
    %c0_i32_0 = arith.constant 0 : i32
    return %c0_i32, %arg1 : i32, i32
  }
  func.func @transform_3(%arg0: i32, %arg1: i32, %arg2: i32) -> (i32, i32) {
    %c0_i32 = arith.constant 0 : i32
    return %arg0, %arg1 : i32, i32
  }
}

module attributes {stable_mosaic.version = 11 : i64} {
  func.func @_matmul_bias_act_kernel(%arg0: i32, %arg1: i32, %arg2: i32, %arg3: memref<256x1792xbf16, #tpu.memory_space<vmem>>, %arg4: memref<1792x128xbf16, #tpu.memory_space<vmem>>, %arg5: memref<1x128xf32, #tpu.memory_space<vmem>>, %arg6: memref<256x128xf32, #tpu.memory_space<vmem>>, %arg7: memref<256x128xf32, #tpu.memory_space<vmem>>) attributes {dimension_semantics = [#tpu.dimension_semantics<parallel>, #tpu.dimension_semantics<parallel>, #tpu.dimension_semantics<arbitrary>], iteration_bounds = array<i64: 1, 1, 1>, scalar_prefetch = 0 : i64, scratch_operands = 1 : i64, tpu.core_type = #tpu.core_type<tc>, window_params = [{transform_indices = @transform_0, window_bounds = array<i64: 256, 1792>}, {transform_indices = @transform_1, window_bounds = array<i64: 1792, 128>}, {transform_indices = @transform_2, window_bounds = array<i64: 1, 128>}, {transform_indices = @transform_3, window_bounds = array<i64: 256, 128>}]} {
    %c0_i32 = arith.constant 0 : i32
    %0 = arith.cmpi eq, %arg2, %c0_i32 : i32
    %1 = arith.extui %0 : i1 to i32
    %c0_i32_0 = arith.constant 0 : i32
    %2 = arith.cmpi ne, %1, %c0_i32_0 : i32
    scf.if %2 {
      %cst_10 = arith.constant 0.000000e+00 : f32
      %12 = vector.broadcast %cst_10 : f32 to vector<256x128xf32>
      %c0_11 = arith.constant 0 : index
      %c0_12 = arith.constant 0 : index
      %13 = vector.load %arg7[%c0_11, %c0_12] : memref<256x128xf32, #tpu.memory_space<vmem>>, vector<256x128xf32>
      tpu.vector_store %arg7[%c0_11, %c0_12], %12 {strides = array<i32>} : memref<256x128xf32, #tpu.memory_space<vmem>>, vector<256x128xf32>,
    } else {
    }
    %c0 = arith.constant 0 : index
    %c0_1 = arith.constant 0 : index
    %3 = vector.load %arg7[%c0, %c0_1] : memref<256x128xf32, #tpu.memory_space<vmem>>, vector<256x128xf32>
    %c0_2 = arith.constant 0 : index
    %c0_3 = arith.constant 0 : index
    %4 = vector.load %arg3[%c0_2, %c0_3] : memref<256x1792xbf16, #tpu.memory_space<vmem>>, vector<256x1792xbf16>
    %c0_4 = arith.constant 0 : index
    %c0_5 = arith.constant 0 : index
    %5 = vector.load %arg4[%c0_4, %c0_5] : memref<1792x128xbf16, #tpu.memory_space<vmem>>, vector<1792x128xbf16>
    %cst = arith.constant dense<0.000000e+00> : vector<256x128xf32>
    %6 = tpu.matmul %4, %5, %cst {dimension_numbers = #tpu.dot_dimension_numbers<[1], [0], [0], [1], [0, 0, 1, 1], [], []>} : vector<256x1792xbf16>, vector<1792x128xbf16>, vector<256x128xf32> -> vector<256x128xf32>
    %7 = arith.addf %3, %6 : vector<256x128xf32>
    %c0_6 = arith.constant 0 : index
    %c0_7 = arith.constant 0 : index
    %8 = vector.load %arg7[%c0_6, %c0_7] : memref<256x128xf32, #tpu.memory_space<vmem>>, vector<256x128xf32>
    tpu.vector_store %arg7[%c0_6, %c0_7], %7 {strides = array<i32>} : memref<256x128xf32, #tpu.memory_space<vmem>>, vector<256x128xf32>,
    %c0_i32_8 = arith.constant 0 : i32
    %9 = arith.cmpi eq, %arg2, %c0_i32_8 : i32
    %10 = arith.extui %9 : i1 to i32
    %c0_i32_9 = arith.constant 0 : i32
    %11 = arith.cmpi ne, %10, %c0_i32_9 : i32
    scf.if %11 {
      %c0_10 = arith.constant 0 : index
      %c0_11 = arith.constant 0 : index
      %12 = vector.load %arg7[%c0_10, %c0_11] : memref<256x128xf32, #tpu.memory_space<vmem>>, vector<256x128xf32>
      %c0_12 = arith.constant 0 : index
      %c0_13 = arith.constant 0 : index
      %13 = vector.load %arg5[%c0_12, %c0_13] : memref<1x128xf32, #tpu.memory_space<vmem>>, vector<1x128xf32>
      %14 = vector.broadcast %13 : vector<1x128xf32> to vector<256x128xf32>
      %15 = arith.addf %12, %14 : vector<256x128xf32>
      %cst_14 = arith.constant 0.000000e+00 : f32
      %16 = vector.broadcast %cst_14 : f32 to vector<256x128xf32>
      %17 = arith.maximumf %15, %16 : vector<256x128xf32>
      %c0_15 = arith.constant 0 : index
      %c0_16 = arith.constant 0 : index
      %18 = vector.load %arg6[%c0_15, %c0_16] : memref<256x128xf32, #tpu.memory_space<vmem>>, vector<256x128xf32>
      tpu.vector_store %arg6[%c0_15, %c0_16], %17 {strides = array<i32>} : memref<256x128xf32, #tpu.memory_space<vmem>>, vector<256x128xf32>,
    } else {
    }
    return
  }
  func.func @transform_0(%arg0: i32, %arg1: i32, %arg2: i32) -> (i32, i32) {
    %c0_i32 = arith.constant 0 : i32
    return %arg0, %arg2 : i32, i32
  }
  func.func @transform_1(%arg0: i32, %arg1: i32, %arg2: i32) -> (i32, i32) {
    %c0_i32 = arith.constant 0 : i32
    return %arg2, %arg1 : i32, i32
  }
  func.func @transform_2(%arg0: i32, %arg1: i32, %arg2: i32) -> (i32, i32) {
    %c0_i32 = arith.constant 0 : i32
    %c0_i32_0 = arith.constant 0 : i32
    return %c0_i32, %arg1 : i32, i32
  }
  func.func @transform_3(%arg0: i32, %arg1: i32, %arg2: i32) -> (i32, i32) {
    %c0_i32 = arith.constant 0 : i32
    return %arg0, %arg1 : i32, i32
  }
}

module attributes {stable_mosaic.version = 11 : i64} {
  func.func @_matmul_bias_act_kernel(%arg0: i32, %arg1: i32, %arg2: i32, %arg3: memref<8x2048xbf16, #tpu.memory_space<vmem>>, %arg4: memref<2048x512xbf16, #tpu.memory_space<vmem>>, %arg5: memref<1x512xf32, #tpu.memory_space<vmem>>, %arg6: memref<8x512xf32, #tpu.memory_space<vmem>>, %arg7: memref<8x512xf32, #tpu.memory_space<vmem>>) attributes {dimension_semantics = [#tpu.dimension_semantics<parallel>, #tpu.dimension_semantics<parallel>, #tpu.dimension_semantics<arbitrary>], iteration_bounds = array<i64: 1, 2, 8>, scalar_prefetch = 0 : i64, scratch_operands = 1 : i64, tpu.core_type = #tpu.core_type<tc>, window_params = [{transform_indices = @transform_0, window_bounds = array<i64: 8, 2048>}, {transform_indices = @transform_1, window_bounds = array<i64: 2048, 512>}, {transform_indices = @transform_2, window_bounds = array<i64: 1, 512>}, {transform_indices = @transform_3, window_bounds = array<i64: 8, 512>}]} {
    %c0_i32 = arith.constant 0 : i32
    %0 = arith.cmpi eq, %arg2, %c0_i32 : i32
    %1 = arith.extui %0 : i1 to i32
    %c0_i32_0 = arith.constant 0 : i32
    %2 = arith.cmpi ne, %1, %c0_i32_0 : i32
    scf.if %2 {
      %cst_9 = arith.constant 0.000000e+00 : f32
      %12 = vector.broadcast %cst_9 : f32 to vector<8x512xf32>
      %c0_10 = arith.constant 0 : index
      %c0_11 = arith.constant 0 : index
      %13 = vector.load %arg7[%c0_10, %c0_11] : memref<8x512xf32, #tpu.memory_space<vmem>>, vector<8x512xf32>
      tpu.vector_store %arg7[%c0_10, %c0_11], %12 {strides = array<i32>} : memref<8x512xf32, #tpu.memory_space<vmem>>, vector<8x512xf32>,
    } else {
    }
    %c0 = arith.constant 0 : index
    %c0_1 = arith.constant 0 : index
    %3 = vector.load %arg7[%c0, %c0_1] : memref<8x512xf32, #tpu.memory_space<vmem>>, vector<8x512xf32>
    %c0_2 = arith.constant 0 : index
    %c0_3 = arith.constant 0 : index
    %4 = vector.load %arg3[%c0_2, %c0_3] : memref<8x2048xbf16, #tpu.memory_space<vmem>>, vector<8x2048xbf16>
    %c0_4 = arith.constant 0 : index
    %c0_5 = arith.constant 0 : index
    %5 = vector.load %arg4[%c0_4, %c0_5] : memref<2048x512xbf16, #tpu.memory_space<vmem>>, vector<2048x512xbf16>
    %cst = arith.constant dense<0.000000e+00> : vector<8x512xf32>
    %6 = tpu.matmul %4, %5, %cst {dimension_numbers = #tpu.dot_dimension_numbers<[1], [0], [0], [1], [0, 0, 1, 1], [], []>} : vector<8x2048xbf16>, vector<2048x512xbf16>, vector<8x512xf32> -> vector<8x512xf32>
    %7 = arith.addf %3, %6 : vector<8x512xf32>
    %c0_6 = arith.constant 0 : index
    %c0_7 = arith.constant 0 : index
    %8 = vector.load %arg7[%c0_6, %c0_7] : memref<8x512xf32, #tpu.memory_space<vmem>>, vector<8x512xf32>
    tpu.vector_store %arg7[%c0_6, %c0_7], %7 {strides = array<i32>} : memref<8x512xf32, #tpu.memory_space<vmem>>, vector<8x512xf32>,
    %c7_i32 = arith.constant 7 : i32
    %9 = arith.cmpi eq, %arg2, %c7_i32 : i32
    %10 = arith.extui %9 : i1 to i32
    %c0_i32_8 = arith.constant 0 : i32
    %11 = arith.cmpi ne, %10, %c0_i32_8 : i32
    scf.if %11 {
      %c0_9 = arith.constant 0 : index
      %c0_10 = arith.constant 0 : index
      %12 = vector.load %arg7[%c0_9, %c0_10] : memref<8x512xf32, #tpu.memory_space<vmem>>, vector<8x512xf32>
      %c0_11 = arith.constant 0 : index
      %c0_12 = arith.constant 0 : index
      %13 = vector.load %arg5[%c0_11, %c0_12] : memref<1x512xf32, #tpu.memory_space<vmem>>, vector<1x512xf32>
      %14 = vector.broadcast %13 : vector<1x512xf32> to vector<8x512xf32>
      %15 = arith.addf %12, %14 : vector<8x512xf32>
      %cst_13 = arith.constant 0.000000e+00 : f32
      %16 = vector.broadcast %cst_13 : f32 to vector<8x512xf32>
      %17 = arith.maximumf %15, %16 : vector<8x512xf32>
      %c0_14 = arith.constant 0 : index
      %c0_15 = arith.constant 0 : index
      %18 = vector.load %arg6[%c0_14, %c0_15] : memref<8x512xf32, #tpu.memory_space<vmem>>, vector<8x512xf32>
      tpu.vector_store %arg6[%c0_14, %c0_15], %17 {strides = array<i32>} : memref<8x512xf32, #tpu.memory_space<vmem>>, vector<8x512xf32>,
    } else {
    }
    return
  }
  func.func @transform_0(%arg0: i32, %arg1: i32, %arg2: i32) -> (i32, i32) {
    %c0_i32 = arith.constant 0 : i32
    return %arg0, %arg2 : i32, i32
  }
  func.func @transform_1(%arg0: i32, %arg1: i32, %arg2: i32) -> (i32, i32) {
    %c0_i32 = arith.constant 0 : i32
    return %arg2, %arg1 : i32, i32
  }
  func.func @transform_2(%arg0: i32, %arg1: i32, %arg2: i32) -> (i32, i32) {
    %c0_i32 = arith.constant 0 : i32
    %c0_i32_0 = arith.constant 0 : i32
    return %c0_i32, %arg1 : i32, i32
  }
  func.func @transform_3(%arg0: i32, %arg1: i32, %arg2: i32) -> (i32, i32) {
    %c0_i32 = arith.constant 0 : i32
    return %arg0, %arg1 : i32, i32
  }
}

module attributes {stable_mosaic.version = 11 : i64} {
  func.func @_matmul_bias_act_kernel(%arg0: i32, %arg1: i32, %arg2: i32, %arg3: memref<8x1024xbf16, #tpu.memory_space<vmem>>, %arg4: memref<1024x128xbf16, #tpu.memory_space<vmem>>, %arg5: memref<1x128xf32, #tpu.memory_space<vmem>>, %arg6: memref<8x128xf32, #tpu.memory_space<vmem>>, %arg7: memref<8x128xf32, #tpu.memory_space<vmem>>) attributes {dimension_semantics = [#tpu.dimension_semantics<parallel>, #tpu.dimension_semantics<parallel>, #tpu.dimension_semantics<arbitrary>], iteration_bounds = array<i64: 1, 1, 1>, scalar_prefetch = 0 : i64, scratch_operands = 1 : i64, tpu.core_type = #tpu.core_type<tc>, window_params = [{transform_indices = @transform_0, window_bounds = array<i64: 8, 1024>}, {transform_indices = @transform_1, window_bounds = array<i64: 1024, 128>}, {transform_indices = @transform_2, window_bounds = array<i64: 1, 128>}, {transform_indices = @transform_3, window_bounds = array<i64: 8, 128>}]} {
    %c0_i32 = arith.constant 0 : i32
    %0 = arith.cmpi eq, %arg2, %c0_i32 : i32
    %1 = arith.extui %0 : i1 to i32
    %c0_i32_0 = arith.constant 0 : i32
    %2 = arith.cmpi ne, %1, %c0_i32_0 : i32
    scf.if %2 {
      %cst_10 = arith.constant 0.000000e+00 : f32
      %12 = vector.broadcast %cst_10 : f32 to vector<8x128xf32>
      %c0_11 = arith.constant 0 : index
      %c0_12 = arith.constant 0 : index
      %13 = vector.load %arg7[%c0_11, %c0_12] : memref<8x128xf32, #tpu.memory_space<vmem>>, vector<8x128xf32>
      tpu.vector_store %arg7[%c0_11, %c0_12], %12 {strides = array<i32>} : memref<8x128xf32, #tpu.memory_space<vmem>>, vector<8x128xf32>,
    } else {
    }
    %c0 = arith.constant 0 : index
    %c0_1 = arith.constant 0 : index
    %3 = vector.load %arg7[%c0, %c0_1] : memref<8x128xf32, #tpu.memory_space<vmem>>, vector<8x128xf32>
    %c0_2 = arith.constant 0 : index
    %c0_3 = arith.constant 0 : index
    %4 = vector.load %arg3[%c0_2, %c0_3] : memref<8x1024xbf16, #tpu.memory_space<vmem>>, vector<8x1024xbf16>
    %c0_4 = arith.constant 0 : index
    %c0_5 = arith.constant 0 : index
    %5 = vector.load %arg4[%c0_4, %c0_5] : memref<1024x128xbf16, #tpu.memory_space<vmem>>, vector<1024x128xbf16>
    %cst = arith.constant dense<0.000000e+00> : vector<8x128xf32>
    %6 = tpu.matmul %4, %5, %cst {dimension_numbers = #tpu.dot_dimension_numbers<[1], [0], [0], [1], [0, 0, 1, 1], [], []>} : vector<8x1024xbf16>, vector<1024x128xbf16>, vector<8x128xf32> -> vector<8x128xf32>
    %7 = arith.addf %3, %6 : vector<8x128xf32>
    %c0_6 = arith.constant 0 : index
    %c0_7 = arith.constant 0 : index
    %8 = vector.load %arg7[%c0_6, %c0_7] : memref<8x128xf32, #tpu.memory_space<vmem>>, vector<8x128xf32>
    tpu.vector_store %arg7[%c0_6, %c0_7], %7 {strides = array<i32>} : memref<8x128xf32, #tpu.memory_space<vmem>>, vector<8x128xf32>,
    %c0_i32_8 = arith.constant 0 : i32
    %9 = arith.cmpi eq, %arg2, %c0_i32_8 : i32
    %10 = arith.extui %9 : i1 to i32
    %c0_i32_9 = arith.constant 0 : i32
    %11 = arith.cmpi ne, %10, %c0_i32_9 : i32
    scf.if %11 {
      %c0_10 = arith.constant 0 : index
      %c0_11 = arith.constant 0 : index
      %12 = vector.load %arg7[%c0_10, %c0_11] : memref<8x128xf32, #tpu.memory_space<vmem>>, vector<8x128xf32>
      %c0_12 = arith.constant 0 : index
      %c0_13 = arith.constant 0 : index
      %13 = vector.load %arg5[%c0_12, %c0_13] : memref<1x128xf32, #tpu.memory_space<vmem>>, vector<1x128xf32>
      %14 = vector.broadcast %13 : vector<1x128xf32> to vector<8x128xf32>
      %15 = arith.addf %12, %14 : vector<8x128xf32>
      %c0_14 = arith.constant 0 : index
      %c0_15 = arith.constant 0 : index
      %16 = vector.load %arg6[%c0_14, %c0_15] : memref<8x128xf32, #tpu.memory_space<vmem>>, vector<8x128xf32>
      tpu.vector_store %arg6[%c0_14, %c0_15], %15 {strides = array<i32>} : memref<8x128xf32, #tpu.memory_space<vmem>>, vector<8x128xf32>,
    } else {
    }
    return
  }
  func.func @transform_0(%arg0: i32, %arg1: i32, %arg2: i32) -> (i32, i32) {
    %c0_i32 = arith.constant 0 : i32
    return %arg0, %arg2 : i32, i32
  }
  func.func @transform_1(%arg0: i32, %arg1: i32, %arg2: i32) -> (i32, i32) {
    %c0_i32 = arith.constant 0 : i32
    return %arg2, %arg1 : i32, i32
  }
  func.func @transform_2(%arg0: i32, %arg1: i32, %arg2: i32) -> (i32, i32) {
    %c0_i32 = arith.constant 0 : i32
    %c0_i32_0 = arith.constant 0 : i32
    return %c0_i32, %arg1 : i32, i32
  }
  func.func @transform_3(%arg0: i32, %arg1: i32, %arg2: i32) -> (i32, i32) {
    %c0_i32 = arith.constant 0 : i32
    return %arg0, %arg1 : i32, i32
  }
}

</mosaic_0001>

<bundles_post_ra>
// kernel: encoder_forward.4
= control target key start
LH: loop header
LB: loop body
LE: loop exit
PB: predicated region body
PF: predicated region fallthrough
CT: control target
= control target key end

     0   :  { %s1004_s1 = inlined_call_operand.vmem [shape: bf16[128,128], index: 1, kind: input, shape index: {}]   ;;  %s1005_s0 = inlined_call_operand.vmem [shape: bf16[256,128], index: 0, kind: input, shape index: {}]   ;;  %s1006_s2 = inlined_call_operand.vmem [shape: f32[1,128], index: 2, kind: input, shape index: {}]   ;;  %s1007_s3 = inlined_call_operand.vmem [shape: f32[256,128], index: 3, kind: output, shape index: {}]  }
   0x1   :  { %v755_v0 = vld [vmem:[%s1004_s1] sm:$0xff]   ;;  %v756_v1 = vld [vmem:[%s1004_s1 + $0x8] sm:$0xff]   ;;  %v757_v2 = vld [vmem:[%s1004_s1 + $0x10] sm:$0xff]  }
   0x2   :  { %691 = vmatprep.subr.bf16.mxu0 %v755_v0  ;;  %739 = vmatprep.subr.bf16.mxu1 %v755_v0  ;;  %v758_v3 = vld [vmem:[%s1004_s1 + $0x18] sm:$0xff]   ;;  %v763_v4 = vld [vmem:[%s1005_s0] sm:$0xff]   ;;  %v760_v7 = vld [vmem:[%s1004_s1 + $0x28] sm:$0xff]  }
   0x3   :  { %692 = vmatpush3.bf16.msra.mxu0 %v755_v0  ;;  %747 = vmatpush3.bf16.msra.mxu1 %v755_v0  ;;  %v764_v5 = vld [vmem:[%s1005_s0 + $0x40] sm:$0xff]   ;;  %v761_v8 = vld [vmem:[%s1004_s1 + $0x30] sm:$0xff]   ;;  %v762_v9 = vld [vmem:[%s1004_s1 + $0x38] sm:$0xff]  }
   0x4   :  { %693 = vmatprep.subr.bf16.mxu0 %v756_v1  ;;  %740 = vmatprep.subr.bf16.mxu1 %v756_v1  ;;  %v759_v6 = vld [vmem:[%s1004_s1 + $0x20] sm:$0xff]   ;;  %v765_v10 = vld [vmem:[%s1005_s0 + $0x8] sm:$0xff]   ;;  %v767_v12 = vld [vmem:[%s1005_s0 + $0x10] sm:$0xff]  }
   0x5   :  { %707 = vmatprep.mubr.bf16.mxu0 %v763_v4  ;;  %723 = vmatprep.mubr.bf16.mxu1 %v764_v5  ;;  %v766_v11 = vld [vmem:[%s1005_s0 + $0x48] sm:$0xff]   ;;  %v768_v13 = vld [vmem:[%s1005_s0 + $0x50] sm:$0xff]   ;;  %v769_v14 = vld [vmem:[%s1005_s0 + $0x18] sm:$0xff]  }
   0x6   :  { %v770_v15 = vld [vmem:[%s1005_s0 + $0x58] sm:$0xff]   ;;  %v771_v16 = vld [vmem:[%s1005_s0 + $0x20] sm:$0xff]   ;;  %v773_v18 = vld [vmem:[%s1005_s0 + $0x28] sm:$0xff]  }
   0x7   :  { %694 = vmatpush3.bf16.msra.mxu0 %v756_v1  ;;  %748 = vmatpush3.bf16.msra.mxu1 %v756_v1  ;;  %v772_v17 = vld [vmem:[%s1005_s0 + $0x60] sm:$0xff]   ;;  %v774_v19 = vld [vmem:[%s1005_s0 + $0x68] sm:$0xff]   ;;  %v775_v20 = vld [vmem:[%s1005_s0 + $0x30] sm:$0xff]  }
   0x8   :  { %695 = vmatprep.subr.bf16.mxu0 %v757_v2  ;;  %741 = vmatprep.subr.bf16.mxu1 %v757_v2  ;;  %v776_v21 = vld [vmem:[%s1005_s0 + $0x70] sm:$0xff]   ;;  %v777_v22 = vld [vmem:[%s1005_s0 + $0x38] sm:$0xff]   ;;  %v874_v24 = vld [vmem:[%s1006_s2] ss:$0 sm:$0xff] }
   0x9   :  { %v778_v23 = vld [vmem:[%s1005_s0 + $0x78] sm:$0xff]  }
   0xb   :  { %696 = vmatpush3.bf16.msra.mxu0 %v757_v2  ;;  %749 = vmatpush3.bf16.msra.mxu1 %v757_v2 }
   0xc   :  { %697 = vmatprep.subr.bf16.mxu0 %v758_v3  ;;  %742 = vmatprep.subr.bf16.mxu1 %v758_v3 }
   0xf   :  { %698 = vmatpush3.bf16.msra.mxu0 %v758_v3  ;;  %750 = vmatpush3.bf16.msra.mxu1 %v758_v3 }
  0x10   :  { %699 = vmatprep.subr.bf16.mxu0 %v759_v6  ;;  %743 = vmatprep.subr.bf16.mxu1 %v759_v6 }
  0x13   :  { %700 = vmatpush3.bf16.msra.mxu0 %v759_v6  ;;  %751 = vmatpush3.bf16.msra.mxu1 %v759_v6 }
  0x14   :  { %701 = vmatprep.subr.bf16.mxu0 %v760_v7  ;;  %744 = vmatprep.subr.bf16.mxu1 %v760_v7 }
  0x17   :  { %702 = vmatpush3.bf16.msra.mxu0 %v760_v7  ;;  %752 = vmatpush3.bf16.msra.mxu1 %v760_v7 }
  0x18   :  { %703 = vmatprep.subr.bf16.mxu0 %v761_v8  ;;  %745 = vmatprep.subr.bf16.mxu1 %v761_v8 }
  0x1b   :  { %704 = vmatpush3.bf16.msra.mxu0 %v761_v8  ;;  %753 = vmatpush3.bf16.msra.mxu1 %v761_v8 }
  0x1c   :  { %705 = vmatprep.subr.bf16.mxu0 %v762_v9  ;;  %746 = vmatprep.subr.bf16.mxu1 %v762_v9 }
  0x1f   :  { %706 = vmatpush3.bf16.msra.mxu0 %v762_v9  ;;  %754 = vmatpush3.bf16.msra.mxu1 %v762_v9 }
  0x22   :  { %708 = vmatmul.mubr.bf16.vlgmr.msra.gmra.mrb[0].mxu0 %v765_v10  ;;  %724 = vmatmul.mubr.bf16.vlgmr.msra.gmra.mrb[0].mxu1 %v766_v11 }
  0x23   :  { %711 = vmatprep.mubr.bf16.mxu0 %v767_v12  ;;  %727 = vmatprep.mubr.bf16.mxu1 %v768_v13 }
  0x2a   :  { %712 = vmatmul.mubr.bf16.gmra.mrb[4].mxu0 %v769_v14  ;;  %728 = vmatmul.mubr.bf16.gmra.mrb[4].mxu1 %v770_v15 }
  0x2b   :  { %715 = vmatprep.mubr.bf16.mxu0 %v771_v16  ;;  %731 = vmatprep.mubr.bf16.mxu1 %v772_v17 }
  0x32   :  { %716 = vmatmul.mubr.bf16.gmra.mrb[8].mxu0 %v773_v18  ;;  %732 = vmatmul.mubr.bf16.gmra.mrb[8].mxu1 %v774_v19 }
  0x33   :  { %719 = vmatprep.mubr.bf16.mxu0 %v775_v20  ;;  %735 = vmatprep.mubr.bf16.mxu1 %v776_v21 }
  0x3a   :  { %720 = vmatmul.mubr.bf16.gmra.mrb[12].mxu0 %v777_v22  ;;  %736 = vmatmul.mubr.bf16.gmra.mrb[12].mxu1 %v778_v23 }
  0xf5   :  { %v709_v25 = vpop.f32.mrb[0].mxu0  ;;  %v725_v26 = vpop.f32.mrb[0].mxu1 }
  0xf6   :  { %v544_v27 = vadd.f32 %v709_v25, %v874_v24  ;;  %v560_v28 = vadd.f32 %v725_v26, %v874_v24  ;;  %v309_v29 = vpop.f32.mrb[1].mxu0  ;;  %v373_v30 = vpop.f32.mrb[1].mxu1 }
  0xf7   :  { %v542_v31 = vadd.f32 %v874_v24, %v309_v29  ;;  %v558_v32 = vadd.f32 %v874_v24, %v373_v30  ;;  %v710_v33 = vpop.f32.mrb[2].mxu0  ;;  %v726_v34 = vpop.f32.mrb[2].mxu1 }
  0xf8   :  { %v576_v35 = vmax.f32 %v544_v27, 0.0  ;;  %v592_v36 = vmax.f32 %v560_v28, 0.0  ;;  %v545_v37 = vadd.f32 %v710_v33, %v874_v24  ;;  %v561_v38 = vadd.f32 %v726_v34, %v874_v24  ;;  %v312_v39 = vpop.f32.mrb[3].mxu0  ;;  %v376_v40 = vpop.f32.mrb[3].mxu1 }
  0xf9   :  { %v574_v41 = vmax.f32 %v542_v31, 0.0  ;;  %v590_v42 = vmax.f32 %v558_v32, 0.0  ;;  %v543_v43 = vadd.f32 %v874_v24, %v312_v39  ;;  %v559_v44 = vadd.f32 %v874_v24, %v376_v40 }
  0xfa   :  { %608 = vst [vmem:[%s1007_s3 + $0x10] sm:$0xff] %v576_v35  ;;  %624 = vst [vmem:[%s1007_s3 + $0x90] sm:$0xff] %v592_v36  ;;  %v577_v45 = vmax.f32 %v545_v37, 0.0  ;;  %v593_v46 = vmax.f32 %v561_v38, 0.0 }
  0xfb   :  { %606 = vst [vmem:[%s1007_s3] sm:$0xff] %v574_v41  ;;  %622 = vst [vmem:[%s1007_s3 + $0x80] sm:$0xff] %v590_v42  ;;  %v575_v47 = vmax.f32 %v543_v43, 0.0  ;;  %v591_v48 = vmax.f32 %v559_v44, 0.0 }
  0xfc   :  { %609 = vst [vmem:[%s1007_s3 + $0x18] sm:$0xff] %v577_v45  ;;  %625 = vst [vmem:[%s1007_s3 + $0x98] sm:$0xff] %v593_v46 }
  0xfd   :  { %607 = vst [vmem:[%s1007_s3 + $0x8] sm:$0xff] %v575_v47  ;;  %623 = vst [vmem:[%s1007_s3 + $0x88] sm:$0xff] %v591_v48  ;;  %v713_v49 = vpop.f32.mrb[4].mxu0  ;;  %v729_v50 = vpop.f32.mrb[4].mxu1 }
  0xfe   :  { %v548_v51 = vadd.f32 %v713_v49, %v874_v24  ;;  %v564_v52 = vadd.f32 %v729_v50, %v874_v24  ;;  %v325_v53 = vpop.f32.mrb[5].mxu0  ;;  %v389_v54 = vpop.f32.mrb[5].mxu1 }
  0xff   :  { %v546_v55 = vadd.f32 %v874_v24, %v325_v53  ;;  %v562_v56 = vadd.f32 %v874_v24, %v389_v54  ;;  %v714_v57 = vpop.f32.mrb[6].mxu0  ;;  %v730_v58 = vpop.f32.mrb[6].mxu1 }
 0x100   :  { %v580_v59 = vmax.f32 %v548_v51, 0.0  ;;  %v596_v60 = vmax.f32 %v564_v52, 0.0  ;;  %v549_v61 = vadd.f32 %v714_v57, %v874_v24  ;;  %v565_v62 = vadd.f32 %v730_v58, %v874_v24  ;;  %v328_v63 = vpop.f32.mrb[7].mxu0  ;;  %v392_v0 = vpop.f32.mrb[7].mxu1 }
 0x101   :  { %v578_v1 = vmax.f32 %v546_v55, 0.0  ;;  %v594_v2 = vmax.f32 %v562_v56, 0.0  ;;  %v547_v3 = vadd.f32 %v874_v24, %v328_v63  ;;  %v563_v4 = vadd.f32 %v874_v24, %v392_v0 }
 0x102   :  { %612 = vst [vmem:[%s1007_s3 + $0x30] sm:$0xff] %v580_v59  ;;  %628 = vst [vmem:[%s1007_s3 + $0xb0] sm:$0xff] %v596_v60  ;;  %v581_v5 = vmax.f32 %v549_v61, 0.0  ;;  %v597_v6 = vmax.f32 %v565_v62, 0.0 }
 0x103   :  { %610 = vst [vmem:[%s1007_s3 + $0x20] sm:$0xff] %v578_v1  ;;  %626 = vst [vmem:[%s1007_s3 + $0xa0] sm:$0xff] %v594_v2  ;;  %v579_v7 = vmax.f32 %v547_v3, 0.0  ;;  %v595_v8 = vmax.f32 %v563_v4, 0.0 }
 0x104   :  { %613 = vst [vmem:[%s1007_s3 + $0x38] sm:$0xff] %v581_v5  ;;  %629 = vst [vmem:[%s1007_s3 + $0xb8] sm:$0xff] %v597_v6 }
 0x105   :  { %611 = vst [vmem:[%s1007_s3 + $0x28] sm:$0xff] %v579_v7  ;;  %627 = vst [vmem:[%s1007_s3 + $0xa8] sm:$0xff] %v595_v8  ;;  %v717_v9 = vpop.f32.mrb[8].mxu0  ;;  %v733_v10 = vpop.f32.mrb[8].mxu1 }
 0x106   :  { %v552_v11 = vadd.f32 %v717_v9, %v874_v24  ;;  %v568_v12 = vadd.f32 %v733_v10, %v874_v24  ;;  %v341_v13 = vpop.f32.mrb[9].mxu0  ;;  %v405_v14 = vpop.f32.mrb[9].mxu1 }
 0x107   :  { %v550_v15 = vadd.f32 %v874_v24, %v341_v13  ;;  %v566_v16 = vadd.f32 %v874_v24, %v405_v14  ;;  %v718_v17 = vpop.f32.mrb[10].mxu0  ;;  %v734_v18 = vpop.f32.mrb[10].mxu1 }
 0x108   :  { %v584_v19 = vmax.f32 %v552_v11, 0.0  ;;  %v600_v20 = vmax.f32 %v568_v12, 0.0  ;;  %v553_v21 = vadd.f32 %v718_v17, %v874_v24  ;;  %v569_v22 = vadd.f32 %v734_v18, %v874_v24  ;;  %v344_v23 = vpop.f32.mrb[11].mxu0  ;;  %v408_v25 = vpop.f32.mrb[11].mxu1 }
 0x109   :  { %v582_v26 = vmax.f32 %v550_v15, 0.0  ;;  %v598_v27 = vmax.f32 %v566_v16, 0.0  ;;  %v551_v28 = vadd.f32 %v874_v24, %v344_v23  ;;  %v567_v29 = vadd.f32 %v874_v24, %v408_v25 }
 0x10a   :  { %616 = vst [vmem:[%s1007_s3 + $0x50] sm:$0xff] %v584_v19  ;;  %632 = vst [vmem:[%s1007_s3 + $0xd0] sm:$0xff] %v600_v20  ;;  %v585_v30 = vmax.f32 %v553_v21, 0.0  ;;  %v601_v31 = vmax.f32 %v569_v22, 0.0 }
 0x10b   :  { %614 = vst [vmem:[%s1007_s3 + $0x40] sm:$0xff] %v582_v26  ;;  %630 = vst [vmem:[%s1007_s3 + $0xc0] sm:$0xff] %v598_v27  ;;  %v583_v32 = vmax.f32 %v551_v28, 0.0  ;;  %v599_v33 = vmax.f32 %v567_v29, 0.0 }
 0x10c   :  { %617 = vst [vmem:[%s1007_s3 + $0x58] sm:$0xff] %v585_v30  ;;  %633 = vst [vmem:[%s1007_s3 + $0xd8] sm:$0xff] %v601_v31 }
 0x10d   :  { %615 = vst [vmem:[%s1007_s3 + $0x48] sm:$0xff] %v583_v32  ;;  %631 = vst [vmem:[%s1007_s3 + $0xc8] sm:$0xff] %v599_v33  ;;  %v721_v34 = vpop.f32.mrb[12].mxu0  ;;  %v737_v35 = vpop.f32.mrb[12].mxu1 }
 0x10e   :  { %v556_v36 = vadd.f32 %v721_v34, %v874_v24  ;;  %v572_v37 = vadd.f32 %v737_v35, %v874_v24  ;;  %v357_v38 = vpop.f32.mrb[13].mxu0  ;;  %v421_v39 = vpop.f32.mrb[13].mxu1 }
 0x10f   :  { %v554_v40 = vadd.f32 %v874_v24, %v357_v38  ;;  %v570_v41 = vadd.f32 %v874_v24, %v421_v39  ;;  %v722_v42 = vpop.f32.mrb[14].mxu0  ;;  %v738_v43 = vpop.f32.mrb[14].mxu1 }
 0x110   :  { %v588_v44 = vmax.f32 %v556_v36, 0.0  ;;  %v604_v45 = vmax.f32 %v572_v37, 0.0  ;;  %v557_v46 = vadd.f32 %v722_v42, %v874_v24  ;;  %v573_v47 = vadd.f32 %v738_v43, %v874_v24  ;;  %v360_v48 = vpop.f32.mrb[15].mxu0  ;;  %v424_v49 = vpop.f32.mrb[15].mxu1 }
 0x111   :  { %v586_v50 = vmax.f32 %v554_v40, 0.0  ;;  %v602_v51 = vmax.f32 %v570_v41, 0.0  ;;  %v555_v52 = vadd.f32 %v874_v24, %v360_v48  ;;  %v571_v53 = vadd.f32 %v874_v24, %v424_v49 }
 0x112   :  { %620 = vst [vmem:[%s1007_s3 + $0x70] sm:$0xff] %v588_v44  ;;  %636 = vst [vmem:[%s1007_s3 + $0xf0] sm:$0xff] %v604_v45  ;;  %v589_v54 = vmax.f32 %v557_v46, 0.0  ;;  %v605_v55 = vmax.f32 %v573_v47, 0.0 }
 0x113   :  { %618 = vst [vmem:[%s1007_s3 + $0x60] sm:$0xff] %v586_v50  ;;  %634 = vst [vmem:[%s1007_s3 + $0xe0] sm:$0xff] %v602_v51  ;;  %v587_v56 = vmax.f32 %v555_v52, 0.0  ;;  %v603_v24 = vmax.f32 %v571_v53, 0.0 }
 0x114   :  { %621 = vst [vmem:[%s1007_s3 + $0x78] sm:$0xff] %v589_v54  ;;  %637 = vst [vmem:[%s1007_s3 + $0xf8] sm:$0xff] %v605_v55 }
 0x115   :  { %619 = vst [vmem:[%s1007_s3 + $0x68] sm:$0xff] %v587_v56  ;;  %635 = vst [vmem:[%s1007_s3 + $0xe8] sm:$0xff] %v603_v24 }

// kernel: encoder_forward.5
= control target key start
LH: loop header
LB: loop body
LE: loop exit
PB: predicated region body
PF: predicated region fallthrough
CT: control target
= control target key end

     0   :  { %s6690_s1 = inlined_call_operand.vmem [shape: bf16[1792,128], index: 1, kind: input, shape index: {}]   ;;  %s6691_s0 = inlined_call_operand.vmem [shape: bf16[256,1792], index: 0, kind: input, shape index: {}]   ;;  %s6692_s2 = inlined_call_operand.vmem [shape: f32[1,128], index: 2, kind: input, shape index: {}]   ;;  %s6693_s3 = inlined_call_operand.vmem [shape: f32[256,128], index: 3, kind: output, shape index: {}]  }
   0x1   :  { %v4793_v0 = vld [vmem:[%s6690_s1 + $0x40] sm:$0xff]   ;;  %v4795_v2 = vld [vmem:[%s6690_s1 + $0x48] sm:$0xff]   ;;  %v4797_v4 = vld [vmem:[%s6690_s1 + $0x50] sm:$0xff]  }
   0x2   :  { %v4794_v1 = vld [vmem:[%s6690_s1] sm:$0xff]   ;;  %3993 = vmatprep.subr.bf16.mxu0 %v4793_v0  ;;  %4777 = vmatprep.subr.bf16.mxu1 %v4793_v0  ;;  %v4796_v3 = vld [vmem:[%s6690_s1 + $0x8] sm:$0xff]   ;;  %v4798_v5 = vld [vmem:[%s6690_s1 + $0x10] sm:$0xff]  }
   0x3   :  { %3994 = vmatpush3.bf16.msra.mxu0 %v4794_v1  ;;  %4785 = vmatpush3.bf16.msra.mxu1 %v4794_v1  ;;  %v4799_v6 = vld [vmem:[%s6690_s1 + $0x58] sm:$0xff]   ;;  %v4801_v8 = vld [vmem:[%s6690_s1 + $0x60] sm:$0xff]   ;;  %v4803_v10 = vld [vmem:[%s6690_s1 + $0x68] sm:$0xff]  }
   0x4   :  { %3995 = vmatprep.subr.bf16.mxu0 %v4795_v2  ;;  %4778 = vmatprep.subr.bf16.mxu1 %v4795_v2  ;;  %v4800_v7 = vld [vmem:[%s6690_s1 + $0x18] sm:$0xff]   ;;  %v4802_v9 = vld [vmem:[%s6690_s1 + $0x20] sm:$0xff]   ;;  %v4804_v13 = vld [vmem:[%s6690_s1 + $0x28] sm:$0xff]  }
   0x5   :  { %v4811_v11 = vld [vmem:[%s6691_s0 + $0x4] ss:$56 sps:$4 sm:$0xff]   ;;  %v4805_v14 = vld [vmem:[%s6690_s1 + $0x70] sm:$0xff]   ;;  %v4809_v19 = vld [vmem:[%s6691_s0] ss:$56 sps:$4 sm:$0xff]  }
   0x6   :  { %v4814_v12 = vld [vmem:[%s6691_s0 + $0x384] ss:$56 sps:$4 sm:$0xff]   ;;  %2355 = vmatprep.mubr.bf16.mxu0 %v4811_v11  ;;  %v4806_v15 = vld [vmem:[%s6690_s1 + $0x30] sm:$0xff]   ;;  %v4812_v21 = vld [vmem:[%s6691_s0 + $0x380] ss:$56 sps:$4 sm:$0xff]  }
   0x7   :  { %3996 = vmatpush3.bf16.msra.mxu0 %v4796_v3  ;;  %4786 = vmatpush3.bf16.msra.mxu1 %v4796_v3  ;;  %v4807_v16 = vld [vmem:[%s6690_s1 + $0x78] sm:$0xff]   ;;  %v4815_v18 = vld [vmem:[%s6690_s1 + $0xc0] sm:$0xff]   ;;  %v4819_v24 = vld [vmem:[%s6691_s0 + $0x74] ss:$56 sps:$4 sm:$0xff]  }
   0x8   :  { %3997 = vmatprep.subr.bf16.mxu0 %v4797_v4  ;;  %4779 = vmatprep.subr.bf16.mxu1 %v4797_v4  ;;  %v4808_v17 = vld [vmem:[%s6690_s1 + $0x38] sm:$0xff]   ;;  %v4817_v20 = vld [vmem:[%s6690_s1 + $0x140] sm:$0xff]   ;;  %v4821_v25 = vld [vmem:[%s6691_s0 + $0x3f4] ss:$56 sps:$4 sm:$0xff]  }
   0x9   :  { %2419 = vmatprep.mubr.bf16.mxu1 %v4814_v12  ;;  %v4816_v22 = vld [vmem:[%s6690_s1 + $0x80] sm:$0xff]   ;;  %v4825_v26 = vld [vmem:[%s6690_s1 + $0xc8] sm:$0xff]   ;;  %v4835_v30 = vld [vmem:[%s6690_s1 + $0xd0] sm:$0xff]  }
   0xa   :  { %v4818_v23 = vld [vmem:[%s6690_s1 + $0x100] sm:$0xff]   ;;  %v4826_v27 = vld [vmem:[%s6690_s1 + $0x88] sm:$0xff]   ;;  %v4837_v33 = vld [vmem:[%s6690_s1 + $0x150] sm:$0xff]  }
   0xb   :  { %3998 = vmatpush3.bf16.msra.mxu0 %v4798_v5  ;;  %4787 = vmatpush3.bf16.msra.mxu1 %v4798_v5  ;;  %v4827_v28 = vld [vmem:[%s6690_s1 + $0x148] sm:$0xff]   ;;  %v4829_v34 = vld [vmem:[%s6691_s0 + $0xe4] ss:$56 sps:$4 sm:$0xff]   ;;  %v4836_v36 = vld [vmem:[%s6690_s1 + $0x90] sm:$0xff]  }
   0xc   :  { %3999 = vmatprep.subr.bf16.mxu0 %v4799_v6  ;;  %4780 = vmatprep.subr.bf16.mxu1 %v4799_v6  ;;  %v4828_v29 = vld [vmem:[%s6690_s1 + $0x108] sm:$0xff]   ;;  %v4831_v35 = vld [vmem:[%s6691_s0 + $0x464] ss:$56 sps:$4 sm:$0xff]   ;;  %v4838_v37 = vld [vmem:[%s6690_s1 + $0x110] sm:$0xff]  }
   0xd   :  { %v4823_v31 = vld [vmem:[%s6691_s0 + $0x70] ss:$56 sps:$4 sm:$0xff]   ;;  %v4845_v38 = vld [vmem:[%s6690_s1 + $0xd8] sm:$0xff]   ;;  %v4839_v44 = vld [vmem:[%s6691_s0 + $0x154] ss:$56 sps:$4 sm:$0xff]  }
   0xe   :  { %v4824_v32 = vld [vmem:[%s6691_s0 + $0x3f0] ss:$56 sps:$4 sm:$0xff]   ;;  %v4847_v39 = vld [vmem:[%s6690_s1 + $0x158] sm:$0xff]   ;;  %v4841_v45 = vld [vmem:[%s6691_s0 + $0x4d4] ss:$56 sps:$4 sm:$0xff]  }
   0xf   :  { %4000 = vmatpush3.bf16.msra.mxu0 %v4800_v7  ;;  %4788 = vmatpush3.bf16.msra.mxu1 %v4800_v7  ;;  %v4833_v40 = vld [vmem:[%s6691_s0 + $0xe0] ss:$56 sps:$4 sm:$0xff]   ;;  %v4843_v50 = vld [vmem:[%s6691_s0 + $0x150] ss:$56 sps:$4 sm:$0xff]   ;;  %v4849_v53 = vld [vmem:[%s6691_s0 + $0x1c4] ss:$56 sps:$4 sm:$0xff]  }
  0x10   :  { %4001 = vmatprep.subr.bf16.mxu0 %v4801_v8  ;;  %4781 = vmatprep.subr.bf16.mxu1 %v4801_v8  ;;  %v4834_v41 = vld [vmem:[%s6691_s0 + $0x460] ss:$56 sps:$4 sm:$0xff]   ;;  %v4844_v51 = vld [vmem:[%s6691_s0 + $0x4d0] ss:$56 sps:$4 sm:$0xff]   ;;  %v4851_v54 = vld [vmem:[%s6691_s0 + $0x544] ss:$56 sps:$4 sm:$0xff]  }
  0x11   :  { %v4846_v42 = vld [vmem:[%s6690_s1 + $0x98] sm:$0xff]   ;;  %v4855_v46 = vld [vmem:[%s6690_s1 + $0xe0] sm:$0xff]   ;;  %v4865_v52 = vld [vmem:[%s6690_s1 + $0xe8] sm:$0xff]  }
  0x12   :  { %v4848_v43 = vld [vmem:[%s6690_s1 + $0x118] sm:$0xff]   ;;  %v4856_v47 = vld [vmem:[%s6690_s1 + $0xa0] sm:$0xff]   ;;  %v4866_v55 = vld [vmem:[%s6690_s1 + $0xa8] sm:$0xff]  }
  0x13   :  { %4002 = vmatpush3.bf16.msra.mxu0 %v4802_v9  ;;  %4789 = vmatpush3.bf16.msra.mxu1 %v4802_v9  ;;  %v4857_v48 = vld [vmem:[%s6690_s1 + $0x160] sm:$0xff]   ;;  %v4867_v56 = vld [vmem:[%s6690_s1 + $0x168] sm:$0xff]   ;;  %v4875_v58 = vld [vmem:[%s6690_s1 + $0xf0] sm:$0xff]  }
  0x14   :  { %4003 = vmatprep.subr.bf16.mxu0 %v4803_v10  ;;  %4782 = vmatprep.subr.bf16.mxu1 %v4803_v10  ;;  %v4858_v49 = vld [vmem:[%s6690_s1 + $0x120] sm:$0xff]   ;;  %v4868_v57 = vld [vmem:[%s6690_s1 + $0x128] sm:$0xff]   ;;  %v4876_v61 = vld [vmem:[%s6690_s1 + $0xb0] sm:$0xff]  }
  0x15   :  { %v4853_v59 = vld [vmem:[%s6691_s0 + $0x1c0] ss:$56 sps:$4 sm:$0xff]   ;;  %v4859_v62 = vld [vmem:[%s6691_s0 + $0x234] ss:$56 sps:$4 sm:$0xff]   ;;  %v4863_v6 = vld [vmem:[%s6691_s0 + $0x230] ss:$56 sps:$4 sm:$0xff]  }
  0x16   :  { %v4854_v60 = vld [vmem:[%s6691_s0 + $0x540] ss:$56 sps:$4 sm:$0xff]   ;;  %v4877_v63 = vld [vmem:[%s6690_s1 + $0x170] sm:$0xff]   ;;  %v4869_v8 = vld [vmem:[%s6691_s0 + $0x2a4] ss:$56 sps:$4 sm:$0xff]  }
  0x17   :  { %4004 = vmatpush3.bf16.msra.mxu0 %v4804_v13  ;;  %4790 = vmatpush3.bf16.msra.mxu1 %v4804_v13  ;;  %v4878_v0 = vld [vmem:[%s6690_s1 + $0x130] sm:$0xff]   ;;  %v4885_v2 = vld [vmem:[%s6690_s1 + $0xf8] sm:$0xff]   ;;  %v4895_v10 = vld [vmem:[%s6690_s1 + $0x1c0] sm:$0xff]  }
  0x18   :  { %4005 = vmatprep.subr.bf16.mxu0 %v4805_v14  ;;  %4783 = vmatprep.subr.bf16.mxu1 %v4805_v14  ;;  %v4861_v1 = vld [vmem:[%s6691_s0 + $0x5b4] ss:$56 sps:$4 sm:$0xff]   ;;  %v4886_v3 = vld [vmem:[%s6690_s1 + $0xb8] sm:$0xff]   ;;  %v4864_v7 = vld [vmem:[%s6691_s0 + $0x5b0] ss:$56 sps:$4 sm:$0xff]  }
  0x19   :  { %v4887_v4 = vld [vmem:[%s6690_s1 + $0x178] sm:$0xff]   ;;  %v4897_v11 = vld [vmem:[%s6690_s1 + $0x240] sm:$0xff]   ;;  %v4879_v14 = vld [vmem:[%s6691_s0 + $0x314] ss:$56 sps:$4 sm:$0xff]  }
  0x1a   :  { %v4888_v5 = vld [vmem:[%s6690_s1 + $0x138] sm:$0xff]  }
  0x1b   :  { %4006 = vmatpush3.bf16.msra.mxu0 %v4806_v15  ;;  %4791 = vmatpush3.bf16.msra.mxu1 %v4806_v15  ;;  %v4871_v9 = vld [vmem:[%s6691_s0 + $0x624] ss:$56 sps:$4 sm:$0xff]   ;;  %v4873_v12 = vld [vmem:[%s6691_s0 + $0x2a0] ss:$56 sps:$4 sm:$0xff]   ;;  %v4881_v15 = vld [vmem:[%s6691_s0 + $0x694] ss:$56 sps:$4 sm:$0xff]  }
  0x1c   :  { %4007 = vmatprep.subr.bf16.mxu0 %v4807_v16  ;;  %4784 = vmatprep.subr.bf16.mxu1 %v4807_v16  ;;  %v4874_v13 = vld [vmem:[%s6691_s0 + $0x620] ss:$56 sps:$4 sm:$0xff]   ;;  %v4883_v16 = vld [vmem:[%s6691_s0 + $0x310] ss:$56 sps:$4 sm:$0xff]  }
  0x1f   :  { %4008 = vmatpush3.bf16.msra.mxu0 %v4808_v17  ;;  %4792 = vmatpush3.bf16.msra.mxu1 %v4808_v17  ;;  %v4884_v17 = vld [vmem:[%s6691_s0 + $0x690] ss:$56 sps:$4 sm:$0xff]  }
  0x20   :  { %4105 = vmatprep.subr.bf16.mxu1 %v4815_v18  ;;  %4217 = vmatprep.subr.bf16.mxu0 %v4817_v20  ;;  %v4891_v18 = vld [vmem:[%s6691_s0 + $0xc] ss:$56 sps:$4 sm:$0xff]   ;;  %v4889_v20 = vld [vmem:[%s6691_s0 + $0x8] ss:$56 sps:$4 sm:$0xff]  }
  0x22   :  { %2356 = vmatmul.mubr.bf16.vlgmr.msra.gmra.mrb[0].mxu0 %v4809_v19  ;;  %2420 = vmatmul.mubr.bf16.vlgmr.msra.gmra.mrb[0].mxu1 %v4812_v21  ;;  %v4894_v19 = vld [vmem:[%s6691_s0 + $0x14] ss:$56 sps:$4 sm:$0xff]   ;;  %v4892_v21 = vld [vmem:[%s6691_s0 + $0x10] ss:$56 sps:$4 sm:$0xff]  }
  0x23   :  { %4106 = vmatpush3.bf16.msra.mxu1 %v4816_v22  ;;  %4218 = vmatpush3.bf16.msra.mxu0 %v4818_v23  ;;  %v4896_v22 = vld [vmem:[%s6690_s1 + $0x180] sm:$0xff]  }
  0x24   :  { %2363 = vmatprep.mubr.bf16.mxu0 %v4819_v24  ;;  %2427 = vmatprep.mubr.bf16.mxu1 %v4821_v25  ;;  %v4898_v23 = vld [vmem:[%s6690_s1 + $0x200] sm:$0xff]   ;;  %v4899_v24 = vld [vmem:[%s6691_s0 + $0x7c] ss:$56 sps:$4 sm:$0xff]  }
  0x25   :  { %4107 = vmatprep.subr.bf16.mxu1 %v4825_v26  ;;  %4219 = vmatprep.subr.bf16.mxu0 %v4827_v28  ;;  %v4901_v25 = vld [vmem:[%s6691_s0 + $0x84] ss:$56 sps:$4 sm:$0xff]   ;;  %v4911_v26 = vld [vmem:[%s6690_s1 + $0x1c8] sm:$0xff]  }
  0x26   :  { %v4912_v28 = vld [vmem:[%s6690_s1 + $0x188] sm:$0xff]  }
  0x27   :  { %4108 = vmatpush3.bf16.msra.mxu1 %v4826_v27  ;;  %4220 = vmatpush3.bf16.msra.mxu0 %v4828_v29  ;;  %v4913_v27 = vld [vmem:[%s6690_s1 + $0x248] sm:$0xff]  }
  0x28   :  { %4109 = vmatprep.subr.bf16.mxu1 %v4835_v30  ;;  %4221 = vmatprep.subr.bf16.mxu0 %v4837_v33  ;;  %v4914_v29 = vld [vmem:[%s6690_s1 + $0x208] sm:$0xff]   ;;  %v4927_v30 = vld [vmem:[%s6690_s1 + $0x1d0] sm:$0xff]  }
  0x29   :  { %v4929_v33 = vld [vmem:[%s6690_s1 + $0x250] sm:$0xff]  }
  0x2a   :  { %2364 = vmatmul.mubr.bf16.gmra.mrb[4].mxu0 %v4823_v31  ;;  %2428 = vmatmul.mubr.bf16.gmra.mrb[4].mxu1 %v4824_v32  ;;  %v4903_v31 = vld [vmem:[%s6691_s0 + $0x78] ss:$56 sps:$4 sm:$0xff]  }
  0x2b   :  { %2371 = vmatprep.mubr.bf16.mxu0 %v4829_v34  ;;  %2435 = vmatprep.mubr.bf16.mxu1 %v4831_v35  ;;  %v4904_v32 = vld [vmem:[%s6691_s0 + $0x80] ss:$56 sps:$4 sm:$0xff]   ;;  %v4905_v34 = vld [vmem:[%s6691_s0 + $0xec] ss:$56 sps:$4 sm:$0xff]  }
  0x2c   :  { %4110 = vmatpush3.bf16.msra.mxu1 %v4836_v36  ;;  %4222 = vmatpush3.bf16.msra.mxu0 %v4838_v37  ;;  %v4907_v35 = vld [vmem:[%s6691_s0 + $0xf4] ss:$56 sps:$4 sm:$0xff]  }
  0x2d   :  { %4111 = vmatprep.subr.bf16.mxu1 %v4845_v38  ;;  %4223 = vmatprep.subr.bf16.mxu0 %v4847_v39  ;;  %v4928_v36 = vld [vmem:[%s6690_s1 + $0x190] sm:$0xff]   ;;  %v4943_v38 = vld [vmem:[%s6690_s1 + $0x1d8] sm:$0xff]  }
  0x2e   :  { %v4930_v37 = vld [vmem:[%s6690_s1 + $0x210] sm:$0xff]   ;;  %v4945_v39 = vld [vmem:[%s6690_s1 + $0x258] sm:$0xff]  }
  0x30   :  { %4112 = vmatpush3.bf16.msra.mxu1 %v4846_v42  ;;  %4224 = vmatpush3.bf16.msra.mxu0 %v4848_v43  ;;  %v4944_v42 = vld [vmem:[%s6690_s1 + $0x198] sm:$0xff]  }
  0x31   :  { %4113 = vmatprep.subr.bf16.mxu1 %v4855_v46  ;;  %4225 = vmatprep.subr.bf16.mxu0 %v4857_v48  ;;  %v4946_v43 = vld [vmem:[%s6690_s1 + $0x218] sm:$0xff]   ;;  %v4959_v46 = vld [vmem:[%s6690_s1 + $0x1e0] sm:$0xff]  }
  0x32   :  { %2372 = vmatmul.mubr.bf16.gmra.mrb[8].mxu0 %v4833_v40  ;;  %2436 = vmatmul.mubr.bf16.gmra.mrb[8].mxu1 %v4834_v41  ;;  %v4909_v40 = vld [vmem:[%s6691_s0 + $0xe8] ss:$56 sps:$4 sm:$0xff]  }
  0x33   :  { %2379 = vmatprep.mubr.bf16.mxu0 %v4839_v44  ;;  %2443 = vmatprep.mubr.bf16.mxu1 %v4841_v45  ;;  %v4910_v41 = vld [vmem:[%s6691_s0 + $0xf0] ss:$56 sps:$4 sm:$0xff]   ;;  %v4915_v44 = vld [vmem:[%s6691_s0 + $0x15c] ss:$56 sps:$4 sm:$0xff]   ;;  %v4961_v48 = vld [vmem:[%s6690_s1 + $0x260] sm:$0xff]  }
  0x34   :  { %4114 = vmatpush3.bf16.msra.mxu1 %v4856_v47  ;;  %4226 = vmatpush3.bf16.msra.mxu0 %v4858_v49  ;;  %v4917_v45 = vld [vmem:[%s6691_s0 + $0x164] ss:$56 sps:$4 sm:$0xff]  }
  0x35   :  { %4115 = vmatprep.subr.bf16.mxu1 %v4865_v52  ;;  %4227 = vmatprep.subr.bf16.mxu0 %v4867_v56  ;;  %v4960_v47 = vld [vmem:[%s6690_s1 + $0x1a0] sm:$0xff]   ;;  %v4977_v56 = vld [vmem:[%s6690_s1 + $0x268] sm:$0xff]  }
  0x36   :  { %v4962_v49 = vld [vmem:[%s6690_s1 + $0x220] sm:$0xff]  }
  0x37   :  { %v4921_v52 = vld [vmem:[%s6691_s0 + $0x1cc] ss:$56 sps:$4 sm:$0xff]  }
  0x38   :  { %4116 = vmatpush3.bf16.msra.mxu1 %v4866_v55  ;;  %4228 = vmatpush3.bf16.msra.mxu0 %v4868_v57  ;;  %v4976_v55 = vld [vmem:[%s6690_s1 + $0x1a8] sm:$0xff]  }
  0x39   :  { %4117 = vmatprep.subr.bf16.mxu1 %v4875_v58  ;;  %4229 = vmatprep.subr.bf16.mxu0 %v4877_v63  ;;  %v4978_v57 = vld [vmem:[%s6690_s1 + $0x228] sm:$0xff]   ;;  %v4992_v63 = vld [vmem:[%s6690_s1 + $0x1b0] sm:$0xff]  }
  0x3a   :  { %2380 = vmatmul.mubr.bf16.gmra.mrb[12].mxu0 %v4843_v50  ;;  %2444 = vmatmul.mubr.bf16.gmra.mrb[12].mxu1 %v4844_v51  ;;  %v4919_v50 = vld [vmem:[%s6691_s0 + $0x158] ss:$56 sps:$4 sm:$0xff]   ;;  %v4925_v58 = vld [vmem:[%s6691_s0 + $0x1c8] ss:$56 sps:$4 sm:$0xff]  }
  0x3b   :  { %2387 = vmatprep.mubr.bf16.mxu0 %v4849_v53  ;;  %2451 = vmatprep.mubr.bf16.mxu1 %v4851_v54  ;;  %v4920_v51 = vld [vmem:[%s6691_s0 + $0x160] ss:$56 sps:$4 sm:$0xff]   ;;  %v4923_v53 = vld [vmem:[%s6691_s0 + $0x1d4] ss:$56 sps:$4 sm:$0xff]  }
  0x3c   :  { %4118 = vmatpush3.bf16.msra.mxu1 %v4876_v61  ;;  %4230 = vmatpush3.bf16.msra.mxu0 %v4878_v0  ;;  %v4975_v54 = vld [vmem:[%s6690_s1 + $0x1e8] sm:$0xff]   ;;  %v4933_v61 = vld [vmem:[%s6691_s0 + $0x244] ss:$56 sps:$4 sm:$0xff]   ;;  %v4993_v0 = vld [vmem:[%s6690_s1 + $0x270] sm:$0xff]  }
  0x3d   :  { %4119 = vmatprep.subr.bf16.mxu1 %v4885_v2  ;;  %4231 = vmatprep.subr.bf16.mxu0 %v4887_v4  ;;  %v4935_v2 = vld [vmem:[%s6691_s0 + $0x238] ss:$56 sps:$4 sm:$0xff]   ;;  %v4937_v4 = vld [vmem:[%s6691_s0 + $0x2ac] ss:$56 sps:$4 sm:$0xff]  }
  0x40   :  { %4120 = vmatpush3.bf16.msra.mxu1 %v4886_v3  ;;  %4232 = vmatpush3.bf16.msra.mxu0 %v4888_v5  ;;  %v4936_v3 = vld [vmem:[%s6691_s0 + $0x240] ss:$56 sps:$4 sm:$0xff]   ;;  %v4939_v5 = vld [vmem:[%s6691_s0 + $0x2b4] ss:$56 sps:$4 sm:$0xff]  }
  0x41   :  { %4329 = vmatprep.subr.bf16.mxu1 %v4895_v10  ;;  %4441 = vmatprep.subr.bf16.mxu0 %v4897_v11  ;;  %v5010_v10 = vld [vmem:[%s6690_s1 + $0x238] sm:$0xff]   ;;  %v4942_v11 = vld [vmem:[%s6691_s0 + $0x2b0] ss:$56 sps:$4 sm:$0xff]  }
  0x42   :  { %2388 = vmatmul.mubr.bf16.gmra.mrb[16].mxu0 %v4853_v59  ;;  %2452 = vmatmul.mubr.bf16.gmra.mrb[16].mxu1 %v4854_v60  ;;  %v4926_v59 = vld [vmem:[%s6691_s0 + $0x1d0] ss:$56 sps:$4 sm:$0xff]   ;;  %v4931_v60 = vld [vmem:[%s6691_s0 + $0x23c] ss:$56 sps:$4 sm:$0xff]  }
  0x43   :  { %2395 = vmatprep.mubr.bf16.mxu0 %v4859_v62  ;;  %2459 = vmatprep.mubr.bf16.mxu1 %v4861_v1  ;;  %v4991_v62 = vld [vmem:[%s6690_s1 + $0x1f0] sm:$0xff]  }
  0x44   :  { %v4994_v1 = vld [vmem:[%s6690_s1 + $0x230] sm:$0xff]  }
  0x4a   :  { %2396 = vmatmul.mubr.bf16.gmra.mrb[20].mxu0 %v4863_v6  ;;  %2460 = vmatmul.mubr.bf16.gmra.mrb[20].mxu1 %v4864_v7  ;;  %v5007_v6 = vld [vmem:[%s6690_s1 + $0x1f8] sm:$0xff]  }
  0x4b   :  { %2403 = vmatprep.mubr.bf16.mxu0 %v4869_v8  ;;  %2467 = vmatprep.mubr.bf16.mxu1 %v4871_v9  ;;  %v5008_v7 = vld [vmem:[%s6690_s1 + $0x1b8] sm:$0xff]   ;;  %v4941_v8 = vld [vmem:[%s6691_s0 + $0x2a8] ss:$56 sps:$4 sm:$0xff]  }
  0x4c   :  { %v5009_v9 = vld [vmem:[%s6690_s1 + $0x278] sm:$0xff]  }
  0x52   :  { %2404 = vmatmul.mubr.bf16.gmra.mrb[24].mxu0 %v4873_v12  ;;  %2468 = vmatmul.mubr.bf16.gmra.mrb[24].mxu1 %v4874_v13  ;;  %v4947_v12 = vld [vmem:[%s6691_s0 + $0x31c] ss:$56 sps:$4 sm:$0xff]  }
  0x53   :  { %2411 = vmatprep.mubr.bf16.mxu0 %v4879_v14  ;;  %2475 = vmatprep.mubr.bf16.mxu1 %v4881_v15  ;;  %v4949_v13 = vld [vmem:[%s6691_s0 + $0x324] ss:$56 sps:$4 sm:$0xff]   ;;  %v4951_v15 = vld [vmem:[%s6691_s0 + $0x318] ss:$56 sps:$4 sm:$0xff]  }
  0x54   :  { %v5023_v14 = vld [vmem:[%s6690_s1 + $0x2c0] sm:$0xff]  }
  0x5a   :  { %2412 = vmatmul.mubr.bf16.gmra.mrb[28].mxu0 %v4883_v16  ;;  %2476 = vmatmul.mubr.bf16.gmra.mrb[28].mxu1 %v4884_v17  ;;  %v4952_v16 = vld [vmem:[%s6691_s0 + $0x320] ss:$56 sps:$4 sm:$0xff]  }
  0x5b   :  { %2516 = vmatprep.mubr.bf16.mxu1 %v4891_v18  ;;  %2677 = vmatprep.mubr.bf16.mxu0 %v4894_v19  ;;  %v5025_v17 = vld [vmem:[%s6690_s1 + $0x340] sm:$0xff]   ;;  %v4955_v19 = vld [vmem:[%s6691_s0 + $0x394] ss:$56 sps:$4 sm:$0xff]  }
  0x5c   :  { %v4953_v18 = vld [vmem:[%s6691_s0 + $0x38c] ss:$56 sps:$4 sm:$0xff]  }
  0x62   :  { %2517 = vmatmul.mubr.bf16.vlgmr.msra.gmra.mrb[32].mxu1 %v4889_v20  ;;  %2678 = vmatmul.mubr.bf16.vlgmr.msra.gmra.mrb[32].mxu0 %v4892_v21  ;;  %v4957_v20 = vld [vmem:[%s6691_s0 + $0x388] ss:$56 sps:$4 sm:$0xff]  }
  0x63   :  { %4330 = vmatpush3.bf16.msra.mxu1 %v4896_v22  ;;  %4442 = vmatpush3.bf16.msra.mxu0 %v4898_v23  ;;  %v4958_v21 = vld [vmem:[%s6691_s0 + $0x390] ss:$56 sps:$4 sm:$0xff]   ;;  %v4963_v22 = vld [vmem:[%s6691_s0 + $0x3fc] ss:$56 sps:$4 sm:$0xff]  }
  0x64   :  { %2524 = vmatprep.mubr.bf16.mxu1 %v4899_v24  ;;  %2685 = vmatprep.mubr.bf16.mxu0 %v4901_v25  ;;  %v4965_v23 = vld [vmem:[%s6691_s0 + $0x404] ss:$56 sps:$4 sm:$0xff]   ;;  %v4967_v24 = vld [vmem:[%s6691_s0 + $0x3f8] ss:$56 sps:$4 sm:$0xff]  }
  0x65   :  { %4331 = vmatprep.subr.bf16.mxu1 %v4911_v26  ;;  %4443 = vmatprep.subr.bf16.mxu0 %v4913_v27  ;;  %v4968_v25 = vld [vmem:[%s6691_s0 + $0x400] ss:$56 sps:$4 sm:$0xff]   ;;  %v4969_v26 = vld [vmem:[%s6691_s0 + $0x46c] ss:$56 sps:$4 sm:$0xff]  }
  0x66   :  { %v4971_v27 = vld [vmem:[%s6691_s0 + $0x474] ss:$56 sps:$4 sm:$0xff]  }
  0x67   :  { %4332 = vmatpush3.bf16.msra.mxu1 %v4912_v28  ;;  %4444 = vmatpush3.bf16.msra.mxu0 %v4914_v29  ;;  %v4973_v28 = vld [vmem:[%s6691_s0 + $0x468] ss:$56 sps:$4 sm:$0xff]  }
  0x68   :  { %4333 = vmatprep.subr.bf16.mxu1 %v4927_v30  ;;  %4445 = vmatprep.subr.bf16.mxu0 %v4929_v33  ;;  %v4974_v29 = vld [vmem:[%s6691_s0 + $0x470] ss:$56 sps:$4 sm:$0xff]   ;;  %v4979_v30 = vld [vmem:[%s6691_s0 + $0x4dc] ss:$56 sps:$4 sm:$0xff]   ;;  %v4984_v33 = vld [vmem:[%s6691_s0 + $0x4e0] ss:$56 sps:$4 sm:$0xff]  }
  0x6a   :  { %2525 = vmatmul.mubr.bf16.gmra.mrb[36].mxu1 %v4903_v31  ;;  %2686 = vmatmul.mubr.bf16.gmra.mrb[36].mxu0 %v4904_v32  ;;  %v4981_v31 = vld [vmem:[%s6691_s0 + $0x4e4] ss:$56 sps:$4 sm:$0xff]   ;;  %v4983_v32 = vld [vmem:[%s6691_s0 + $0x4d8] ss:$56 sps:$4 sm:$0xff]  }
  0x6b   :  { %2532 = vmatprep.mubr.bf16.mxu1 %v4905_v34  ;;  %2693 = vmatprep.mubr.bf16.mxu0 %v4907_v35  ;;  %v4985_v34 = vld [vmem:[%s6691_s0 + $0x54c] ss:$56 sps:$4 sm:$0xff]  }
  0x6c   :  { %4334 = vmatpush3.bf16.msra.mxu1 %v4928_v36  ;;  %4446 = vmatpush3.bf16.msra.mxu0 %v4930_v37  ;;  %v4987_v35 = vld [vmem:[%s6691_s0 + $0x554] ss:$56 sps:$4 sm:$0xff]   ;;  %v4989_v36 = vld [vmem:[%s6691_s0 + $0x548] ss:$56 sps:$4 sm:$0xff]  }
  0x6d   :  { %4335 = vmatprep.subr.bf16.mxu1 %v4943_v38  ;;  %4447 = vmatprep.subr.bf16.mxu0 %v4945_v39  ;;  %v4990_v37 = vld [vmem:[%s6691_s0 + $0x550] ss:$56 sps:$4 sm:$0xff]   ;;  %v4995_v38 = vld [vmem:[%s6691_s0 + $0x5bc] ss:$56 sps:$4 sm:$0xff]  }
  0x6e   :  { %v4997_v39 = vld [vmem:[%s6691_s0 + $0x5c4] ss:$56 sps:$4 sm:$0xff]  }
  0x70   :  { %4336 = vmatpush3.bf16.msra.mxu1 %v4944_v42  ;;  %4448 = vmatpush3.bf16.msra.mxu0 %v4946_v43  ;;  %v5001_v42 = vld [vmem:[%s6691_s0 + $0x62c] ss:$56 sps:$4 sm:$0xff]  }
  0x71   :  { %4337 = vmatprep.subr.bf16.mxu1 %v4959_v46  ;;  %4449 = vmatprep.subr.bf16.mxu0 %v4961_v48  ;;  %v5003_v43 = vld [vmem:[%s6691_s0 + $0x634] ss:$56 sps:$4 sm:$0xff]   ;;  %v5015_v48 = vld [vmem:[%s6691_s0 + $0x698] ss:$56 sps:$4 sm:$0xff]  }
  0x72   :  { %2533 = vmatmul.mubr.bf16.gmra.mrb[40].mxu1 %v4909_v40  ;;  %2694 = vmatmul.mubr.bf16.gmra.mrb[40].mxu0 %v4910_v41  ;;  %v4999_v40 = vld [vmem:[%s6691_s0 + $0x5b8] ss:$56 sps:$4 sm:$0xff]   ;;  %v5011_v46 = vld [vmem:[%s6691_s0 + $0x69c] ss:$56 sps:$4 sm:$0xff]  }
  0x73   :  { %2540 = vmatprep.mubr.bf16.mxu1 %v4915_v44  ;;  %2701 = vmatprep.mubr.bf16.mxu0 %v4917_v45  ;;  %v5000_v41 = vld [vmem:[%s6691_s0 + $0x5c0] ss:$56 sps:$4 sm:$0xff]   ;;  %v5006_v45 = vld [vmem:[%s6691_s0 + $0x630] ss:$56 sps:$4 sm:$0xff]  }
  0x74   :  { %4338 = vmatpush3.bf16.msra.mxu1 %v4960_v47  ;;  %4450 = vmatpush3.bf16.msra.mxu0 %v4962_v49  ;;  %v5005_v44 = vld [vmem:[%s6691_s0 + $0x628] ss:$56 sps:$4 sm:$0xff]   ;;  %v5013_v47 = vld [vmem:[%s6691_s0 + $0x6a4] ss:$56 sps:$4 sm:$0xff]  }
  0x75   :  { %4339 = vmatprep.subr.bf16.mxu1 %v4975_v54  ;;  %4451 = vmatprep.subr.bf16.mxu0 %v4977_v56  ;;  %v5016_v49 = vld [vmem:[%s6691_s0 + $0x6a0] ss:$56 sps:$4 sm:$0xff]   ;;  %v5027_v56 = vld [vmem:[%s6691_s0 + $0x8c] ss:$56 sps:$4 sm:$0xff]  }
  0x76   :  { %v5024_v54 = vld [vmem:[%s6690_s1 + $0x280] sm:$0xff]  }
  0x78   :  { %4340 = vmatpush3.bf16.msra.mxu1 %v4976_v55  ;;  %4452 = vmatpush3.bf16.msra.mxu0 %v4978_v57  ;;  %v5026_v55 = vld [vmem:[%s6690_s1 + $0x300] sm:$0xff]   ;;  %v5029_v57 = vld [vmem:[%s6691_s0 + $0x94] ss:$56 sps:$4 sm:$0xff]  }
  0x79   :  { %4341 = vmatprep.subr.bf16.mxu1 %v4991_v62  ;;  %4453 = vmatprep.subr.bf16.mxu0 %v4993_v0  ;;  %v5055_v62 = vld [vmem:[%s6690_s1 + $0x2d0] sm:$0xff]   ;;  %v5031_v0 = vld [vmem:[%s6691_s0 + $0x88] ss:$56 sps:$4 sm:$0xff]  }
  0x7a   :  { %2541 = vmatmul.mubr.bf16.gmra.mrb[44].mxu1 %v4919_v50  ;;  %2702 = vmatmul.mubr.bf16.gmra.mrb[44].mxu0 %v4920_v51  ;;  %v5019_v50 = vld [vmem:[%s6691_s0 + $0x1c] ss:$56 sps:$4 sm:$0xff]  }
  0x7b   :  { %2548 = vmatprep.mubr.bf16.mxu1 %v4921_v52  ;;  %2709 = vmatprep.mubr.bf16.mxu0 %v4923_v53  ;;  %v5022_v51 = vld [vmem:[%s6691_s0 + $0x24] ss:$56 sps:$4 sm:$0xff]   ;;  %v5017_v52 = vld [vmem:[%s6691_s0 + $0x18] ss:$56 sps:$4 sm:$0xff]  }
  0x7c   :  { %4342 = vmatpush3.bf16.msra.mxu1 %v4992_v63  ;;  %4454 = vmatpush3.bf16.msra.mxu0 %v4994_v1  ;;  %v5020_v53 = vld [vmem:[%s6691_s0 + $0x20] ss:$56 sps:$4 sm:$0xff]   ;;  %v5057_v63 = vld [vmem:[%s6690_s1 + $0x350] sm:$0xff]  }
  0x7d   :  { %4343 = vmatprep.subr.bf16.mxu1 %v5007_v6  ;;  %4455 = vmatprep.subr.bf16.mxu0 %v5009_v9  ;;  %v5032_v1 = vld [vmem:[%s6691_s0 + $0x90] ss:$56 sps:$4 sm:$0xff]   ;;  %v5071_v6 = vld [vmem:[%s6690_s1 + $0x2d8] sm:$0xff]  }
  0x7e   :  { %v5074_v9 = vld [vmem:[%s6690_s1 + $0x318] sm:$0xff]  }
  0x80   :  { %4344 = vmatpush3.bf16.msra.mxu1 %v5008_v7  ;;  %4456 = vmatpush3.bf16.msra.mxu0 %v5010_v10  ;;  %v5073_v7 = vld [vmem:[%s6690_s1 + $0x358] sm:$0xff]   ;;  %v5087_v10 = vld [vmem:[%s6690_s1 + $0x2e0] sm:$0xff]  }
  0x81   :  { %4553 = vmatprep.subr.bf16.mxu1 %v5023_v14  ;;  %4665 = vmatprep.subr.bf16.mxu0 %v5025_v17  ;;  %v5043_v14 = vld [vmem:[%s6691_s0 + $0x16c] ss:$56 sps:$4 sm:$0xff]  }
  0x82   :  { %2549 = vmatmul.mubr.bf16.gmra.mrb[48].mxu1 %v4925_v58  ;;  %2710 = vmatmul.mubr.bf16.gmra.mrb[48].mxu0 %v4926_v59  ;;  %v5039_v58 = vld [vmem:[%s6690_s1 + $0x2c8] sm:$0xff]   ;;  %v5090_v17 = vld [vmem:[%s6690_s1 + $0x320] sm:$0xff]  }
  0x83   :  { %2556 = vmatprep.mubr.bf16.mxu1 %v4931_v60  ;;  %2717 = vmatprep.mubr.bf16.mxu0 %v4933_v61  ;;  %v5041_v59 = vld [vmem:[%s6690_s1 + $0x348] sm:$0xff]  }
  0x84   :  { %v5040_v60 = vld [vmem:[%s6690_s1 + $0x288] sm:$0xff]  }
  0x85   :  { %v5042_v61 = vld [vmem:[%s6690_s1 + $0x308] sm:$0xff]  }
  0x8a   :  { %2557 = vmatmul.mubr.bf16.gmra.mrb[52].mxu1 %v4935_v2  ;;  %2718 = vmatmul.mubr.bf16.gmra.mrb[52].mxu0 %v4936_v3  ;;  %v5033_v2 = vld [vmem:[%s6691_s0 + $0xfc] ss:$56 sps:$4 sm:$0xff]  }
  0x8b   :  { %2564 = vmatprep.mubr.bf16.mxu1 %v4937_v4  ;;  %2725 = vmatprep.mubr.bf16.mxu0 %v4939_v5  ;;  %v5035_v3 = vld [vmem:[%s6691_s0 + $0x104] ss:$56 sps:$4 sm:$0xff]   ;;  %v5056_v4 = vld [vmem:[%s6690_s1 + $0x290] sm:$0xff]  }
  0x8c   :  { %v5058_v5 = vld [vmem:[%s6690_s1 + $0x310] sm:$0xff]  }
  0x92   :  { %2565 = vmatmul.mubr.bf16.gmra.mrb[56].mxu1 %v4941_v8  ;;  %2726 = vmatmul.mubr.bf16.gmra.mrb[56].mxu0 %v4942_v11  ;;  %v5072_v8 = vld [vmem:[%s6690_s1 + $0x298] sm:$0xff]   ;;  %v5089_v11 = vld [vmem:[%s6690_s1 + $0x360] sm:$0xff]  }
  0x93   :  { %2572 = vmatprep.mubr.bf16.mxu1 %v4947_v12  ;;  %2733 = vmatprep.mubr.bf16.mxu0 %v4949_v13  ;;  %v5037_v12 = vld [vmem:[%s6691_s0 + $0xf8] ss:$56 sps:$4 sm:$0xff]  }
  0x94   :  { %v5038_v13 = vld [vmem:[%s6691_s0 + $0x100] ss:$56 sps:$4 sm:$0xff]  }
  0x9a   :  { %2573 = vmatmul.mubr.bf16.gmra.mrb[60].mxu1 %v4951_v15  ;;  %2734 = vmatmul.mubr.bf16.gmra.mrb[60].mxu0 %v4952_v16  ;;  %v5045_v15 = vld [vmem:[%s6691_s0 + $0x174] ss:$56 sps:$4 sm:$0xff]   ;;  %v5088_v16 = vld [vmem:[%s6690_s1 + $0x2a0] sm:$0xff]  }
  0x9b   :  { %2580 = vmatprep.mubr.bf16.mxu1 %v4953_v18  ;;  %2741 = vmatprep.mubr.bf16.mxu0 %v4955_v19  ;;  %v5103_v18 = vld [vmem:[%s6690_s1 + $0x2e8] sm:$0xff]  }
  0x9c   :  { %v5105_v19 = vld [vmem:[%s6690_s1 + $0x368] sm:$0xff]  }
  0xa2   :  { %2581 = vmatmul.mubr.bf16.gmra.mrb[64].mxu1 %v4957_v20  ;;  %2742 = vmatmul.mubr.bf16.gmra.mrb[64].mxu0 %v4958_v21  ;;  %v5104_v20 = vld [vmem:[%s6690_s1 + $0x2a8] sm:$0xff]  }
  0xa3   :  { %2588 = vmatprep.mubr.bf16.mxu1 %v4963_v22  ;;  %2749 = vmatprep.mubr.bf16.mxu0 %v4965_v23  ;;  %v5106_v21 = vld [vmem:[%s6690_s1 + $0x328] sm:$0xff]  }
  0xaa   :  { %2589 = vmatmul.mubr.bf16.gmra.mrb[68].mxu1 %v4967_v24  ;;  %2750 = vmatmul.mubr.bf16.gmra.mrb[68].mxu0 %v4968_v25  ;;  %v5119_v24 = vld [vmem:[%s6690_s1 + $0x2f0] sm:$0xff]  }
  0xab   :  { %2596 = vmatprep.mubr.bf16.mxu1 %v4969_v26  ;;  %2757 = vmatprep.mubr.bf16.mxu0 %v4971_v27  ;;  %v5121_v25 = vld [vmem:[%s6690_s1 + $0x370] sm:$0xff]  }
  0xb2   :  { %2597 = vmatmul.mubr.bf16.gmra.mrb[72].mxu1 %v4973_v28  ;;  %2758 = vmatmul.mubr.bf16.gmra.mrb[72].mxu0 %v4974_v29  ;;  %v5047_v28 = vld [vmem:[%s6691_s0 + $0x168] ss:$56 sps:$4 sm:$0xff]  }
  0xb3   :  { %2604 = vmatprep.mubr.bf16.mxu1 %v4979_v30  ;;  %2765 = vmatprep.mubr.bf16.mxu0 %v4981_v31  ;;  %v5048_v29 = vld [vmem:[%s6691_s0 + $0x170] ss:$56 sps:$4 sm:$0xff]  }
  0xba   :  { %2605 = vmatmul.mubr.bf16.gmra.mrb[76].mxu1 %v4983_v32  ;;  %2766 = vmatmul.mubr.bf16.gmra.mrb[76].mxu0 %v4984_v33 }
  0xbb   :  { %2612 = vmatprep.mubr.bf16.mxu1 %v4985_v34  ;;  %2773 = vmatprep.mubr.bf16.mxu0 %v4987_v35  ;;  %v5049_v34 = vld [vmem:[%s6691_s0 + $0x1dc] ss:$56 sps:$4 sm:$0xff]  }
  0xbc   :  { %v5051_v35 = vld [vmem:[%s6691_s0 + $0x1e4] ss:$56 sps:$4 sm:$0xff]  }
  0xc2   :  { %2613 = vmatmul.mubr.bf16.gmra.mrb[80].mxu1 %v4989_v36  ;;  %2774 = vmatmul.mubr.bf16.gmra.mrb[80].mxu0 %v4990_v37 }
  0xc3   :  { %2620 = vmatprep.mubr.bf16.mxu1 %v4995_v38  ;;  %2781 = vmatprep.mubr.bf16.mxu0 %v4997_v39  ;;  %v5120_v38 = vld [vmem:[%s6690_s1 + $0x2b0] sm:$0xff]  }
  0xc4   :  { %v5122_v39 = vld [vmem:[%s6690_s1 + $0x330] sm:$0xff]  }
  0xca   :  { %2621 = vmatmul.mubr.bf16.gmra.mrb[84].mxu1 %v4999_v40  ;;  %2782 = vmatmul.mubr.bf16.gmra.mrb[84].mxu0 %v5000_v41 }
  0xcb   :  { %2628 = vmatprep.mubr.bf16.mxu1 %v5001_v42  ;;  %2789 = vmatprep.mubr.bf16.mxu0 %v5003_v43  ;;  %v5135_v42 = vld [vmem:[%s6690_s1 + $0x2f8] sm:$0xff]  }
  0xcc   :  { %v5137_v43 = vld [vmem:[%s6690_s1 + $0x378] sm:$0xff]  }
  0xd2   :  { %2629 = vmatmul.mubr.bf16.gmra.mrb[88].mxu1 %v5005_v44  ;;  %2790 = vmatmul.mubr.bf16.gmra.mrb[88].mxu0 %v5006_v45  ;;  %v5136_v44 = vld [vmem:[%s6690_s1 + $0x2b8] sm:$0xff]  }
  0xd3   :  { %2636 = vmatprep.mubr.bf16.mxu1 %v5011_v46  ;;  %2797 = vmatprep.mubr.bf16.mxu0 %v5013_v47  ;;  %v5138_v45 = vld [vmem:[%s6690_s1 + $0x338] sm:$0xff]  }
  0xda   :  { %2637 = vmatmul.mubr.bf16.gmra.mrb[92].mxu1 %v5015_v48  ;;  %2798 = vmatmul.mubr.bf16.gmra.mrb[92].mxu0 %v5016_v49 }
  0xdb   :  { %2838 = vmatprep.mubr.bf16.mxu1 %v5019_v50  ;;  %2999 = vmatprep.mubr.bf16.mxu0 %v5022_v51  ;;  %v5053_v50 = vld [vmem:[%s6691_s0 + $0x1d8] ss:$56 sps:$4 sm:$0xff]  }
  0xdc   :  { %v5054_v51 = vld [vmem:[%s6691_s0 + $0x1e0] ss:$56 sps:$4 sm:$0xff]  }
  0xe2   :  { %2839 = vmatmul.mubr.bf16.vlgmr.msra.gmra.mrb[96].mxu1 %v5017_v52  ;;  %3000 = vmatmul.mubr.bf16.vlgmr.msra.gmra.mrb[96].mxu0 %v5020_v53 }
  0xe3   :  { %4554 = vmatpush3.bf16.msra.mxu1 %v5024_v54  ;;  %4666 = vmatpush3.bf16.msra.mxu0 %v5026_v55 }
  0xe4   :  { %2846 = vmatprep.mubr.bf16.mxu1 %v5027_v56  ;;  %3007 = vmatprep.mubr.bf16.mxu0 %v5029_v57  ;;  %v5059_v56 = vld [vmem:[%s6691_s0 + $0x24c] ss:$56 sps:$4 sm:$0xff]  }
  0xe5   :  { %4555 = vmatprep.subr.bf16.mxu1 %v5039_v58  ;;  %4667 = vmatprep.subr.bf16.mxu0 %v5041_v59  ;;  %v5061_v57 = vld [vmem:[%s6691_s0 + $0x254] ss:$56 sps:$4 sm:$0xff]  }
  0xe7   :  { %4556 = vmatpush3.bf16.msra.mxu1 %v5040_v60  ;;  %4668 = vmatpush3.bf16.msra.mxu0 %v5042_v61 }
  0xe8   :  { %4557 = vmatprep.subr.bf16.mxu1 %v5055_v62  ;;  %4669 = vmatprep.subr.bf16.mxu0 %v5057_v63 }
  0xea   :  { %2847 = vmatmul.mubr.bf16.gmra.mrb[100].mxu1 %v5031_v0  ;;  %3008 = vmatmul.mubr.bf16.gmra.mrb[100].mxu0 %v5032_v1 }
  0xeb   :  { %2854 = vmatprep.mubr.bf16.mxu1 %v5033_v2  ;;  %3015 = vmatprep.mubr.bf16.mxu0 %v5035_v3  ;;  %v5063_v2 = vld [vmem:[%s6691_s0 + $0x248] ss:$56 sps:$4 sm:$0xff]  }
  0xec   :  { %4558 = vmatpush3.bf16.msra.mxu1 %v5056_v4  ;;  %4670 = vmatpush3.bf16.msra.mxu0 %v5058_v5  ;;  %v5064_v3 = vld [vmem:[%s6691_s0 + $0x250] ss:$56 sps:$4 sm:$0xff]  }
  0xed   :  { %4559 = vmatprep.subr.bf16.mxu1 %v5071_v6  ;;  %4671 = vmatprep.subr.bf16.mxu0 %v5073_v7 }
  0xf0   :  { %4560 = vmatpush3.bf16.msra.mxu1 %v5072_v8  ;;  %4672 = vmatpush3.bf16.msra.mxu0 %v5074_v9  ;;  %v5065_v8 = vld [vmem:[%s6691_s0 + $0x2bc] ss:$56 sps:$4 sm:$0xff]  }
  0xf1   :  { %4561 = vmatprep.subr.bf16.mxu1 %v5087_v10  ;;  %4673 = vmatprep.subr.bf16.mxu0 %v5089_v11  ;;  %v5067_v9 = vld [vmem:[%s6691_s0 + $0x2c4] ss:$56 sps:$4 sm:$0xff]  }
  0xf2   :  { %2855 = vmatmul.mubr.bf16.gmra.mrb[104].mxu1 %v5037_v12  ;;  %3016 = vmatmul.mubr.bf16.gmra.mrb[104].mxu0 %v5038_v13 }
  0xf3   :  { %2862 = vmatprep.mubr.bf16.mxu1 %v5043_v14  ;;  %3023 = vmatprep.mubr.bf16.mxu0 %v5045_v15 }
  0xf4   :  { %4562 = vmatpush3.bf16.msra.mxu1 %v5088_v16  ;;  %4674 = vmatpush3.bf16.msra.mxu0 %v5090_v17 }
  0xf5   :  { %v4009_v22 = vpop.f32.mrb[0].mxu0  ;;  %v4057_v23 = vpop.f32.mrb[0].mxu1  ;;  %4563 = vmatprep.subr.bf16.mxu1 %v5103_v18  ;;  %4675 = vmatprep.subr.bf16.mxu0 %v5105_v19  ;;  %v5069_v18 = vld [vmem:[%s6691_s0 + $0x2b8] ss:$56 sps:$4 sm:$0xff]  }
  0xf6   :  { %v4010_v26 = vpop.f32.mrb[1].mxu0  ;;  %v4058_v27 = vpop.f32.mrb[1].mxu1  ;;  %v5070_v19 = vld [vmem:[%s6691_s0 + $0x2c0] ss:$56 sps:$4 sm:$0xff]  }
  0xf7   :  { %v5915_v30 = vadd.f32 %v4010_v26, %v4009_v22  ;;  %v5917_v31 = vadd.f32 %v4058_v27, %v4057_v23  ;;  %v4012_v32 = vpop.f32.mrb[2].mxu0  ;;  %v4060_v33 = vpop.f32.mrb[2].mxu1 }
  0xf8   :  { %v4013_v36 = vpop.f32.mrb[3].mxu0  ;;  %v4061_v37 = vpop.f32.mrb[3].mxu1  ;;  %4564 = vmatpush3.bf16.msra.mxu1 %v5104_v20  ;;  %4676 = vmatpush3.bf16.msra.mxu0 %v5106_v21 }
  0xf9   :  { %v5931_v40 = vadd.f32 %v4013_v36, %v4012_v32  ;;  %v5933_v41 = vadd.f32 %v4061_v37, %v4060_v33  ;;  %4565 = vmatprep.subr.bf16.mxu1 %v5119_v24  ;;  %4677 = vmatprep.subr.bf16.mxu0 %v5121_v25  ;;  %v5075_v24 = vld [vmem:[%s6691_s0 + $0x32c] ss:$56 sps:$4 sm:$0xff]   ;;  %v5079_v36 = vld [vmem:[%s6691_s0 + $0x328] ss:$56 sps:$4 sm:$0xff]  }
  0xfa   :  { %2863 = vmatmul.mubr.bf16.gmra.mrb[108].mxu1 %v5047_v28  ;;  %3024 = vmatmul.mubr.bf16.gmra.mrb[108].mxu0 %v5048_v29  ;;  %v5077_v25 = vld [vmem:[%s6691_s0 + $0x334] ss:$56 sps:$4 sm:$0xff]   ;;  %v5080_v37 = vld [vmem:[%s6691_s0 + $0x330] ss:$56 sps:$4 sm:$0xff]  }
  0xfb   :  { %2870 = vmatprep.mubr.bf16.mxu1 %v5049_v34  ;;  %3031 = vmatprep.mubr.bf16.mxu0 %v5051_v35 }
  0xfc   :  { %4566 = vmatpush3.bf16.msra.mxu1 %v5120_v38  ;;  %4678 = vmatpush3.bf16.msra.mxu0 %v5122_v39 }
  0xfd   :  { %v4015_v46 = vpop.f32.mrb[4].mxu0  ;;  %v4063_v47 = vpop.f32.mrb[4].mxu1  ;;  %4567 = vmatprep.subr.bf16.mxu1 %v5135_v42  ;;  %4679 = vmatprep.subr.bf16.mxu0 %v5137_v43 }
  0xfe   :  { %v4016_v48 = vpop.f32.mrb[5].mxu0  ;;  %v4064_v49 = vpop.f32.mrb[5].mxu1 }
  0xff   :  { %v5953_v52 = vadd.f32 %v4016_v48, %v4015_v46  ;;  %v5955_v53 = vadd.f32 %v4064_v49, %v4063_v47  ;;  %v4018_v54 = vpop.f32.mrb[6].mxu0  ;;  %v4066_v55 = vpop.f32.mrb[6].mxu1 }
 0x100   :  { %v4019_v58 = vpop.f32.mrb[7].mxu0  ;;  %v4067_v59 = vpop.f32.mrb[7].mxu1  ;;  %4568 = vmatpush3.bf16.msra.mxu1 %v5136_v44  ;;  %4680 = vmatpush3.bf16.msra.mxu0 %v5138_v45  ;;  %v5081_v44 = vld [vmem:[%s6691_s0 + $0x39c] ss:$56 sps:$4 sm:$0xff]  }
 0x101   :  { %v5963_v60 = vadd.f32 %v4019_v58, %v4018_v54  ;;  %v5965_v61 = vadd.f32 %v4067_v59, %v4066_v55  ;;  %v5083_v45 = vld [vmem:[%s6691_s0 + $0x3a4] ss:$56 sps:$4 sm:$0xff]  }
 0x102   :  { %2871 = vmatmul.mubr.bf16.gmra.mrb[112].mxu1 %v5053_v50  ;;  %3032 = vmatmul.mubr.bf16.gmra.mrb[112].mxu0 %v5054_v51 }
 0x103   :  { %2878 = vmatprep.mubr.bf16.mxu1 %v5059_v56  ;;  %3039 = vmatprep.mubr.bf16.mxu0 %v5061_v57  ;;  %v5085_v56 = vld [vmem:[%s6691_s0 + $0x398] ss:$56 sps:$4 sm:$0xff]  }
 0x104   :  { %v5086_v57 = vld [vmem:[%s6691_s0 + $0x3a0] ss:$56 sps:$4 sm:$0xff]  }
 0x105   :  { %v4021_v62 = vpop.f32.mrb[8].mxu0  ;;  %v4069_v63 = vpop.f32.mrb[8].mxu1 }
 0x106   :  { %v4022_v0 = vpop.f32.mrb[9].mxu0  ;;  %v4070_v1 = vpop.f32.mrb[9].mxu1 }
 0x107   :  { %v5973_v4 = vadd.f32 %v4022_v0, %v4021_v62  ;;  %v5975_v5 = vadd.f32 %v4070_v1, %v4069_v63  ;;  %v4024_v6 = vpop.f32.mrb[10].mxu0  ;;  %v4072_v7 = vpop.f32.mrb[10].mxu1  ;;  %v5091_v0 = vld [vmem:[%s6691_s0 + $0x40c] ss:$56 sps:$4 sm:$0xff]  }
 0x108   :  { %v4025_v10 = vpop.f32.mrb[11].mxu0  ;;  %v4073_v11 = vpop.f32.mrb[11].mxu1  ;;  %v5093_v1 = vld [vmem:[%s6691_s0 + $0x414] ss:$56 sps:$4 sm:$0xff]  }
 0x109   :  { %v5983_v12 = vadd.f32 %v4025_v10, %v4024_v6  ;;  %v5985_v13 = vadd.f32 %v4073_v11, %v4072_v7 }
 0x10a   :  { %2879 = vmatmul.mubr.bf16.gmra.mrb[116].mxu1 %v5063_v2  ;;  %3040 = vmatmul.mubr.bf16.gmra.mrb[116].mxu0 %v5064_v3 }
 0x10b   :  { %2886 = vmatprep.mubr.bf16.mxu1 %v5065_v8  ;;  %3047 = vmatprep.mubr.bf16.mxu0 %v5067_v9 }
 0x10d   :  { %v4027_v14 = vpop.f32.mrb[12].mxu0  ;;  %v4075_v15 = vpop.f32.mrb[12].mxu1 }
 0x10e   :  { %v4028_v16 = vpop.f32.mrb[13].mxu0  ;;  %v4076_v17 = vpop.f32.mrb[13].mxu1 }
 0x10f   :  { %v5993_v20 = vadd.f32 %v4028_v16, %v4027_v14  ;;  %v5995_v21 = vadd.f32 %v4076_v17, %v4075_v15  ;;  %v4030_v22 = vpop.f32.mrb[14].mxu0  ;;  %v4078_v23 = vpop.f32.mrb[14].mxu1  ;;  %v5095_v14 = vld [vmem:[%s6691_s0 + $0x408] ss:$56 sps:$4 sm:$0xff]  }
 0x110   :  { %v4031_v26 = vpop.f32.mrb[15].mxu0  ;;  %v4079_v27 = vpop.f32.mrb[15].mxu1  ;;  %v5096_v15 = vld [vmem:[%s6691_s0 + $0x410] ss:$56 sps:$4 sm:$0xff]  }
 0x111   :  { %v6003_v28 = vadd.f32 %v4031_v26, %v4030_v22  ;;  %v6005_v29 = vadd.f32 %v4079_v27, %v4078_v23  ;;  %v5097_v22 = vld [vmem:[%s6691_s0 + $0x47c] ss:$56 sps:$4 sm:$0xff]  }
 0x112   :  { %2887 = vmatmul.mubr.bf16.gmra.mrb[120].mxu1 %v5069_v18  ;;  %3048 = vmatmul.mubr.bf16.gmra.mrb[120].mxu0 %v5070_v19  ;;  %v5099_v23 = vld [vmem:[%s6691_s0 + $0x484] ss:$56 sps:$4 sm:$0xff]  }
 0x113   :  { %2894 = vmatprep.mubr.bf16.mxu1 %v5075_v24  ;;  %3055 = vmatprep.mubr.bf16.mxu0 %v5077_v25 }
 0x115   :  { %v4033_v32 = vpop.f32.mrb[16].mxu0  ;;  %v4081_v33 = vpop.f32.mrb[16].mxu1 }
 0x116   :  { %v4034_v34 = vpop.f32.mrb[17].mxu0  ;;  %v4082_v35 = vpop.f32.mrb[17].mxu1 }
 0x117   :  { %v6013_v38 = vadd.f32 %v4034_v34, %v4033_v32  ;;  %v6015_v39 = vadd.f32 %v4082_v35, %v4081_v33  ;;  %v4036_v42 = vpop.f32.mrb[18].mxu0  ;;  %v4084_v43 = vpop.f32.mrb[18].mxu1 }
 0x118   :  { %v4037_v46 = vpop.f32.mrb[19].mxu0  ;;  %v4085_v47 = vpop.f32.mrb[19].mxu1 }
 0x119   :  { %v6023_v48 = vadd.f32 %v4037_v46, %v4036_v42  ;;  %v6025_v49 = vadd.f32 %v4085_v47, %v4084_v43  ;;  %v5107_v46 = vld [vmem:[%s6691_s0 + $0x4ec] ss:$56 sps:$4 sm:$0xff]  }
 0x11a   :  { %2895 = vmatmul.mubr.bf16.gmra.mrb[124].mxu1 %v5079_v36  ;;  %3056 = vmatmul.mubr.bf16.gmra.mrb[124].mxu0 %v5080_v37  ;;  %v5101_v36 = vld [vmem:[%s6691_s0 + $0x478] ss:$56 sps:$4 sm:$0xff]   ;;  %v5109_v47 = vld [vmem:[%s6691_s0 + $0x4f4] ss:$56 sps:$4 sm:$0xff]  }
 0x11b   :  { %2902 = vmatprep.mubr.bf16.mxu1 %v5081_v44  ;;  %3063 = vmatprep.mubr.bf16.mxu0 %v5083_v45  ;;  %v5102_v37 = vld [vmem:[%s6691_s0 + $0x480] ss:$56 sps:$4 sm:$0xff]  }
 0x11d   :  { %v4039_v50 = vpop.f32.mrb[20].mxu0  ;;  %v4087_v51 = vpop.f32.mrb[20].mxu1 }
 0x11e   :  { %v4040_v54 = vpop.f32.mrb[21].mxu0  ;;  %v4088_v55 = vpop.f32.mrb[21].mxu1 }
 0x11f   :  { %v6033_v58 = vadd.f32 %v4040_v54, %v4039_v50  ;;  %v6035_v59 = vadd.f32 %v4088_v55, %v4087_v51  ;;  %v4042_v62 = vpop.f32.mrb[22].mxu0  ;;  %v4090_v63 = vpop.f32.mrb[22].mxu1 }
 0x120   :  { %v4043_v2 = vpop.f32.mrb[23].mxu0  ;;  %v4091_v3 = vpop.f32.mrb[23].mxu1 }
 0x121   :  { %v6043_v6 = vadd.f32 %v4043_v2, %v4042_v62  ;;  %v6045_v7 = vadd.f32 %v4091_v3, %v4090_v63 }
 0x122   :  { %2903 = vmatmul.mubr.bf16.gmra.mrb[128].mxu1 %v5085_v56  ;;  %3064 = vmatmul.mubr.bf16.gmra.mrb[128].mxu0 %v5086_v57 }
 0x123   :  { %2910 = vmatprep.mubr.bf16.mxu1 %v5091_v0  ;;  %3071 = vmatprep.mubr.bf16.mxu0 %v5093_v1  ;;  %v5111_v0 = vld [vmem:[%s6691_s0 + $0x4e8] ss:$56 sps:$4 sm:$0xff]  }
 0x124   :  { %v5112_v1 = vld [vmem:[%s6691_s0 + $0x4f0] ss:$56 sps:$4 sm:$0xff]  }
 0x125   :  { %v4045_v8 = vpop.f32.mrb[24].mxu0  ;;  %v4093_v9 = vpop.f32.mrb[24].mxu1 }
 0x126   :  { %v4046_v10 = vpop.f32.mrb[25].mxu0  ;;  %v4094_v11 = vpop.f32.mrb[25].mxu1 }
 0x127   :  { %v6053_v16 = vadd.f32 %v4046_v10, %v4045_v8  ;;  %v6055_v17 = vadd.f32 %v4094_v11, %v4093_v9  ;;  %v4048_v18 = vpop.f32.mrb[26].mxu0  ;;  %v4096_v19 = vpop.f32.mrb[26].mxu1  ;;  %v5113_v10 = vld [vmem:[%s6691_s0 + $0x55c] ss:$56 sps:$4 sm:$0xff]  }
 0x128   :  { %v4049_v24 = vpop.f32.mrb[27].mxu0  ;;  %v4097_v25 = vpop.f32.mrb[27].mxu1  ;;  %v5115_v11 = vld [vmem:[%s6691_s0 + $0x564] ss:$56 sps:$4 sm:$0xff]  }
 0x129   :  { %v6063_v26 = vadd.f32 %v4049_v24, %v4048_v18  ;;  %v6065_v27 = vadd.f32 %v4097_v25, %v4096_v19 }
 0x12a   :  { %2911 = vmatmul.mubr.bf16.gmra.mrb[132].mxu1 %v5095_v14  ;;  %3072 = vmatmul.mubr.bf16.gmra.mrb[132].mxu0 %v5096_v15 }
 0x12b   :  { %2918 = vmatprep.mubr.bf16.mxu1 %v5097_v22  ;;  %3079 = vmatprep.mubr.bf16.mxu0 %v5099_v23 }
 0x12d   :  { %v4051_v32 = vpop.f32.mrb[28].mxu0  ;;  %v4099_v33 = vpop.f32.mrb[28].mxu1 }
 0x12e   :  { %v4052_v34 = vpop.f32.mrb[29].mxu0  ;;  %v4100_v35 = vpop.f32.mrb[29].mxu1 }
 0x12f   :  { %v6073_v42 = vadd.f32 %v4052_v34, %v4051_v32  ;;  %v6075_v43 = vadd.f32 %v4100_v35, %v4099_v33  ;;  %v4054_v44 = vpop.f32.mrb[30].mxu0  ;;  %v4102_v45 = vpop.f32.mrb[30].mxu1 }
 0x130   :  { %v4055_v50 = vpop.f32.mrb[31].mxu0  ;;  %v4103_v51 = vpop.f32.mrb[31].mxu1 }
 0x131   :  { %v6083_v54 = vadd.f32 %v4055_v50, %v4054_v44  ;;  %v6085_v55 = vadd.f32 %v4103_v51, %v4102_v45 }
 0x132   :  { %2919 = vmatmul.mubr.bf16.gmra.mrb[136].mxu1 %v5101_v36  ;;  %3080 = vmatmul.mubr.bf16.gmra.mrb[136].mxu0 %v5102_v37  ;;  %v5118_v36 = vld [vmem:[%s6691_s0 + $0x560] ss:$56 sps:$4 sm:$0xff]  }
 0x133   :  { %2926 = vmatprep.mubr.bf16.mxu1 %v5107_v46  ;;  %3087 = vmatprep.mubr.bf16.mxu0 %v5109_v47  ;;  %v5123_v46 = vld [vmem:[%s6691_s0 + $0x5cc] ss:$56 sps:$4 sm:$0xff]  }
 0x134   :  { %v5125_v47 = vld [vmem:[%s6691_s0 + $0x5d4] ss:$56 sps:$4 sm:$0xff]  }
 0x135   :  { %v4121_v56 = vpop.f32.mrb[32].mxu1  ;;  %v4233_v57 = vpop.f32.mrb[32].mxu0 }
 0x136   :  { %v4122_v62 = vpop.f32.mrb[33].mxu1  ;;  %v4234_v63 = vpop.f32.mrb[33].mxu0 }
 0x137   :  { %v4123_v2 = vadd.f32 %v4122_v62, %v4121_v56  ;;  %v4235_v3 = vadd.f32 %v4234_v63, %v4233_v57  ;;  %v4124_v8 = vpop.f32.mrb[34].mxu1  ;;  %v4236_v9 = vpop.f32.mrb[34].mxu0 }
 0x138   :  { %v4125_v14 = vpop.f32.mrb[35].mxu1  ;;  %v4237_v15 = vpop.f32.mrb[35].mxu0 }
 0x139   :  { %v2519_v18 = vadd.f32 %v4123_v2, %v5915_v30  ;;  %v4126_v19 = vadd.f32 %v4125_v14, %v4124_v8  ;;  %v4238_v22 = vadd.f32 %v4237_v15, %v4236_v9  ;;  %v5117_v30 = vld [vmem:[%s6691_s0 + $0x558] ss:$56 sps:$4 sm:$0xff]  }
 0x13a   :  { %2927 = vmatmul.mubr.bf16.gmra.mrb[140].mxu1 %v5111_v0  ;;  %3088 = vmatmul.mubr.bf16.gmra.mrb[140].mxu0 %v5112_v1 }
 0x13b   :  { %v6100_v23 = vadd.f32 %v4235_v3, %v2519_v18  ;;  %v2522_v24 = vadd.f32 %v4126_v19, %v5931_v40  ;;  %2934 = vmatprep.mubr.bf16.mxu1 %v5113_v10  ;;  %3095 = vmatprep.mubr.bf16.mxu0 %v5115_v11  ;;  %v5128_v10 = vld [vmem:[%s6691_s0 + $0x5d0] ss:$56 sps:$4 sm:$0xff]   ;;  %v5129_v18 = vld [vmem:[%s6691_s0 + $0x63c] ss:$56 sps:$4 sm:$0xff]  }
 0x13c   :  { %v5131_v19 = vld [vmem:[%s6691_s0 + $0x644] ss:$56 sps:$4 sm:$0xff]  }
 0x13d   :  { %v6103_v25 = vadd.f32 %v4238_v22, %v2522_v24  ;;  %v4127_v32 = vpop.f32.mrb[36].mxu1  ;;  %v4239_v33 = vpop.f32.mrb[36].mxu0 }
 0x13e   :  { %v4128_v34 = vpop.f32.mrb[37].mxu1  ;;  %v4240_v35 = vpop.f32.mrb[37].mxu0 }
 0x13f   :  { %v4129_v37 = vadd.f32 %v4128_v34, %v4127_v32  ;;  %v4241_v44 = vadd.f32 %v4240_v35, %v4239_v33  ;;  %v4130_v45 = vpop.f32.mrb[38].mxu1  ;;  %v4242_v40 = vpop.f32.mrb[38].mxu0 }
 0x140   :  { %v4131_v50 = vpop.f32.mrb[39].mxu1  ;;  %v4243_v51 = vpop.f32.mrb[39].mxu0 }
 0x141   :  { %v2527_v56 = vadd.f32 %v4129_v37, %v5953_v52  ;;  %v4132_v57 = vadd.f32 %v4131_v50, %v4130_v45  ;;  %v4244_v62 = vadd.f32 %v4243_v51, %v4242_v40  ;;  %v5127_v52 = vld [vmem:[%s6691_s0 + $0x5c8] ss:$56 sps:$4 sm:$0xff]  }
 0x142   :  { %2935 = vmatmul.mubr.bf16.gmra.mrb[144].mxu1 %v5117_v30  ;;  %3096 = vmatmul.mubr.bf16.gmra.mrb[144].mxu0 %v5118_v36 }
 0x143   :  { %v6118_v63 = vadd.f32 %v4241_v44, %v2527_v56  ;;  %v2530_v0 = vadd.f32 %v4132_v57, %v5963_v60  ;;  %2942 = vmatprep.mubr.bf16.mxu1 %v5123_v46  ;;  %3103 = vmatprep.mubr.bf16.mxu0 %v5125_v47  ;;  %v5134_v46 = vld [vmem:[%s6691_s0 + $0x640] ss:$56 sps:$4 sm:$0xff]   ;;  %v5139_v56 = vld [vmem:[%s6691_s0 + $0x6ac] ss:$56 sps:$4 sm:$0xff]  }
 0x144   :  { %v5141_v57 = vld [vmem:[%s6691_s0 + $0x6b4] ss:$56 sps:$4 sm:$0xff]  }
 0x145   :  { %v6121_v1 = vadd.f32 %v4244_v62, %v2530_v0  ;;  %v4133_v2 = vpop.f32.mrb[40].mxu1  ;;  %v4245_v3 = vpop.f32.mrb[40].mxu0 }
 0x146   :  { %v4134_v8 = vpop.f32.mrb[41].mxu1  ;;  %v4246_v9 = vpop.f32.mrb[41].mxu0 }
 0x147   :  { %v4135_v11 = vadd.f32 %v4134_v8, %v4133_v2  ;;  %v4247_v14 = vadd.f32 %v4246_v9, %v4245_v3  ;;  %v4136_v15 = vpop.f32.mrb[42].mxu1  ;;  %v4248_v60 = vpop.f32.mrb[42].mxu0 }
 0x148   :  { %v4137_v22 = vpop.f32.mrb[43].mxu1  ;;  %v4249_v24 = vpop.f32.mrb[43].mxu0 }
 0x149   :  { %v2535_v32 = vadd.f32 %v4135_v11, %v5973_v4  ;;  %v4138_v33 = vadd.f32 %v4137_v22, %v4136_v15  ;;  %v4250_v34 = vadd.f32 %v4249_v24, %v4248_v60  ;;  %v5133_v4 = vld [vmem:[%s6691_s0 + $0x638] ss:$56 sps:$4 sm:$0xff]  }
 0x14a   :  { %2943 = vmatmul.mubr.bf16.gmra.mrb[148].mxu1 %v5127_v52  ;;  %3104 = vmatmul.mubr.bf16.gmra.mrb[148].mxu0 %v5128_v10 }
 0x14b   :  { %v6136_v35 = vadd.f32 %v4247_v14, %v2535_v32  ;;  %v2538_v30 = vadd.f32 %v4138_v33, %v5983_v12  ;;  %2950 = vmatprep.mubr.bf16.mxu1 %v5129_v18  ;;  %3111 = vmatprep.mubr.bf16.mxu0 %v5131_v19  ;;  %v5144_v18 = vld [vmem:[%s6691_s0 + $0x6b0] ss:$56 sps:$4 sm:$0xff]   ;;  %v5147_v32 = vld [vmem:[%s6691_s0 + $0x2c] ss:$56 sps:$4 sm:$0xff]  }
 0x14c   :  { %v5150_v33 = vld [vmem:[%s6691_s0 + $0x34] ss:$56 sps:$4 sm:$0xff]  }
 0x14d   :  { %v6139_v36 = vadd.f32 %v4250_v34, %v2538_v30  ;;  %v4139_v37 = vpop.f32.mrb[44].mxu1  ;;  %v4251_v44 = vpop.f32.mrb[44].mxu0 }
 0x14e   :  { %v4140_v45 = vpop.f32.mrb[45].mxu1  ;;  %v4252_v40 = vpop.f32.mrb[45].mxu0 }
 0x14f   :  { %v4141_v47 = vadd.f32 %v4140_v45, %v4139_v37  ;;  %v4253_v50 = vadd.f32 %v4252_v40, %v4251_v44  ;;  %v4142_v51 = vpop.f32.mrb[46].mxu1  ;;  %v4254_v12 = vpop.f32.mrb[46].mxu0 }
 0x150   :  { %v4143_v62 = vpop.f32.mrb[47].mxu1  ;;  %v4255_v0 = vpop.f32.mrb[47].mxu0 }
 0x151   :  { %v2543_v2 = vadd.f32 %v4141_v47, %v5993_v20  ;;  %v4144_v3 = vadd.f32 %v4143_v62, %v4142_v51  ;;  %v4256_v8 = vadd.f32 %v4255_v0, %v4254_v12  ;;  %v5143_v20 = vld [vmem:[%s6691_s0 + $0x6a8] ss:$56 sps:$4 sm:$0xff]  }
 0x152   :  { %2951 = vmatmul.mubr.bf16.gmra.mrb[152].mxu1 %v5133_v4  ;;  %3112 = vmatmul.mubr.bf16.gmra.mrb[152].mxu0 %v5134_v46 }
 0x153   :  { %v6154_v9 = vadd.f32 %v4253_v50, %v2543_v2  ;;  %v2546_v52 = vadd.f32 %v4144_v3, %v6003_v28  ;;  %2958 = vmatprep.mubr.bf16.mxu1 %v5139_v56  ;;  %3119 = vmatprep.mubr.bf16.mxu0 %v5141_v57  ;;  %v5148_v56 = vld [vmem:[%s6691_s0 + $0x30] ss:$56 sps:$4 sm:$0xff]   ;;  %v5151_v2 = vld [vmem:[%s6691_s0 + $0x9c] ss:$56 sps:$4 sm:$0xff]  }
 0x154   :  { %v5153_v3 = vld [vmem:[%s6691_s0 + $0xa4] ss:$56 sps:$4 sm:$0xff]  }
 0x155   :  { %v6157_v10 = vadd.f32 %v4256_v8, %v2546_v52  ;;  %v4145_v11 = vpop.f32.mrb[48].mxu1  ;;  %v4257_v14 = vpop.f32.mrb[48].mxu0 }
 0x156   :  { %v4146_v15 = vpop.f32.mrb[49].mxu1  ;;  %v4258_v60 = vpop.f32.mrb[49].mxu0 }
 0x157   :  { %v4147_v19 = vadd.f32 %v4146_v15, %v4145_v11  ;;  %v4259_v22 = vadd.f32 %v4258_v60, %v4257_v14  ;;  %v4148_v24 = vpop.f32.mrb[50].mxu1  ;;  %v4260_v28 = vpop.f32.mrb[50].mxu0 }
 0x158   :  { %v4149_v34 = vpop.f32.mrb[51].mxu1  ;;  %v4261_v30 = vpop.f32.mrb[51].mxu0 }
 0x159   :  { %v2551_v37 = vadd.f32 %v4147_v19, %v6013_v38  ;;  %v4150_v44 = vadd.f32 %v4149_v34, %v4148_v24  ;;  %v4262_v45 = vadd.f32 %v4261_v30, %v4260_v28  ;;  %v5145_v38 = vld [vmem:[%s6691_s0 + $0x28] ss:$56 sps:$4 sm:$0xff]  }
 0x15a   :  { %2959 = vmatmul.mubr.bf16.gmra.mrb[156].mxu1 %v5143_v20  ;;  %3120 = vmatmul.mubr.bf16.gmra.mrb[156].mxu0 %v5144_v18 }
 0x15b   :  { %v6172_v40 = vadd.f32 %v4259_v22, %v2551_v37  ;;  %v2554_v4 = vadd.f32 %v4150_v44, %v6023_v48  ;;  %3160 = vmatprep.mubr.bf16.mxu1 %v5147_v32  ;;  %3321 = vmatprep.mubr.bf16.mxu0 %v5150_v33  ;;  %v5156_v32 = vld [vmem:[%s6691_s0 + $0xa0] ss:$56 sps:$4 sm:$0xff]   ;;  %v5157_v37 = vld [vmem:[%s6691_s0 + $0x10c] ss:$56 sps:$4 sm:$0xff]  }
 0x15c   :  { %v5159_v44 = vld [vmem:[%s6691_s0 + $0x114] ss:$56 sps:$4 sm:$0xff]  }
 0x15d   :  { %v6175_v46 = vadd.f32 %v4262_v45, %v2554_v4  ;;  %v4151_v47 = vpop.f32.mrb[52].mxu1  ;;  %v4263_v50 = vpop.f32.mrb[52].mxu0 }
 0x15e   :  { %v4152_v51 = vpop.f32.mrb[53].mxu1  ;;  %v4264_v12 = vpop.f32.mrb[53].mxu0 }
 0x15f   :  { %v4153_v57 = vadd.f32 %v4152_v51, %v4151_v47  ;;  %v4265_v62 = vadd.f32 %v4264_v12, %v4263_v50  ;;  %v4154_v0 = vpop.f32.mrb[54].mxu1  ;;  %v4266_v48 = vpop.f32.mrb[54].mxu0 }
 0x160   :  { %v4155_v8 = vpop.f32.mrb[55].mxu1  ;;  %v4267_v52 = vpop.f32.mrb[55].mxu0 }
 0x161   :  { %v2559_v11 = vadd.f32 %v4153_v57, %v6033_v58  ;;  %v4156_v14 = vadd.f32 %v4155_v8, %v4154_v0  ;;  %v4268_v15 = vadd.f32 %v4267_v52, %v4266_v48  ;;  %v5155_v58 = vld [vmem:[%s6691_s0 + $0x98] ss:$56 sps:$4 sm:$0xff]  }
 0x162   :  { %3161 = vmatmul.mubr.bf16.vlgmr.msra.gmra.mrb[160].mxu1 %v5145_v38  ;;  %3322 = vmatmul.mubr.bf16.vlgmr.msra.gmra.mrb[160].mxu0 %v5148_v56 }
 0x163   :  { %v6190_v60 = vadd.f32 %v4265_v62, %v2559_v11  ;;  %v2562_v20 = vadd.f32 %v4156_v14, %v6043_v6  ;;  %3168 = vmatprep.mubr.bf16.mxu1 %v5151_v2  ;;  %3329 = vmatprep.mubr.bf16.mxu0 %v5153_v3  ;;  %v5162_v2 = vld [vmem:[%s6691_s0 + $0x110] ss:$56 sps:$4 sm:$0xff]   ;;  %v5163_v11 = vld [vmem:[%s6691_s0 + $0x17c] ss:$56 sps:$4 sm:$0xff]  }
 0x164   :  { %v5165_v14 = vld [vmem:[%s6691_s0 + $0x184] ss:$56 sps:$4 sm:$0xff]  }
 0x165   :  { %v6193_v18 = vadd.f32 %v4268_v15, %v2562_v20  ;;  %v4157_v19 = vpop.f32.mrb[56].mxu1  ;;  %v4269_v22 = vpop.f32.mrb[56].mxu0 }
 0x166   :  { %v4158_v24 = vpop.f32.mrb[57].mxu1  ;;  %v4270_v28 = vpop.f32.mrb[57].mxu0 }
 0x167   :  { %v4159_v33 = vadd.f32 %v4158_v24, %v4157_v19  ;;  %v4271_v34 = vadd.f32 %v4270_v28, %v4269_v22  ;;  %v4160_v30 = vpop.f32.mrb[58].mxu1  ;;  %v4272_v6 = vpop.f32.mrb[58].mxu0 }
 0x168   :  { %v4161_v45 = vpop.f32.mrb[59].mxu1  ;;  %v4273_v4 = vpop.f32.mrb[59].mxu0 }
 0x169   :  { %v2567_v47 = vadd.f32 %v4159_v33, %v6053_v16  ;;  %v4162_v50 = vadd.f32 %v4161_v45, %v4160_v30  ;;  %v4274_v51 = vadd.f32 %v4273_v4, %v4272_v6  ;;  %v5161_v16 = vld [vmem:[%s6691_s0 + $0x108] ss:$56 sps:$4 sm:$0xff]  }
 0x16a   :  { %3169 = vmatmul.mubr.bf16.gmra.mrb[164].mxu1 %v5155_v58  ;;  %3330 = vmatmul.mubr.bf16.gmra.mrb[164].mxu0 %v5156_v32 }
 0x16b   :  { %v6208_v12 = vadd.f32 %v4271_v34, %v2567_v47  ;;  %v2570_v38 = vadd.f32 %v4162_v50, %v6063_v26  ;;  %3176 = vmatprep.mubr.bf16.mxu1 %v5157_v37  ;;  %3337 = vmatprep.mubr.bf16.mxu0 %v5159_v44  ;;  %v5168_v37 = vld [vmem:[%s6691_s0 + $0x180] ss:$56 sps:$4 sm:$0xff]   ;;  %v5169_v47 = vld [vmem:[%s6691_s0 + $0x1ec] ss:$56 sps:$4 sm:$0xff]  }
 0x16c   :  { %v5171_v50 = vld [vmem:[%s6691_s0 + $0x1f4] ss:$56 sps:$4 sm:$0xff]  }
 0x16d   :  { %v6211_v56 = vadd.f32 %v4274_v51, %v2570_v38  ;;  %v4163_v57 = vpop.f32.mrb[60].mxu1  ;;  %v4275_v62 = vpop.f32.mrb[60].mxu0 }
 0x16e   :  { %v4164_v0 = vpop.f32.mrb[61].mxu1  ;;  %v4276_v48 = vpop.f32.mrb[61].mxu0 }
 0x16f   :  { %v4165_v3 = vadd.f32 %v4164_v0, %v4163_v57  ;;  %v4277_v8 = vadd.f32 %v4276_v48, %v4275_v62  ;;  %v4166_v52 = vpop.f32.mrb[62].mxu1  ;;  %v4278_v26 = vpop.f32.mrb[62].mxu0 }
 0x170   :  { %v4167_v15 = vpop.f32.mrb[63].mxu1  ;;  %v4279_v20 = vpop.f32.mrb[63].mxu0 }
 0x171   :  { %v2575_v19 = vadd.f32 %v4165_v3, %v6073_v42  ;;  %v4168_v22 = vadd.f32 %v4167_v15, %v4166_v52  ;;  %v4280_v24 = vadd.f32 %v4279_v20, %v4278_v26  ;;  %v5167_v42 = vld [vmem:[%s6691_s0 + $0x178] ss:$56 sps:$4 sm:$0xff]  }
 0x172   :  { %3177 = vmatmul.mubr.bf16.gmra.mrb[168].mxu1 %v5161_v16  ;;  %3338 = vmatmul.mubr.bf16.gmra.mrb[168].mxu0 %v5162_v2 }
 0x173   :  { %v6226_v28 = vadd.f32 %v4277_v8, %v2575_v19  ;;  %v2578_v58 = vadd.f32 %v4168_v22, %v6083_v54  ;;  %3184 = vmatprep.mubr.bf16.mxu1 %v5163_v11  ;;  %3345 = vmatprep.mubr.bf16.mxu0 %v5165_v14  ;;  %v5174_v11 = vld [vmem:[%s6691_s0 + $0x1f0] ss:$56 sps:$4 sm:$0xff]   ;;  %v5175_v19 = vld [vmem:[%s6691_s0 + $0x25c] ss:$56 sps:$4 sm:$0xff]  }
 0x174   :  { %v5177_v22 = vld [vmem:[%s6691_s0 + $0x264] ss:$56 sps:$4 sm:$0xff]  }
 0x175   :  { %v6229_v32 = vadd.f32 %v4280_v24, %v2578_v58  ;;  %v4169_v33 = vpop.f32.mrb[64].mxu1  ;;  %v4281_v34 = vpop.f32.mrb[64].mxu0 }
 0x176   :  { %v4170_v30 = vpop.f32.mrb[65].mxu1  ;;  %v4282_v6 = vpop.f32.mrb[65].mxu0 }
 0x177   :  { %v4171_v44 = vadd.f32 %v4170_v30, %v4169_v33  ;;  %v4283_v45 = vadd.f32 %v4282_v6, %v4281_v34  ;;  %v4172_v4 = vpop.f32.mrb[66].mxu1  ;;  %v4284_v54 = vpop.f32.mrb[66].mxu0 }
 0x178   :  { %v4173_v51 = vpop.f32.mrb[67].mxu1  ;;  %v4285_v38 = vpop.f32.mrb[67].mxu0 }
 0x179   :  { %v2583_v57 = vadd.f32 %v4171_v44, %v5917_v31  ;;  %v4174_v62 = vadd.f32 %v4173_v51, %v4172_v4  ;;  %v4286_v0 = vadd.f32 %v4285_v38, %v4284_v54  ;;  %v5173_v31 = vld [vmem:[%s6691_s0 + $0x1e8] ss:$56 sps:$4 sm:$0xff]  }
 0x17a   :  { %3185 = vmatmul.mubr.bf16.gmra.mrb[172].mxu1 %v5167_v42  ;;  %3346 = vmatmul.mubr.bf16.gmra.mrb[172].mxu0 %v5168_v37 }
 0x17b   :  { %v6244_v48 = vadd.f32 %v4283_v45, %v2583_v57  ;;  %v2586_v16 = vadd.f32 %v4174_v62, %v5933_v41  ;;  %3192 = vmatprep.mubr.bf16.mxu1 %v5169_v47  ;;  %3353 = vmatprep.mubr.bf16.mxu0 %v5171_v50  ;;  %v5180_v47 = vld [vmem:[%s6691_s0 + $0x260] ss:$56 sps:$4 sm:$0xff]   ;;  %v5181_v57 = vld [vmem:[%s6691_s0 + $0x2cc] ss:$56 sps:$4 sm:$0xff]  }
 0x17c   :  { %v5183_v62 = vld [vmem:[%s6691_s0 + $0x2d4] ss:$56 sps:$4 sm:$0xff]  }
 0x17d   :  { %v6247_v2 = vadd.f32 %v4286_v0, %v2586_v16  ;;  %v4175_v3 = vpop.f32.mrb[68].mxu1  ;;  %v4287_v8 = vpop.f32.mrb[68].mxu0 }
 0x17e   :  { %v4176_v52 = vpop.f32.mrb[69].mxu1  ;;  %v4288_v26 = vpop.f32.mrb[69].mxu0 }
 0x17f   :  { %v4177_v14 = vadd.f32 %v4176_v52, %v4175_v3  ;;  %v4289_v15 = vadd.f32 %v4288_v26, %v4287_v8  ;;  %v4178_v20 = vpop.f32.mrb[70].mxu1  ;;  %v4290_v41 = vpop.f32.mrb[70].mxu0 }
 0x180   :  { %v4179_v24 = vpop.f32.mrb[71].mxu1  ;;  %v4291_v58 = vpop.f32.mrb[71].mxu0 }
 0x181   :  { %v2591_v33 = vadd.f32 %v4177_v14, %v5955_v53  ;;  %v4180_v34 = vadd.f32 %v4179_v24, %v4178_v20  ;;  %v4292_v30 = vadd.f32 %v4291_v58, %v4290_v41  ;;  %v5179_v53 = vld [vmem:[%s6691_s0 + $0x258] ss:$56 sps:$4 sm:$0xff]  }
 0x182   :  { %3193 = vmatmul.mubr.bf16.gmra.mrb[176].mxu1 %v5173_v31  ;;  %3354 = vmatmul.mubr.bf16.gmra.mrb[176].mxu0 %v5174_v11 }
 0x183   :  { %v6262_v6 = vadd.f32 %v4289_v15, %v2591_v33  ;;  %v2594_v42 = vadd.f32 %v4180_v34, %v5965_v61  ;;  %3200 = vmatprep.mubr.bf16.mxu1 %v5175_v19  ;;  %3361 = vmatprep.mubr.bf16.mxu0 %v5177_v22  ;;  %v5186_v19 = vld [vmem:[%s6691_s0 + $0x2d0] ss:$56 sps:$4 sm:$0xff]   ;;  %v5187_v33 = vld [vmem:[%s6691_s0 + $0x33c] ss:$56 sps:$4 sm:$0xff]  }
 0x184   :  { %v5189_v34 = vld [vmem:[%s6691_s0 + $0x344] ss:$56 sps:$4 sm:$0xff]  }
 0x185   :  { %v6265_v37 = vadd.f32 %v4292_v30, %v2594_v42  ;;  %v4181_v44 = vpop.f32.mrb[72].mxu1  ;;  %v4293_v45 = vpop.f32.mrb[72].mxu0 }
 0x186   :  { %v4182_v4 = vpop.f32.mrb[73].mxu1  ;;  %v4294_v54 = vpop.f32.mrb[73].mxu0 }
 0x187   :  { %v4183_v50 = vadd.f32 %v4182_v4, %v4181_v44  ;;  %v4295_v51 = vadd.f32 %v4294_v54, %v4293_v45  ;;  %v4184_v38 = vpop.f32.mrb[74].mxu1  ;;  %v4296_v61 = vpop.f32.mrb[74].mxu0 }
 0x188   :  { %v4185_v0 = vpop.f32.mrb[75].mxu1  ;;  %v4297_v16 = vpop.f32.mrb[75].mxu0 }
 0x189   :  { %v2599_v3 = vadd.f32 %v4183_v50, %v5975_v5  ;;  %v4186_v8 = vadd.f32 %v4185_v0, %v4184_v38  ;;  %v4298_v52 = vadd.f32 %v4297_v16, %v4296_v61  ;;  %v5185_v5 = vld [vmem:[%s6691_s0 + $0x2c8] ss:$56 sps:$4 sm:$0xff]  }
 0x18a   :  { %3201 = vmatmul.mubr.bf16.gmra.mrb[180].mxu1 %v5179_v53  ;;  %3362 = vmatmul.mubr.bf16.gmra.mrb[180].mxu0 %v5180_v47 }
 0x18b   :  { %v6280_v26 = vadd.f32 %v4295_v51, %v2599_v3  ;;  %v2602_v31 = vadd.f32 %v4186_v8, %v5985_v13  ;;  %3208 = vmatprep.mubr.bf16.mxu1 %v5181_v57  ;;  %3369 = vmatprep.mubr.bf16.mxu0 %v5183_v62  ;;  %v5192_v57 = vld [vmem:[%s6691_s0 + $0x340] ss:$56 sps:$4 sm:$0xff]   ;;  %v5193_v3 = vld [vmem:[%s6691_s0 + $0x3ac] ss:$56 sps:$4 sm:$0xff]  }
 0x18c   :  { %v5195_v8 = vld [vmem:[%s6691_s0 + $0x3b4] ss:$56 sps:$4 sm:$0xff]  }
 0x18d   :  { %v6283_v11 = vadd.f32 %v4298_v52, %v2602_v31  ;;  %v4187_v14 = vpop.f32.mrb[76].mxu1  ;;  %v4299_v15 = vpop.f32.mrb[76].mxu0 }
 0x18e   :  { %v4188_v20 = vpop.f32.mrb[77].mxu1  ;;  %v4300_v41 = vpop.f32.mrb[77].mxu0 }
 0x18f   :  { %v4189_v22 = vadd.f32 %v4188_v20, %v4187_v14  ;;  %v4301_v24 = vadd.f32 %v4300_v41, %v4299_v15  ;;  %v4190_v58 = vpop.f32.mrb[78].mxu1  ;;  %v4302_v13 = vpop.f32.mrb[78].mxu0 }
 0x190   :  { %v4191_v30 = vpop.f32.mrb[79].mxu1  ;;  %v4303_v42 = vpop.f32.mrb[79].mxu0 }
 0x191   :  { %v2607_v44 = vadd.f32 %v4189_v22, %v5995_v21  ;;  %v4192_v45 = vadd.f32 %v4191_v30, %v4190_v58  ;;  %v4304_v4 = vadd.f32 %v4303_v42, %v4302_v13  ;;  %v5191_v21 = vld [vmem:[%s6691_s0 + $0x338] ss:$56 sps:$4 sm:$0xff]  }
 0x192   :  { %3209 = vmatmul.mubr.bf16.gmra.mrb[184].mxu1 %v5185_v5  ;;  %3370 = vmatmul.mubr.bf16.gmra.mrb[184].mxu0 %v5186_v19 }
 0x193   :  { %v6298_v54 = vadd.f32 %v4301_v24, %v2607_v44  ;;  %v2610_v53 = vadd.f32 %v4192_v45, %v6005_v29  ;;  %3216 = vmatprep.mubr.bf16.mxu1 %v5187_v33  ;;  %3377 = vmatprep.mubr.bf16.mxu0 %v5189_v34  ;;  %v5198_v33 = vld [vmem:[%s6691_s0 + $0x3b0] ss:$56 sps:$4 sm:$0xff]   ;;  %v5199_v44 = vld [vmem:[%s6691_s0 + $0x41c] ss:$56 sps:$4 sm:$0xff]  }
 0x194   :  { %v5201_v45 = vld [vmem:[%s6691_s0 + $0x424] ss:$56 sps:$4 sm:$0xff]  }
 0x195   :  { %v6301_v47 = vadd.f32 %v4304_v4, %v2610_v53  ;;  %v4193_v50 = vpop.f32.mrb[80].mxu1  ;;  %v4305_v51 = vpop.f32.mrb[80].mxu0 }
 0x196   :  { %v4194_v38 = vpop.f32.mrb[81].mxu1  ;;  %v4306_v61 = vpop.f32.mrb[81].mxu0 }
 0x197   :  { %v4195_v62 = vadd.f32 %v4194_v38, %v4193_v50  ;;  %v4307_v0 = vadd.f32 %v4306_v61, %v4305_v51  ;;  %v4196_v16 = vpop.f32.mrb[82].mxu1  ;;  %v4308_v29 = vpop.f32.mrb[82].mxu0 }
 0x198   :  { %v4197_v52 = vpop.f32.mrb[83].mxu1  ;;  %v4309_v31 = vpop.f32.mrb[83].mxu0 }
 0x199   :  { %v2615_v14 = vadd.f32 %v4195_v62, %v6015_v39  ;;  %v4198_v15 = vadd.f32 %v4197_v52, %v4196_v16  ;;  %v4310_v20 = vadd.f32 %v4309_v31, %v4308_v29  ;;  %v5197_v39 = vld [vmem:[%s6691_s0 + $0x3a8] ss:$56 sps:$4 sm:$0xff]  }
 0x19a   :  { %3217 = vmatmul.mubr.bf16.gmra.mrb[188].mxu1 %v5191_v21  ;;  %3378 = vmatmul.mubr.bf16.gmra.mrb[188].mxu0 %v5192_v57 }
 0x19b   :  { %v6316_v41 = vadd.f32 %v4307_v0, %v2615_v14  ;;  %v2618_v5 = vadd.f32 %v4198_v15, %v6025_v49  ;;  %3224 = vmatprep.mubr.bf16.mxu1 %v5193_v3  ;;  %3385 = vmatprep.mubr.bf16.mxu0 %v5195_v8  ;;  %v5204_v3 = vld [vmem:[%s6691_s0 + $0x420] ss:$56 sps:$4 sm:$0xff]   ;;  %v5205_v14 = vld [vmem:[%s6691_s0 + $0x48c] ss:$56 sps:$4 sm:$0xff]  }
 0x19c   :  { %v5207_v15 = vld [vmem:[%s6691_s0 + $0x494] ss:$56 sps:$4 sm:$0xff]  }
 0x19d   :  { %v6319_v19 = vadd.f32 %v4310_v20, %v2618_v5  ;;  %v4199_v22 = vpop.f32.mrb[84].mxu1  ;;  %v4311_v24 = vpop.f32.mrb[84].mxu0 }
 0x19e   :  { %v4200_v58 = vpop.f32.mrb[85].mxu1  ;;  %v4312_v13 = vpop.f32.mrb[85].mxu0 }
 0x19f   :  { %v4201_v34 = vadd.f32 %v4200_v58, %v4199_v22  ;;  %v4313_v30 = vadd.f32 %v4312_v13, %v4311_v24  ;;  %v4202_v42 = vpop.f32.mrb[86].mxu1  ;;  %v4314_v49 = vpop.f32.mrb[86].mxu0 }
 0x1a0   :  { %v4203_v4 = vpop.f32.mrb[87].mxu1  ;;  %v4315_v53 = vpop.f32.mrb[87].mxu0 }
 0x1a1   :  { %v2623_v50 = vadd.f32 %v4201_v34, %v6035_v59  ;;  %v4204_v51 = vadd.f32 %v4203_v4, %v4202_v42  ;;  %v4316_v38 = vadd.f32 %v4315_v53, %v4314_v49  ;;  %v5203_v59 = vld [vmem:[%s6691_s0 + $0x418] ss:$56 sps:$4 sm:$0xff]  }
 0x1a2   :  { %3225 = vmatmul.mubr.bf16.gmra.mrb[192].mxu1 %v5197_v39  ;;  %3386 = vmatmul.mubr.bf16.gmra.mrb[192].mxu0 %v5198_v33 }
 0x1a3   :  { %v6334_v61 = vadd.f32 %v4313_v30, %v2623_v50  ;;  %v2626_v21 = vadd.f32 %v4204_v51, %v6045_v7  ;;  %3232 = vmatprep.mubr.bf16.mxu1 %v5199_v44  ;;  %3393 = vmatprep.mubr.bf16.mxu0 %v5201_v45  ;;  %v5210_v44 = vld [vmem:[%s6691_s0 + $0x490] ss:$56 sps:$4 sm:$0xff]   ;;  %v5211_v50 = vld [vmem:[%s6691_s0 + $0x4fc] ss:$56 sps:$4 sm:$0xff]  }
 0x1a4   :  { %v5213_v51 = vld [vmem:[%s6691_s0 + $0x504] ss:$56 sps:$4 sm:$0xff]  }
 0x1a5   :  { %v6337_v57 = vadd.f32 %v4316_v38, %v2626_v21  ;;  %v4205_v62 = vpop.f32.mrb[88].mxu1  ;;  %v4317_v0 = vpop.f32.mrb[88].mxu0 }
 0x1a6   :  { %v4206_v16 = vpop.f32.mrb[89].mxu1  ;;  %v4318_v29 = vpop.f32.mrb[89].mxu0 }
 0x1a7   :  { %v4207_v8 = vadd.f32 %v4206_v16, %v4205_v62  ;;  %v4319_v52 = vadd.f32 %v4318_v29, %v4317_v0  ;;  %v4208_v31 = vpop.f32.mrb[90].mxu1  ;;  %v4320_v7 = vpop.f32.mrb[90].mxu0 }
 0x1a8   :  { %v4209_v20 = vpop.f32.mrb[91].mxu1  ;;  %v4321_v5 = vpop.f32.mrb[91].mxu0 }
 0x1a9   :  { %v2631_v22 = vadd.f32 %v4207_v8, %v6055_v17  ;;  %v4210_v24 = vadd.f32 %v4209_v20, %v4208_v31  ;;  %v4322_v58 = vadd.f32 %v4321_v5, %v4320_v7  ;;  %v5209_v17 = vld [vmem:[%s6691_s0 + $0x488] ss:$56 sps:$4 sm:$0xff]  }
 0x1aa   :  { %3233 = vmatmul.mubr.bf16.gmra.mrb[196].mxu1 %v5203_v59  ;;  %3394 = vmatmul.mubr.bf16.gmra.mrb[196].mxu0 %v5204_v3 }
 0x1ab   :  { %v6352_v13 = vadd.f32 %v4319_v52, %v2631_v22  ;;  %v2634_v39 = vadd.f32 %v4210_v24, %v6065_v27  ;;  %3240 = vmatprep.mubr.bf16.mxu1 %v5205_v14  ;;  %3401 = vmatprep.mubr.bf16.mxu0 %v5207_v15  ;;  %v5216_v14 = vld [vmem:[%s6691_s0 + $0x500] ss:$56 sps:$4 sm:$0xff]   ;;  %v5217_v22 = vld [vmem:[%s6691_s0 + $0x56c] ss:$56 sps:$4 sm:$0xff]  }
 0x1ac   :  { %v5219_v24 = vld [vmem:[%s6691_s0 + $0x574] ss:$56 sps:$4 sm:$0xff]  }
 0x1ad   :  { %v6355_v33 = vadd.f32 %v4322_v58, %v2634_v39  ;;  %v4211_v34 = vpop.f32.mrb[92].mxu1  ;;  %v4323_v30 = vpop.f32.mrb[92].mxu0 }
 0x1ae   :  { %v4212_v42 = vpop.f32.mrb[93].mxu1  ;;  %v4324_v49 = vpop.f32.mrb[93].mxu0 }
 0x1af   :  { %v4213_v45 = vadd.f32 %v4212_v42, %v4211_v34  ;;  %v4325_v4 = vadd.f32 %v4324_v49, %v4323_v30  ;;  %v4214_v53 = vpop.f32.mrb[94].mxu1  ;;  %v4326_v27 = vpop.f32.mrb[94].mxu0 }
 0x1b0   :  { %v4215_v38 = vpop.f32.mrb[95].mxu1  ;;  %v4327_v21 = vpop.f32.mrb[95].mxu0 }
 0x1b1   :  { %v2639_v62 = vadd.f32 %v4213_v45, %v6075_v43  ;;  %v4216_v0 = vadd.f32 %v4215_v38, %v4214_v53  ;;  %v4328_v16 = vadd.f32 %v4327_v21, %v4326_v27  ;;  %v5215_v43 = vld [vmem:[%s6691_s0 + $0x4f8] ss:$56 sps:$4 sm:$0xff]  }
 0x1b2   :  { %3241 = vmatmul.mubr.bf16.gmra.mrb[200].mxu1 %v5209_v17  ;;  %3402 = vmatmul.mubr.bf16.gmra.mrb[200].mxu0 %v5210_v44 }
 0x1b3   :  { %v6370_v29 = vadd.f32 %v4325_v4, %v2639_v62  ;;  %v2642_v59 = vadd.f32 %v4216_v0, %v6085_v55  ;;  %3248 = vmatprep.mubr.bf16.mxu1 %v5211_v50  ;;  %3409 = vmatprep.mubr.bf16.mxu0 %v5213_v51  ;;  %v5222_v50 = vld [vmem:[%s6691_s0 + $0x570] ss:$56 sps:$4 sm:$0xff]   ;;  %v5223_v62 = vld [vmem:[%s6691_s0 + $0x5dc] ss:$56 sps:$4 sm:$0xff]  }
 0x1b4   :  { %v5225_v0 = vld [vmem:[%s6691_s0 + $0x5e4] ss:$56 sps:$4 sm:$0xff]  }
 0x1b5   :  { %v6373_v3 = vadd.f32 %v4328_v16, %v2642_v59  ;;  %v4345_v8 = vpop.f32.mrb[96].mxu1  ;;  %v4457_v52 = vpop.f32.mrb[96].mxu0 }
 0x1b6   :  { %v4346_v31 = vpop.f32.mrb[97].mxu1  ;;  %v4458_v7 = vpop.f32.mrb[97].mxu0 }
 0x1b7   :  { %v4347_v15 = vadd.f32 %v4346_v31, %v4345_v8  ;;  %v4459_v20 = vadd.f32 %v4458_v7, %v4457_v52  ;;  %v4348_v5 = vpop.f32.mrb[98].mxu1  ;;  %v4460_v55 = vpop.f32.mrb[98].mxu0 }
 0x1b8   :  { %v4349_v58 = vpop.f32.mrb[99].mxu1  ;;  %v4461_v39 = vpop.f32.mrb[99].mxu0 }
 0x1b9   :  { %v2841_v34 = vadd.f32 %v4347_v15, %v6100_v23  ;;  %v4350_v30 = vadd.f32 %v4349_v58, %v4348_v5  ;;  %v4462_v42 = vadd.f32 %v4461_v39, %v4460_v55  ;;  %v5221_v23 = vld [vmem:[%s6691_s0 + $0x568] ss:$56 sps:$4 sm:$0xff]  }
 0x1ba   :  { %3249 = vmatmul.mubr.bf16.gmra.mrb[204].mxu1 %v5215_v43  ;;  %3410 = vmatmul.mubr.bf16.gmra.mrb[204].mxu0 %v5216_v14 }
 0x1bb   :  { %v6388_v49 = vadd.f32 %v4459_v20, %v2841_v34  ;;  %v2844_v17 = vadd.f32 %v4350_v30, %v6103_v25  ;;  %3256 = vmatprep.mubr.bf16.mxu1 %v5217_v22  ;;  %3417 = vmatprep.mubr.bf16.mxu0 %v5219_v24  ;;  %v5228_v22 = vld [vmem:[%s6691_s0 + $0x5e0] ss:$56 sps:$4 sm:$0xff]   ;;  %v5229_v34 = vld [vmem:[%s6691_s0 + $0x64c] ss:$56 sps:$4 sm:$0xff]  }
 0x1bc   :  { %v5231_v30 = vld [vmem:[%s6691_s0 + $0x654] ss:$56 sps:$4 sm:$0xff]  }
 0x1bd   :  { %v6391_v44 = vadd.f32 %v4462_v42, %v2844_v17  ;;  %v4351_v45 = vpop.f32.mrb[100].mxu1  ;;  %v4463_v4 = vpop.f32.mrb[100].mxu0 }
 0x1be   :  { %v4352_v53 = vpop.f32.mrb[101].mxu1  ;;  %v4464_v27 = vpop.f32.mrb[101].mxu0 }
 0x1bf   :  { %v4353_v51 = vadd.f32 %v4352_v53, %v4351_v45  ;;  %v4465_v38 = vadd.f32 %v4464_v27, %v4463_v4  ;;  %v4354_v21 = vpop.f32.mrb[102].mxu1  ;;  %v4466_v25 = vpop.f32.mrb[102].mxu0 }
 0x1c0   :  { %v4355_v16 = vpop.f32.mrb[103].mxu1  ;;  %v4467_v59 = vpop.f32.mrb[103].mxu0 }
 0x1c1   :  { %v2849_v8 = vadd.f32 %v4353_v51, %v6118_v63  ;;  %v4356_v52 = vadd.f32 %v4355_v16, %v4354_v21  ;;  %v4468_v31 = vadd.f32 %v4467_v59, %v4466_v25  ;;  %v5227_v63 = vld [vmem:[%s6691_s0 + $0x5d8] ss:$56 sps:$4 sm:$0xff]  }
 0x1c2   :  { %3257 = vmatmul.mubr.bf16.gmra.mrb[208].mxu1 %v5221_v23  ;;  %3418 = vmatmul.mubr.bf16.gmra.mrb[208].mxu0 %v5222_v50 }
 0x1c3   :  { %v6406_v7 = vadd.f32 %v4465_v38, %v2849_v8  ;;  %v2852_v43 = vadd.f32 %v4356_v52, %v6121_v1  ;;  %3264 = vmatprep.mubr.bf16.mxu1 %v5223_v62  ;;  %3425 = vmatprep.mubr.bf16.mxu0 %v5225_v0  ;;  %v5234_v62 = vld [vmem:[%s6691_s0 + $0x650] ss:$56 sps:$4 sm:$0xff]   ;;  %v5235_v8 = vld [vmem:[%s6691_s0 + $0x6bc] ss:$56 sps:$4 sm:$0xff]  }
 0x1c4   :  { %v5237_v52 = vld [vmem:[%s6691_s0 + $0x6c4] ss:$56 sps:$4 sm:$0xff]  }
 0x1c5   :  { %v6409_v14 = vadd.f32 %v4468_v31, %v2852_v43  ;;  %v4357_v15 = vpop.f32.mrb[104].mxu1  ;;  %v4469_v20 = vpop.f32.mrb[104].mxu0 }
 0x1c6   :  { %v4358_v5 = vpop.f32.mrb[105].mxu1  ;;  %v4470_v55 = vpop.f32.mrb[105].mxu0 }
 0x1c7   :  { %v4359_v24 = vadd.f32 %v4358_v5, %v4357_v15  ;;  %v4471_v58 = vadd.f32 %v4470_v55, %v4469_v20  ;;  %v4360_v39 = vpop.f32.mrb[106].mxu1  ;;  %v4472_v1 = vpop.f32.mrb[106].mxu0 }
 0x1c8   :  { %v4361_v42 = vpop.f32.mrb[107].mxu1  ;;  %v4473_v17 = vpop.f32.mrb[107].mxu0 }
 0x1c9   :  { %v2857_v45 = vadd.f32 %v4359_v24, %v6136_v35  ;;  %v4362_v4 = vadd.f32 %v4361_v42, %v4360_v39  ;;  %v4474_v53 = vadd.f32 %v4473_v17, %v4472_v1  ;;  %v5233_v35 = vld [vmem:[%s6691_s0 + $0x648] ss:$56 sps:$4 sm:$0xff]  }
 0x1ca   :  { %3265 = vmatmul.mubr.bf16.gmra.mrb[212].mxu1 %v5227_v63  ;;  %3426 = vmatmul.mubr.bf16.gmra.mrb[212].mxu0 %v5228_v22 }
 0x1cb   :  { %v6424_v27 = vadd.f32 %v4471_v58, %v2857_v45  ;;  %v2860_v23 = vadd.f32 %v4362_v4, %v6139_v36  ;;  %3272 = vmatprep.mubr.bf16.mxu1 %v5229_v34  ;;  %3433 = vmatprep.mubr.bf16.mxu0 %v5231_v30  ;;  %v5240_v34 = vld [vmem:[%s6691_s0 + $0x6c0] ss:$56 sps:$4 sm:$0xff]  }
 0x1cd   :  { %v6427_v50 = vadd.f32 %v4474_v53, %v2860_v23  ;;  %v4363_v51 = vpop.f32.mrb[108].mxu1  ;;  %v4475_v38 = vpop.f32.mrb[108].mxu0 }
 0x1ce   :  { %v4364_v21 = vpop.f32.mrb[109].mxu1  ;;  %v4476_v25 = vpop.f32.mrb[109].mxu0 }
 0x1cf   :  { %v4365_v0 = vadd.f32 %v4364_v21, %v4363_v51  ;;  %v4477_v16 = vadd.f32 %v4476_v25, %v4475_v38  ;;  %v4366_v59 = vpop.f32.mrb[110].mxu1  ;;  %v4478_v36 = vpop.f32.mrb[110].mxu0 }
 0x1d0   :  { %v4367_v31 = vpop.f32.mrb[111].mxu1  ;;  %v4479_v43 = vpop.f32.mrb[111].mxu0 }
 0x1d1   :  { %v2865_v15 = vadd.f32 %v4365_v0, %v6154_v9  ;;  %v4368_v20 = vadd.f32 %v4367_v31, %v4366_v59  ;;  %v4480_v5 = vadd.f32 %v4479_v43, %v4478_v36  ;;  %v5239_v9 = vld [vmem:[%s6691_s0 + $0x6b8] ss:$56 sps:$4 sm:$0xff]  }
 0x1d2   :  { %3273 = vmatmul.mubr.bf16.gmra.mrb[216].mxu1 %v5233_v35  ;;  %3434 = vmatmul.mubr.bf16.gmra.mrb[216].mxu0 %v5234_v62 }
 0x1d3   :  { %v6442_v55 = vadd.f32 %v4477_v16, %v2865_v15  ;;  %v2868_v63 = vadd.f32 %v4368_v20, %v6157_v10  ;;  %3280 = vmatprep.mubr.bf16.mxu1 %v5235_v8  ;;  %3441 = vmatprep.mubr.bf16.mxu0 %v5237_v52 }
 0x1d5   :  { %v6445_v22 = vadd.f32 %v4480_v5, %v2868_v63  ;;  %v4369_v24 = vpop.f32.mrb[112].mxu1  ;;  %v4481_v58 = vpop.f32.mrb[112].mxu0 }
 0x1d6   :  { %v4370_v39 = vpop.f32.mrb[113].mxu1  ;;  %v4482_v1 = vpop.f32.mrb[113].mxu0 }
 0x1d7   :  { %v4371_v30 = vadd.f32 %v4370_v39, %v4369_v24  ;;  %v4483_v42 = vadd.f32 %v4482_v1, %v4481_v58  ;;  %v4372_v17 = vpop.f32.mrb[114].mxu1  ;;  %v4484_v10 = vpop.f32.mrb[114].mxu0 }
 0x1d8   :  { %v4373_v45 = vpop.f32.mrb[115].mxu1  ;;  %v4485_v4 = vpop.f32.mrb[115].mxu0 }
 0x1d9   :  { %v2873_v53 = vadd.f32 %v4371_v30, %v6172_v40  ;;  %v4374_v23 = vadd.f32 %v4373_v45, %v4372_v17  ;;  %v4486_v51 = vadd.f32 %v4485_v4, %v4484_v10 }
 0x1da   :  { %3281 = vmatmul.mubr.bf16.gmra.mrb[220].mxu1 %v5239_v9  ;;  %3442 = vmatmul.mubr.bf16.gmra.mrb[220].mxu0 %v5240_v34 }
 0x1db   :  { %v6454_v38 = vadd.f32 %v4483_v42, %v2873_v53  ;;  %v2876_v21 = vadd.f32 %v4374_v23, %v6175_v46 }
 0x1dd   :  { %v6457_v25 = vadd.f32 %v4486_v51, %v2876_v21  ;;  %v4375_v35 = vpop.f32.mrb[116].mxu1  ;;  %v4487_v62 = vpop.f32.mrb[116].mxu0 }
 0x1de   :  { %v4376_v0 = vpop.f32.mrb[117].mxu1  ;;  %v4488_v16 = vpop.f32.mrb[117].mxu0 }
 0x1df   :  { %v4377_v59 = vadd.f32 %v4376_v0, %v4375_v35  ;;  %v4489_v36 = vadd.f32 %v4488_v16, %v4487_v62  ;;  %v4378_v8 = vpop.f32.mrb[118].mxu1  ;;  %v4490_v52 = vpop.f32.mrb[118].mxu0 }
 0x1e0   :  { %v4379_v31 = vpop.f32.mrb[119].mxu1  ;;  %v4491_v40 = vpop.f32.mrb[119].mxu0 }
 0x1e1   :  { %v2881_v43 = vadd.f32 %v4377_v59, %v6190_v60  ;;  %v4380_v15 = vadd.f32 %v4379_v31, %v4378_v8  ;;  %v4492_v20 = vadd.f32 %v4491_v40, %v4490_v52 }
 0x1e3   :  { %v6460_v5 = vadd.f32 %v4489_v36, %v2881_v43  ;;  %v2884_v46 = vadd.f32 %v4380_v15, %v6193_v18 }
 0x1e5   :  { %v6463_v63 = vadd.f32 %v4492_v20, %v2884_v46  ;;  %v4381_v24 = vpop.f32.mrb[120].mxu1  ;;  %v4493_v58 = vpop.f32.mrb[120].mxu0 }
 0x1e6   :  { %v4382_v39 = vpop.f32.mrb[121].mxu1  ;;  %v4494_v1 = vpop.f32.mrb[121].mxu0 }
 0x1e7   :  { %v4383_v9 = vadd.f32 %v4382_v39, %v4381_v24  ;;  %v4495_v34 = vadd.f32 %v4494_v1, %v4493_v58  ;;  %v4384_v30 = vpop.f32.mrb[122].mxu1  ;;  %v4496_v42 = vpop.f32.mrb[122].mxu0 }
 0x1e8   :  { %v4385_v17 = vpop.f32.mrb[123].mxu1  ;;  %v4497_v10 = vpop.f32.mrb[123].mxu0 }
 0x1e9   :  { %v2889_v60 = vadd.f32 %v4383_v9, %v6208_v12  ;;  %v4386_v45 = vadd.f32 %v4385_v17, %v4384_v30  ;;  %v4498_v4 = vadd.f32 %v4497_v10, %v4496_v42 }
 0x1eb   :  { %v6466_v53 = vadd.f32 %v4495_v34, %v2889_v60  ;;  %v2892_v18 = vadd.f32 %v4386_v45, %v6211_v56 }
 0x1ed   :  { %v6469_v23 = vadd.f32 %v4498_v4, %v2892_v18  ;;  %v4387_v51 = vpop.f32.mrb[124].mxu1  ;;  %v4499_v21 = vpop.f32.mrb[124].mxu0 }
 0x1ee   :  { %v4388_v35 = vpop.f32.mrb[125].mxu1  ;;  %v4500_v62 = vpop.f32.mrb[125].mxu0 }
 0x1ef   :  { %v4389_v0 = vadd.f32 %v4388_v35, %v4387_v51  ;;  %v4501_v16 = vadd.f32 %v4500_v62, %v4499_v21  ;;  %v4390_v59 = vpop.f32.mrb[126].mxu1  ;;  %v4502_v36 = vpop.f32.mrb[126].mxu0 }
 0x1f0   :  { %v4391_v8 = vpop.f32.mrb[127].mxu1  ;;  %v4503_v52 = vpop.f32.mrb[127].mxu0 }
 0x1f1   :  { %v2897_v12 = vadd.f32 %v4389_v0, %v6226_v28  ;;  %v4392_v31 = vadd.f32 %v4391_v8, %v4390_v59  ;;  %v4504_v40 = vadd.f32 %v4503_v52, %v4502_v36 }
 0x1f3   :  { %v6472_v43 = vadd.f32 %v4501_v16, %v2897_v12  ;;  %v2900_v56 = vadd.f32 %v4392_v31, %v6229_v32 }
 0x1f5   :  { %v6475_v15 = vadd.f32 %v4504_v40, %v2900_v56  ;;  %v4393_v20 = vpop.f32.mrb[128].mxu1  ;;  %v4505_v46 = vpop.f32.mrb[128].mxu0 }
 0x1f6   :  { %v4394_v24 = vpop.f32.mrb[129].mxu1  ;;  %v4506_v58 = vpop.f32.mrb[129].mxu0 }
 0x1f7   :  { %v4395_v39 = vadd.f32 %v4394_v24, %v4393_v20  ;;  %v4507_v1 = vadd.f32 %v4506_v58, %v4505_v46  ;;  %v4396_v9 = vpop.f32.mrb[130].mxu1  ;;  %v4508_v34 = vpop.f32.mrb[130].mxu0 }
 0x1f8   :  { %v4397_v30 = vpop.f32.mrb[131].mxu1  ;;  %v4509_v42 = vpop.f32.mrb[131].mxu0 }
 0x1f9   :  { %v2905_v28 = vadd.f32 %v4395_v39, %v6244_v48  ;;  %v4398_v17 = vadd.f32 %v4397_v30, %v4396_v9  ;;  %v4510_v10 = vadd.f32 %v4509_v42, %v4508_v34 }
 0x1fb   :  { %v6478_v60 = vadd.f32 %v4507_v1, %v2905_v28  ;;  %v2908_v32 = vadd.f32 %v4398_v17, %v6247_v2 }
 0x1fd   :  { %v6481_v45 = vadd.f32 %v4510_v10, %v2908_v32  ;;  %v4399_v4 = vpop.f32.mrb[132].mxu1  ;;  %v4511_v18 = vpop.f32.mrb[132].mxu0 }
 0x1fe   :  { %v4400_v51 = vpop.f32.mrb[133].mxu1  ;;  %v4512_v21 = vpop.f32.mrb[133].mxu0 }
 0x1ff   :  { %v4401_v35 = vadd.f32 %v4400_v51, %v4399_v4  ;;  %v4513_v62 = vadd.f32 %v4512_v21, %v4511_v18  ;;  %v4402_v0 = vpop.f32.mrb[134].mxu1  ;;  %v4514_v16 = vpop.f32.mrb[134].mxu0 }
 0x200   :  { %v4403_v59 = vpop.f32.mrb[135].mxu1  ;;  %v4515_v36 = vpop.f32.mrb[135].mxu0 }
 0x201   :  { %v2913_v48 = vadd.f32 %v4401_v35, %v6262_v6  ;;  %v4404_v8 = vadd.f32 %v4403_v59, %v4402_v0  ;;  %v4516_v52 = vadd.f32 %v4515_v36, %v4514_v16 }
 0x203   :  { %v6484_v12 = vadd.f32 %v4513_v62, %v2913_v48  ;;  %v2916_v2 = vadd.f32 %v4404_v8, %v6265_v37 }
 0x205   :  { %v6487_v31 = vadd.f32 %v4516_v52, %v2916_v2  ;;  %v4405_v40 = vpop.f32.mrb[136].mxu1  ;;  %v4517_v56 = vpop.f32.mrb[136].mxu0 }
 0x206   :  { %v4406_v20 = vpop.f32.mrb[137].mxu1  ;;  %v4518_v46 = vpop.f32.mrb[137].mxu0 }
 0x207   :  { %v4407_v24 = vadd.f32 %v4406_v20, %v4405_v40  ;;  %v4519_v58 = vadd.f32 %v4518_v46, %v4517_v56  ;;  %v4408_v39 = vpop.f32.mrb[138].mxu1  ;;  %v4520_v1 = vpop.f32.mrb[138].mxu0 }
 0x208   :  { %v4409_v9 = vpop.f32.mrb[139].mxu1  ;;  %v4521_v34 = vpop.f32.mrb[139].mxu0 }
 0x209   :  { %v2921_v6 = vadd.f32 %v4407_v24, %v6280_v26  ;;  %v4410_v30 = vadd.f32 %v4409_v9, %v4408_v39  ;;  %v4522_v42 = vadd.f32 %v4521_v34, %v4520_v1 }
 0x20b   :  { %v6490_v28 = vadd.f32 %v4519_v58, %v2921_v6  ;;  %v2924_v37 = vadd.f32 %v4410_v30, %v6283_v11 }
 0x20d   :  { %v6493_v17 = vadd.f32 %v4522_v42, %v2924_v37  ;;  %v4411_v10 = vpop.f32.mrb[140].mxu1  ;;  %v4523_v32 = vpop.f32.mrb[140].mxu0 }
 0x20e   :  { %v4412_v4 = vpop.f32.mrb[141].mxu1  ;;  %v4524_v18 = vpop.f32.mrb[141].mxu0 }
 0x20f   :  { %v4413_v51 = vadd.f32 %v4412_v4, %v4411_v10  ;;  %v4525_v21 = vadd.f32 %v4524_v18, %v4523_v32  ;;  %v4414_v35 = vpop.f32.mrb[142].mxu1  ;;  %v4526_v62 = vpop.f32.mrb[142].mxu0 }
 0x210   :  { %v4415_v0 = vpop.f32.mrb[143].mxu1  ;;  %v4527_v16 = vpop.f32.mrb[143].mxu0 }
 0x211   :  { %v2929_v26 = vadd.f32 %v4413_v51, %v6298_v54  ;;  %v4416_v59 = vadd.f32 %v4415_v0, %v4414_v35  ;;  %v4528_v36 = vadd.f32 %v4527_v16, %v4526_v62 }
 0x213   :  { %v6496_v48 = vadd.f32 %v4525_v21, %v2929_v26  ;;  %v2932_v11 = vadd.f32 %v4416_v59, %v6301_v47 }
 0x215   :  { %v6499_v8 = vadd.f32 %v4528_v36, %v2932_v11  ;;  %v4417_v52 = vpop.f32.mrb[144].mxu1  ;;  %v4529_v2 = vpop.f32.mrb[144].mxu0 }
 0x216   :  { %v4418_v40 = vpop.f32.mrb[145].mxu1  ;;  %v4530_v56 = vpop.f32.mrb[145].mxu0 }
 0x217   :  { %v4419_v20 = vadd.f32 %v4418_v40, %v4417_v52  ;;  %v4531_v46 = vadd.f32 %v4530_v56, %v4529_v2  ;;  %v4420_v24 = vpop.f32.mrb[146].mxu1  ;;  %v4532_v58 = vpop.f32.mrb[146].mxu0 }
 0x218   :  { %v4421_v39 = vpop.f32.mrb[147].mxu1  ;;  %v4533_v1 = vpop.f32.mrb[147].mxu0 }
 0x219   :  { %v2937_v54 = vadd.f32 %v4419_v20, %v6316_v41  ;;  %v4422_v9 = vadd.f32 %v4421_v39, %v4420_v24  ;;  %v4534_v34 = vadd.f32 %v4533_v1, %v4532_v58 }
 0x21b   :  { %v6502_v6 = vadd.f32 %v4531_v46, %v2937_v54  ;;  %v2940_v47 = vadd.f32 %v4422_v9, %v6319_v19 }
 0x21d   :  { %v6505_v30 = vadd.f32 %v4534_v34, %v2940_v47  ;;  %v4423_v42 = vpop.f32.mrb[148].mxu1  ;;  %v4535_v37 = vpop.f32.mrb[148].mxu0 }
 0x21e   :  { %v4424_v10 = vpop.f32.mrb[149].mxu1  ;;  %v4536_v32 = vpop.f32.mrb[149].mxu0 }
 0x21f   :  { %v4425_v4 = vadd.f32 %v4424_v10, %v4423_v42  ;;  %v4537_v18 = vadd.f32 %v4536_v32, %v4535_v37  ;;  %v4426_v51 = vpop.f32.mrb[150].mxu1  ;;  %v4538_v21 = vpop.f32.mrb[150].mxu0 }
 0x220   :  { %v4427_v35 = vpop.f32.mrb[151].mxu1  ;;  %v4539_v62 = vpop.f32.mrb[151].mxu0 }
 0x221   :  { %v2945_v41 = vadd.f32 %v4425_v4, %v6334_v61  ;;  %v4428_v0 = vadd.f32 %v4427_v35, %v4426_v51  ;;  %v4540_v16 = vadd.f32 %v4539_v62, %v4538_v21 }
 0x223   :  { %v6508_v26 = vadd.f32 %v4537_v18, %v2945_v41  ;;  %v2948_v19 = vadd.f32 %v4428_v0, %v6337_v57 }
 0x225   :  { %v6511_v59 = vadd.f32 %v4540_v16, %v2948_v19  ;;  %v4429_v36 = vpop.f32.mrb[152].mxu1  ;;  %v4541_v11 = vpop.f32.mrb[152].mxu0 }
 0x226   :  { %v4430_v52 = vpop.f32.mrb[153].mxu1  ;;  %v4542_v2 = vpop.f32.mrb[153].mxu0 }
 0x227   :  { %v4431_v40 = vadd.f32 %v4430_v52, %v4429_v36  ;;  %v4543_v56 = vadd.f32 %v4542_v2, %v4541_v11  ;;  %v4432_v20 = vpop.f32.mrb[154].mxu1  ;;  %v4544_v46 = vpop.f32.mrb[154].mxu0 }
 0x228   :  { %v4433_v24 = vpop.f32.mrb[155].mxu1  ;;  %v4545_v58 = vpop.f32.mrb[155].mxu0 }
 0x229   :  { %v2953_v61 = vadd.f32 %v4431_v40, %v6352_v13  ;;  %v4434_v39 = vadd.f32 %v4433_v24, %v4432_v20  ;;  %v4546_v1 = vadd.f32 %v4545_v58, %v4544_v46 }
 0x22b   :  { %v6514_v54 = vadd.f32 %v4543_v56, %v2953_v61  ;;  %v2956_v57 = vadd.f32 %v4434_v39, %v6355_v33 }
 0x22d   :  { %v6517_v9 = vadd.f32 %v4546_v1, %v2956_v57  ;;  %v4435_v34 = vpop.f32.mrb[156].mxu1  ;;  %v4547_v47 = vpop.f32.mrb[156].mxu0 }
 0x22e   :  { %v4436_v42 = vpop.f32.mrb[157].mxu1  ;;  %v4548_v37 = vpop.f32.mrb[157].mxu0 }
 0x22f   :  { %v4437_v10 = vadd.f32 %v4436_v42, %v4435_v34  ;;  %v4549_v32 = vadd.f32 %v4548_v37, %v4547_v47  ;;  %v4438_v4 = vpop.f32.mrb[158].mxu1  ;;  %v4550_v18 = vpop.f32.mrb[158].mxu0 }
 0x230   :  { %v4439_v51 = vpop.f32.mrb[159].mxu1  ;;  %v4551_v21 = vpop.f32.mrb[159].mxu0 }
 0x231   :  { %v2961_v13 = vadd.f32 %v4437_v10, %v6370_v29  ;;  %v4440_v35 = vadd.f32 %v4439_v51, %v4438_v4  ;;  %v4552_v62 = vadd.f32 %v4551_v21, %v4550_v18 }
 0x233   :  { %v6520_v41 = vadd.f32 %v4549_v32, %v2961_v13  ;;  %v2964_v33 = vadd.f32 %v4440_v35, %v6373_v3  ;;  %v6529_v3 = vld [vmem:[%s6692_s2] ss:$0 sm:$0xff] }
 0x235   :  { %v6523_v0 = vadd.f32 %v4552_v62, %v2964_v33  ;;  %v4569_v16 = vpop.f32.mrb[160].mxu1  ;;  %v4681_v19 = vpop.f32.mrb[160].mxu0 }
 0x236   :  { %v4570_v36 = vpop.f32.mrb[161].mxu1  ;;  %v4682_v11 = vpop.f32.mrb[161].mxu0 }
 0x237   :  { %v4571_v52 = vadd.f32 %v4570_v36, %v4569_v16  ;;  %v4683_v2 = vadd.f32 %v4682_v11, %v4681_v19  ;;  %v4572_v40 = vpop.f32.mrb[162].mxu1  ;;  %v4684_v56 = vpop.f32.mrb[162].mxu0 }
 0x238   :  { %v4573_v20 = vpop.f32.mrb[163].mxu1  ;;  %v4685_v46 = vpop.f32.mrb[163].mxu0 }
 0x239   :  { %v3163_v29 = vadd.f32 %v4571_v52, %v6388_v49  ;;  %v4574_v24 = vadd.f32 %v4573_v20, %v4572_v40  ;;  %v4686_v58 = vadd.f32 %v4685_v46, %v4684_v56 }
 0x23b   :  { %v3324_v61 = vadd.f32 %v4683_v2, %v3163_v29  ;;  %v3166_v39 = vadd.f32 %v4574_v24, %v6391_v44 }
 0x23d   :  { %v3556_v1 = vadd.f32 %v6529_v3, %v3324_v61  ;;  %v3327_v57 = vadd.f32 %v4686_v58, %v3166_v39  ;;  %v4575_v34 = vpop.f32.mrb[164].mxu1  ;;  %v4687_v47 = vpop.f32.mrb[164].mxu0 }
 0x23e   :  { %v4576_v42 = vpop.f32.mrb[165].mxu1  ;;  %v4688_v37 = vpop.f32.mrb[165].mxu0 }
 0x23f   :  { %v3588_v10 = vmax.f32 %v3556_v1, 0.0  ;;  %v3557_v49 = vadd.f32 %v6529_v3, %v3327_v57  ;;  %v4577_v32 = vadd.f32 %v4576_v42, %v4575_v34  ;;  %v4689_v4 = vadd.f32 %v4688_v37, %v4687_v47  ;;  %v4578_v18 = vpop.f32.mrb[166].mxu1  ;;  %v4690_v51 = vpop.f32.mrb[166].mxu0 }
 0x240   :  { %v4579_v21 = vpop.f32.mrb[167].mxu1  ;;  %v4691_v13 = vpop.f32.mrb[167].mxu0 }
 0x241   :  { %3620 = vst [vmem:[%s6693_s3] sm:$0xff] %v3588_v10  ;;  %v3589_v44 = vmax.f32 %v3557_v49, 0.0  ;;  %v3171_v35 = vadd.f32 %v4577_v32, %v6406_v7  ;;  %v4580_v62 = vadd.f32 %v4579_v21, %v4578_v18  ;;  %v4692_v33 = vadd.f32 %v4691_v13, %v4690_v51 }
 0x243   :  { %3621 = vst [vmem:[%s6693_s3 + $0x8] sm:$0xff] %v3589_v44  ;;  %v3332_v16 = vadd.f32 %v4689_v4, %v3171_v35  ;;  %v3174_v19 = vadd.f32 %v4580_v62, %v6409_v14 }
 0x245   :  { %v3558_v36 = vadd.f32 %v6529_v3, %v3332_v16  ;;  %v3335_v11 = vadd.f32 %v4692_v33, %v3174_v19  ;;  %v4581_v52 = vpop.f32.mrb[168].mxu1  ;;  %v4693_v2 = vpop.f32.mrb[168].mxu0 }
 0x246   :  { %v4582_v40 = vpop.f32.mrb[169].mxu1  ;;  %v4694_v56 = vpop.f32.mrb[169].mxu0 }
 0x247   :  { %v3590_v20 = vmax.f32 %v3558_v36, 0.0  ;;  %v3559_v46 = vadd.f32 %v6529_v3, %v3335_v11  ;;  %v4583_v7 = vadd.f32 %v4582_v40, %v4581_v52  ;;  %v4695_v29 = vadd.f32 %v4694_v56, %v4693_v2  ;;  %v4584_v24 = vpop.f32.mrb[170].mxu1  ;;  %v4696_v58 = vpop.f32.mrb[170].mxu0 }
 0x248   :  { %v4585_v61 = vpop.f32.mrb[171].mxu1  ;;  %v4697_v39 = vpop.f32.mrb[171].mxu0 }
 0x249   :  { %3622 = vst [vmem:[%s6693_s3 + $0x10] sm:$0xff] %v3590_v20  ;;  %v3591_v14 = vmax.f32 %v3559_v46, 0.0  ;;  %v3179_v1 = vadd.f32 %v4583_v7, %v6424_v27  ;;  %v4586_v57 = vadd.f32 %v4585_v61, %v4584_v24  ;;  %v4698_v34 = vadd.f32 %v4697_v39, %v4696_v58 }
 0x24b   :  { %3623 = vst [vmem:[%s6693_s3 + $0x18] sm:$0xff] %v3591_v14  ;;  %v3340_v47 = vadd.f32 %v4695_v29, %v3179_v1  ;;  %v3182_v42 = vadd.f32 %v4586_v57, %v6427_v50 }
 0x24d   :  { %v3560_v37 = vadd.f32 %v6529_v3, %v3340_v47  ;;  %v3343_v10 = vadd.f32 %v4698_v34, %v3182_v42  ;;  %v4587_v49 = vpop.f32.mrb[172].mxu1  ;;  %v4699_v32 = vpop.f32.mrb[172].mxu0 }
 0x24e   :  { %v4588_v4 = vpop.f32.mrb[173].mxu1  ;;  %v4700_v18 = vpop.f32.mrb[173].mxu0 }
 0x24f   :  { %v3592_v51 = vmax.f32 %v3560_v37, 0.0  ;;  %v3561_v21 = vadd.f32 %v6529_v3, %v3343_v10  ;;  %v4589_v27 = vadd.f32 %v4588_v4, %v4587_v49  ;;  %v4701_v13 = vadd.f32 %v4700_v18, %v4699_v32  ;;  %v4590_v44 = vpop.f32.mrb[174].mxu1  ;;  %v4702_v35 = vpop.f32.mrb[174].mxu0 }
 0x250   :  { %v4591_v62 = vpop.f32.mrb[175].mxu1  ;;  %v4703_v33 = vpop.f32.mrb[175].mxu0 }
 0x251   :  { %3624 = vst [vmem:[%s6693_s3 + $0x20] sm:$0xff] %v3592_v51  ;;  %v3593_v50 = vmax.f32 %v3561_v21, 0.0  ;;  %v3187_v16 = vadd.f32 %v4589_v27, %v6442_v55  ;;  %v4592_v19 = vadd.f32 %v4591_v62, %v4590_v44  ;;  %v4704_v36 = vadd.f32 %v4703_v33, %v4702_v35 }
 0x253   :  { %3625 = vst [vmem:[%s6693_s3 + $0x28] sm:$0xff] %v3593_v50  ;;  %v3348_v11 = vadd.f32 %v4701_v13, %v3187_v16  ;;  %v3190_v52 = vadd.f32 %v4592_v19, %v6445_v22 }
 0x255   :  { %v3562_v2 = vadd.f32 %v6529_v3, %v3348_v11  ;;  %v3351_v40 = vadd.f32 %v4704_v36, %v3190_v52  ;;  %v4593_v56 = vpop.f32.mrb[176].mxu1  ;;  %v4705_v20 = vpop.f32.mrb[176].mxu0 }
 0x256   :  { %v4594_v46 = vpop.f32.mrb[177].mxu1  ;;  %v4706_v7 = vpop.f32.mrb[177].mxu0 }
 0x257   :  { %v3594_v29 = vmax.f32 %v3562_v2, 0.0  ;;  %v3563_v24 = vadd.f32 %v6529_v3, %v3351_v40  ;;  %v4595_v55 = vadd.f32 %v4594_v46, %v4593_v56  ;;  %v4707_v58 = vadd.f32 %v4706_v7, %v4705_v20  ;;  %v4596_v61 = vpop.f32.mrb[178].mxu1  ;;  %v4708_v39 = vpop.f32.mrb[178].mxu0 }
 0x258   :  { %v4597_v14 = vpop.f32.mrb[179].mxu1  ;;  %v4709_v1 = vpop.f32.mrb[179].mxu0 }
 0x259   :  { %3626 = vst [vmem:[%s6693_s3 + $0x30] sm:$0xff] %v3594_v29  ;;  %v3595_v22 = vmax.f32 %v3563_v24, 0.0  ;;  %v3195_v57 = vadd.f32 %v4595_v55, %v6454_v38  ;;  %v4598_v34 = vadd.f32 %v4597_v14, %v4596_v61  ;;  %v4710_v47 = vadd.f32 %v4709_v1, %v4708_v39 }
 0x25b   :  { %3627 = vst [vmem:[%s6693_s3 + $0x38] sm:$0xff] %v3595_v22  ;;  %v3356_v42 = vadd.f32 %v4707_v58, %v3195_v57  ;;  %v3198_v37 = vadd.f32 %v4598_v34, %v6457_v25 }
 0x25d   :  { %v3564_v10 = vadd.f32 %v6529_v3, %v3356_v42  ;;  %v3359_v49 = vadd.f32 %v4710_v47, %v3198_v37  ;;  %v4599_v32 = vpop.f32.mrb[180].mxu1  ;;  %v4711_v4 = vpop.f32.mrb[180].mxu0 }
 0x25e   :  { %v4600_v18 = vpop.f32.mrb[181].mxu1  ;;  %v4712_v51 = vpop.f32.mrb[181].mxu0 }
 0x25f   :  { %v3596_v21 = vmax.f32 %v3564_v10, 0.0  ;;  %v3565_v27 = vadd.f32 %v6529_v3, %v3359_v49  ;;  %v4601_v38 = vadd.f32 %v4600_v18, %v4599_v32  ;;  %v4713_v13 = vadd.f32 %v4712_v51, %v4711_v4  ;;  %v4602_v44 = vpop.f32.mrb[182].mxu1  ;;  %v4714_v35 = vpop.f32.mrb[182].mxu0 }
 0x260   :  { %v4603_v62 = vpop.f32.mrb[183].mxu1  ;;  %v4715_v33 = vpop.f32.mrb[183].mxu0 }
 0x261   :  { %3628 = vst [vmem:[%s6693_s3 + $0x40] sm:$0xff] %v3596_v21  ;;  %v3597_v25 = vmax.f32 %v3565_v27, 0.0  ;;  %v3203_v50 = vadd.f32 %v4601_v38, %v6460_v5  ;;  %v4604_v16 = vadd.f32 %v4603_v62, %v4602_v44  ;;  %v4716_v19 = vadd.f32 %v4715_v33, %v4714_v35 }
 0x263   :  { %3629 = vst [vmem:[%s6693_s3 + $0x48] sm:$0xff] %v3597_v25  ;;  %v3364_v36 = vadd.f32 %v4713_v13, %v3203_v50  ;;  %v3206_v11 = vadd.f32 %v4604_v16, %v6463_v63 }
 0x265   :  { %v3566_v52 = vadd.f32 %v6529_v3, %v3364_v36  ;;  %v3367_v2 = vadd.f32 %v4716_v19, %v3206_v11  ;;  %v4605_v40 = vpop.f32.mrb[184].mxu1  ;;  %v4717_v56 = vpop.f32.mrb[184].mxu0 }
 0x266   :  { %v4606_v20 = vpop.f32.mrb[185].mxu1  ;;  %v4718_v46 = vpop.f32.mrb[185].mxu0 }
 0x267   :  { %v3598_v7 = vmax.f32 %v3566_v52, 0.0  ;;  %v3567_v29 = vadd.f32 %v6529_v3, %v3367_v2  ;;  %v4607_v5 = vadd.f32 %v4606_v20, %v4605_v40  ;;  %v4719_v24 = vadd.f32 %v4718_v46, %v4717_v56  ;;  %v4608_v55 = vpop.f32.mrb[186].mxu1  ;;  %v4720_v58 = vpop.f32.mrb[186].mxu0 }
 0x268   :  { %v4609_v61 = vpop.f32.mrb[187].mxu1  ;;  %v4721_v39 = vpop.f32.mrb[187].mxu0 }
 0x269   :  { %3630 = vst [vmem:[%s6693_s3 + $0x50] sm:$0xff] %v3598_v7  ;;  %v3599_v63 = vmax.f32 %v3567_v29, 0.0  ;;  %v3211_v14 = vadd.f32 %v4607_v5, %v6466_v53  ;;  %v4610_v1 = vadd.f32 %v4609_v61, %v4608_v55  ;;  %v4722_v22 = vadd.f32 %v4721_v39, %v4720_v58 }
 0x26b   :  { %3631 = vst [vmem:[%s6693_s3 + $0x58] sm:$0xff] %v3599_v63  ;;  %v3372_v57 = vadd.f32 %v4719_v24, %v3211_v14  ;;  %v3214_v34 = vadd.f32 %v4610_v1, %v6469_v23 }
 0x26d   :  { %v3568_v47 = vadd.f32 %v6529_v3, %v3372_v57  ;;  %v3375_v42 = vadd.f32 %v4722_v22, %v3214_v34  ;;  %v4611_v37 = vpop.f32.mrb[188].mxu1  ;;  %v4723_v10 = vpop.f32.mrb[188].mxu0 }
 0x26e   :  { %v4612_v49 = vpop.f32.mrb[189].mxu1  ;;  %v4724_v32 = vpop.f32.mrb[189].mxu0 }
 0x26f   :  { %v3600_v4 = vmax.f32 %v3568_v47, 0.0  ;;  %v3569_v18 = vadd.f32 %v6529_v3, %v3375_v42  ;;  %v4613_v53 = vadd.f32 %v4612_v49, %v4611_v37  ;;  %v4725_v51 = vadd.f32 %v4724_v32, %v4723_v10  ;;  %v4614_v21 = vpop.f32.mrb[190].mxu1  ;;  %v4726_v27 = vpop.f32.mrb[190].mxu0 }
 0x270   :  { %v4615_v38 = vpop.f32.mrb[191].mxu1  ;;  %v4727_v13 = vpop.f32.mrb[191].mxu0 }
 0x271   :  { %3632 = vst [vmem:[%s6693_s3 + $0x60] sm:$0xff] %v3600_v4  ;;  %v3601_v23 = vmax.f32 %v3569_v18, 0.0  ;;  %v3219_v44 = vadd.f32 %v4613_v53, %v6472_v43  ;;  %v4616_v35 = vadd.f32 %v4615_v38, %v4614_v21  ;;  %v4728_v62 = vadd.f32 %v4727_v13, %v4726_v27 }
 0x273   :  { %3633 = vst [vmem:[%s6693_s3 + $0x68] sm:$0xff] %v3601_v23  ;;  %v3380_v33 = vadd.f32 %v4725_v51, %v3219_v44  ;;  %v3222_v25 = vadd.f32 %v4616_v35, %v6475_v15 }
 0x275   :  { %v3570_v50 = vadd.f32 %v6529_v3, %v3380_v33  ;;  %v3383_v16 = vadd.f32 %v4728_v62, %v3222_v25  ;;  %v4617_v19 = vpop.f32.mrb[192].mxu1  ;;  %v4729_v36 = vpop.f32.mrb[192].mxu0 }
 0x276   :  { %v4618_v11 = vpop.f32.mrb[193].mxu1  ;;  %v4730_v52 = vpop.f32.mrb[193].mxu0 }
 0x277   :  { %v3602_v2 = vmax.f32 %v3570_v50, 0.0  ;;  %v3571_v40 = vadd.f32 %v6529_v3, %v3383_v16  ;;  %v4619_v43 = vadd.f32 %v4618_v11, %v4617_v19  ;;  %v4731_v56 = vadd.f32 %v4730_v52, %v4729_v36  ;;  %v4620_v20 = vpop.f32.mrb[194].mxu1  ;;  %v4732_v46 = vpop.f32.mrb[194].mxu0 }
 0x278   :  { %v4621_v7 = vpop.f32.mrb[195].mxu1  ;;  %v4733_v29 = vpop.f32.mrb[195].mxu0 }
 0x279   :  { %3634 = vst [vmem:[%s6693_s3 + $0x70] sm:$0xff] %v3602_v2  ;;  %v3603_v15 = vmax.f32 %v3571_v40, 0.0  ;;  %v3227_v5 = vadd.f32 %v4619_v43, %v6478_v60  ;;  %v4622_v24 = vadd.f32 %v4621_v7, %v4620_v20  ;;  %v4734_v55 = vadd.f32 %v4733_v29, %v4732_v46 }
 0x27b   :  { %3635 = vst [vmem:[%s6693_s3 + $0x78] sm:$0xff] %v3603_v15  ;;  %v3388_v58 = vadd.f32 %v4731_v56, %v3227_v5  ;;  %v3230_v61 = vadd.f32 %v4622_v24, %v6481_v45 }
 0x27d   :  { %v3572_v39 = vadd.f32 %v6529_v3, %v3388_v58  ;;  %v3391_v63 = vadd.f32 %v4734_v55, %v3230_v61  ;;  %v4623_v14 = vpop.f32.mrb[196].mxu1  ;;  %v4735_v1 = vpop.f32.mrb[196].mxu0 }
 0x27e   :  { %v4624_v22 = vpop.f32.mrb[197].mxu1  ;;  %v4736_v57 = vpop.f32.mrb[197].mxu0 }
 0x27f   :  { %v3604_v34 = vmax.f32 %v3572_v39, 0.0  ;;  %v3573_v47 = vadd.f32 %v6529_v3, %v3391_v63  ;;  %v4625_v60 = vadd.f32 %v4624_v22, %v4623_v14  ;;  %v4737_v42 = vadd.f32 %v4736_v57, %v4735_v1  ;;  %v4626_v37 = vpop.f32.mrb[198].mxu1  ;;  %v4738_v10 = vpop.f32.mrb[198].mxu0 }
 0x280   :  { %v4627_v49 = vpop.f32.mrb[199].mxu1  ;;  %v4739_v32 = vpop.f32.mrb[199].mxu0 }
 0x281   :  { %3636 = vst [vmem:[%s6693_s3 + $0x80] sm:$0xff] %v3604_v34  ;;  %v3605_v45 = vmax.f32 %v3573_v47, 0.0  ;;  %v3235_v4 = vadd.f32 %v4625_v60, %v6484_v12  ;;  %v4628_v18 = vadd.f32 %v4627_v49, %v4626_v37  ;;  %v4740_v53 = vadd.f32 %v4739_v32, %v4738_v10 }
 0x283   :  { %3637 = vst [vmem:[%s6693_s3 + $0x88] sm:$0xff] %v3605_v45  ;;  %v3396_v51 = vadd.f32 %v4737_v42, %v3235_v4  ;;  %v3238_v21 = vadd.f32 %v4628_v18, %v6487_v31 }
 0x285   :  { %v3574_v27 = vadd.f32 %v6529_v3, %v3396_v51  ;;  %v3399_v38 = vadd.f32 %v4740_v53, %v3238_v21  ;;  %v4629_v13 = vpop.f32.mrb[200].mxu1  ;;  %v4741_v23 = vpop.f32.mrb[200].mxu0 }
 0x286   :  { %v4630_v44 = vpop.f32.mrb[201].mxu1  ;;  %v4742_v35 = vpop.f32.mrb[201].mxu0 }
 0x287   :  { %v3606_v62 = vmax.f32 %v3574_v27, 0.0  ;;  %v3575_v33 = vadd.f32 %v6529_v3, %v3399_v38  ;;  %v4631_v12 = vadd.f32 %v4630_v44, %v4629_v13  ;;  %v4743_v25 = vadd.f32 %v4742_v35, %v4741_v23  ;;  %v4632_v50 = vpop.f32.mrb[202].mxu1  ;;  %v4744_v16 = vpop.f32.mrb[202].mxu0 }
 0x288   :  { %v4633_v19 = vpop.f32.mrb[203].mxu1  ;;  %v4745_v36 = vpop.f32.mrb[203].mxu0 }
 0x289   :  { %3638 = vst [vmem:[%s6693_s3 + $0x90] sm:$0xff] %v3606_v62  ;;  %v3607_v31 = vmax.f32 %v3575_v33, 0.0  ;;  %v3243_v11 = vadd.f32 %v4631_v12, %v6490_v28  ;;  %v4634_v52 = vadd.f32 %v4633_v19, %v4632_v50  ;;  %v4746_v2 = vadd.f32 %v4745_v36, %v4744_v16 }
 0x28b   :  { %3639 = vst [vmem:[%s6693_s3 + $0x98] sm:$0xff] %v3607_v31  ;;  %v3404_v40 = vadd.f32 %v4743_v25, %v3243_v11  ;;  %v3246_v43 = vadd.f32 %v4634_v52, %v6493_v17 }
 0x28d   :  { %v3576_v56 = vadd.f32 %v6529_v3, %v3404_v40  ;;  %v3407_v20 = vadd.f32 %v4746_v2, %v3246_v43  ;;  %v4635_v46 = vpop.f32.mrb[204].mxu1  ;;  %v4747_v7 = vpop.f32.mrb[204].mxu0 }
 0x28e   :  { %v4636_v29 = vpop.f32.mrb[205].mxu1  ;;  %v4748_v15 = vpop.f32.mrb[205].mxu0 }
 0x28f   :  { %v3608_v5 = vmax.f32 %v3576_v56, 0.0  ;;  %v3577_v24 = vadd.f32 %v6529_v3, %v3407_v20  ;;  %v4637_v28 = vadd.f32 %v4636_v29, %v4635_v46  ;;  %v4749_v55 = vadd.f32 %v4748_v15, %v4747_v7  ;;  %v4638_v58 = vpop.f32.mrb[206].mxu1  ;;  %v4750_v61 = vpop.f32.mrb[206].mxu0 }
 0x290   :  { %v4639_v39 = vpop.f32.mrb[207].mxu1  ;;  %v4751_v63 = vpop.f32.mrb[207].mxu0 }
 0x291   :  { %3640 = vst [vmem:[%s6693_s3 + $0xa0] sm:$0xff] %v3608_v5  ;;  %v3609_v17 = vmax.f32 %v3577_v24, 0.0  ;;  %v3251_v14 = vadd.f32 %v4637_v28, %v6496_v48  ;;  %v4640_v1 = vadd.f32 %v4639_v39, %v4638_v58  ;;  %v4752_v22 = vadd.f32 %v4751_v63, %v4750_v61 }
 0x293   :  { %3641 = vst [vmem:[%s6693_s3 + $0xa8] sm:$0xff] %v3609_v17  ;;  %v3412_v57 = vadd.f32 %v4749_v55, %v3251_v14  ;;  %v3254_v34 = vadd.f32 %v4640_v1, %v6499_v8 }
 0x295   :  { %v3578_v47 = vadd.f32 %v6529_v3, %v3412_v57  ;;  %v3415_v60 = vadd.f32 %v4752_v22, %v3254_v34  ;;  %v4641_v42 = vpop.f32.mrb[208].mxu1  ;;  %v4753_v37 = vpop.f32.mrb[208].mxu0 }
 0x296   :  { %v4642_v10 = vpop.f32.mrb[209].mxu1  ;;  %v4754_v49 = vpop.f32.mrb[209].mxu0 }
 0x297   :  { %v3610_v32 = vmax.f32 %v3578_v47, 0.0  ;;  %v3579_v45 = vadd.f32 %v6529_v3, %v3415_v60  ;;  %v4643_v48 = vadd.f32 %v4642_v10, %v4641_v42  ;;  %v4755_v4 = vadd.f32 %v4754_v49, %v4753_v37  ;;  %v4644_v18 = vpop.f32.mrb[210].mxu1  ;;  %v4756_v53 = vpop.f32.mrb[210].mxu0 }
 0x298   :  { %v4645_v51 = vpop.f32.mrb[211].mxu1  ;;  %v4757_v21 = vpop.f32.mrb[211].mxu0 }
 0x299   :  { %3642 = vst [vmem:[%s6693_s3 + $0xb0] sm:$0xff] %v3610_v32  ;;  %v3611_v8 = vmax.f32 %v3579_v45, 0.0  ;;  %v3259_v27 = vadd.f32 %v4643_v48, %v6502_v6  ;;  %v4646_v38 = vadd.f32 %v4645_v51, %v4644_v18  ;;  %v4758_v13 = vadd.f32 %v4757_v21, %v4756_v53 }
 0x29b   :  { %3643 = vst [vmem:[%s6693_s3 + $0xb8] sm:$0xff] %v3611_v8  ;;  %v3420_v23 = vadd.f32 %v4755_v4, %v3259_v27  ;;  %v3262_v44 = vadd.f32 %v4646_v38, %v6505_v30 }
 0x29d   :  { %v3580_v35 = vadd.f32 %v6529_v3, %v3420_v23  ;;  %v3423_v62 = vadd.f32 %v4758_v13, %v3262_v44  ;;  %v4647_v33 = vpop.f32.mrb[212].mxu1  ;;  %v4759_v12 = vpop.f32.mrb[212].mxu0 }
 0x29e   :  { %v4648_v25 = vpop.f32.mrb[213].mxu1  ;;  %v4760_v50 = vpop.f32.mrb[213].mxu0 }
 0x29f   :  { %v3612_v16 = vmax.f32 %v3580_v35, 0.0  ;;  %v3581_v19 = vadd.f32 %v6529_v3, %v3423_v62  ;;  %v4649_v6 = vadd.f32 %v4648_v25, %v4647_v33  ;;  %v4761_v36 = vadd.f32 %v4760_v50, %v4759_v12  ;;  %v4650_v31 = vpop.f32.mrb[214].mxu1  ;;  %v4762_v11 = vpop.f32.mrb[214].mxu0 }
 0x2a0   :  { %v4651_v52 = vpop.f32.mrb[215].mxu1  ;;  %v4763_v2 = vpop.f32.mrb[215].mxu0 }
 0x2a1   :  { %3644 = vst [vmem:[%s6693_s3 + $0xc0] sm:$0xff] %v3612_v16  ;;  %v3613_v30 = vmax.f32 %v3581_v19, 0.0  ;;  %v3267_v40 = vadd.f32 %v4649_v6, %v6508_v26  ;;  %v4652_v43 = vadd.f32 %v4651_v52, %v4650_v31  ;;  %v4764_v56 = vadd.f32 %v4763_v2, %v4762_v11 }
 0x2a3   :  { %3645 = vst [vmem:[%s6693_s3 + $0xc8] sm:$0xff] %v3613_v30  ;;  %v3428_v20 = vadd.f32 %v4761_v36, %v3267_v40  ;;  %v3270_v46 = vadd.f32 %v4652_v43, %v6511_v59 }
 0x2a5   :  { %v3582_v7 = vadd.f32 %v6529_v3, %v3428_v20  ;;  %v3431_v29 = vadd.f32 %v4764_v56, %v3270_v46  ;;  %v4653_v15 = vpop.f32.mrb[216].mxu1  ;;  %v4765_v5 = vpop.f32.mrb[216].mxu0 }
 0x2a6   :  { %v4654_v24 = vpop.f32.mrb[217].mxu1  ;;  %v4766_v28 = vpop.f32.mrb[217].mxu0 }
 0x2a7   :  { %v3614_v55 = vmax.f32 %v3582_v7, 0.0  ;;  %v3583_v58 = vadd.f32 %v6529_v3, %v3431_v29  ;;  %v4655_v26 = vadd.f32 %v4654_v24, %v4653_v15  ;;  %v4767_v61 = vadd.f32 %v4766_v28, %v4765_v5  ;;  %v4656_v39 = vpop.f32.mrb[218].mxu1  ;;  %v4768_v63 = vpop.f32.mrb[218].mxu0 }
 0x2a8   :  { %v4657_v17 = vpop.f32.mrb[219].mxu1  ;;  %v4769_v14 = vpop.f32.mrb[219].mxu0 }
 0x2a9   :  { %3646 = vst [vmem:[%s6693_s3 + $0xd0] sm:$0xff] %v3614_v55  ;;  %v3615_v59 = vmax.f32 %v3583_v58, 0.0  ;;  %v3275_v1 = vadd.f32 %v4655_v26, %v6514_v54  ;;  %v4658_v22 = vadd.f32 %v4657_v17, %v4656_v39  ;;  %v4770_v57 = vadd.f32 %v4769_v14, %v4768_v63 }
 0x2ab   :  { %3647 = vst [vmem:[%s6693_s3 + $0xd8] sm:$0xff] %v3615_v59  ;;  %v3436_v34 = vadd.f32 %v4767_v61, %v3275_v1  ;;  %v3278_v47 = vadd.f32 %v4658_v22, %v6517_v9 }
 0x2ad   :  { %v3584_v60 = vadd.f32 %v6529_v3, %v3436_v34  ;;  %v3439_v42 = vadd.f32 %v4770_v57, %v3278_v47  ;;  %v4659_v37 = vpop.f32.mrb[220].mxu1  ;;  %v4771_v10 = vpop.f32.mrb[220].mxu0 }
 0x2ae   :  { %v4660_v49 = vpop.f32.mrb[221].mxu1  ;;  %v4772_v32 = vpop.f32.mrb[221].mxu0 }
 0x2af   :  { %v3616_v45 = vmax.f32 %v3584_v60, 0.0  ;;  %v3585_v48 = vadd.f32 %v6529_v3, %v3439_v42  ;;  %v4661_v54 = vadd.f32 %v4660_v49, %v4659_v37  ;;  %v4773_v4 = vadd.f32 %v4772_v32, %v4771_v10  ;;  %v4662_v18 = vpop.f32.mrb[222].mxu1  ;;  %v4774_v53 = vpop.f32.mrb[222].mxu0 }
 0x2b0   :  { %v4663_v51 = vpop.f32.mrb[223].mxu1  ;;  %v4775_v21 = vpop.f32.mrb[223].mxu0 }
 0x2b1   :  { %3648 = vst [vmem:[%s6693_s3 + $0xe0] sm:$0xff] %v3616_v45  ;;  %v3617_v9 = vmax.f32 %v3585_v48, 0.0  ;;  %v3283_v8 = vadd.f32 %v4661_v54, %v6520_v41  ;;  %v4664_v27 = vadd.f32 %v4663_v51, %v4662_v18  ;;  %v4776_v38 = vadd.f32 %v4775_v21, %v4774_v53 }
 0x2b3   :  { %3649 = vst [vmem:[%s6693_s3 + $0xe8] sm:$0xff] %v3617_v9  ;;  %v3444_v13 = vadd.f32 %v4773_v4, %v3283_v8  ;;  %v3286_v23 = vadd.f32 %v4664_v27, %v6523_v0 }
 0x2b5   :  { %v3586_v44 = vadd.f32 %v6529_v3, %v3444_v13  ;;  %v3447_v35 = vadd.f32 %v4776_v38, %v3286_v23 }
 0x2b7   :  { %v3618_v62 = vmax.f32 %v3586_v44, 0.0  ;;  %v3587_v33 = vadd.f32 %v6529_v3, %v3447_v35 }
 0x2b9   :  { %3650 = vst [vmem:[%s6693_s3 + $0xf0] sm:$0xff] %v3618_v62  ;;  %v3619_v41 = vmax.f32 %v3587_v33, 0.0 }
 0x2bb   :  { %3651 = vst [vmem:[%s6693_s3 + $0xf8] sm:$0xff] %v3619_v41 }

// kernel: encoder_forward.6
= control target key start
LH: loop header
LB: loop body
LE: loop exit
PB: predicated region body
PF: predicated region fallthrough
CT: control target
= control target key end

     0   :  { %8 = vsyncpa [#allocation4], 0  ;;  %s6610_s0 = inlined_call_operand.vmem [shape: bf16[8,16384], index: 0, kind: input, shape index: {}]   ;;  %s6611_s1 = inlined_call_operand.hbm [shape: bf16[16384,1024], index: 1, kind: input, shape index: {}]   ;;  %s6612_s2 = inlined_call_operand.vmem [shape: f32[1,1024], index: 2, kind: input, shape index: {}]   ;;  %s6613_s3 = inlined_call_operand.vmem [shape: f32[8,1024], index: 3, kind: output, shape index: {}]  }
   0x1   :  { %10 = vsyncpa [#allocation4 + $0x1], 0  ;;  %s5796_s12 = smov 0   ;;  %s5798_s13 = smov 0  }
   0x2   :  { %s5800_s14 = smov 0   ;;  %s5802_s15 = smov 0  }
   0x3   :  { %s5804_s16 = smov 0   ;;  %s5806_s17 = smov 0  }
   0x4   :  { %s5808_s18 = smov 0   ;;  %s5810_s19 = smov 0  }
   0x5 LB: > { %s4265_s20 = sadd.s32 4294967295, %s5769_s19   ;;  %s28_s21 = sadd.s32 1, %s5761_s17  ;;  %s5769_s19 = sphi %s5810_s19, %s16_s19   ;;  %s5765_s18 = sphi %s5808_s18, %s6623_s18   ;;  %s5761_s17 = sphi %s5806_s17, %s6622_s17   ;;  %s5757_s16 = sphi %s5804_s16, %s6621_s16   ;;  %s5753_s15 = sphi %s5802_s15, %s6620_s15   ;;  %s5749_s14 = sphi %s5800_s14, %s6619_s14   ;;  %s5745_s13 = sphi %s5798_s13, %s6618_s13   ;;  %s5741_s12 = sphi %s5796_s12, %s6617_s12  }
   0x6   : > { %p29_p0 = scmp.ge.s32.totalorder %s28_s21, 8  ;;  %s31_s22 = sadd.s32 1, %s5765_s18 }
   0x7   : > { %s72_s23 = sadd.s32 1, %s5749_s14  ;;  %p79_p1 = scmp.ne.s32.totalorder %s5749_s14, %s5745_s13 }
   0x8   : > { %s6625_s21 = smov (%p29_p0, %s28_s21), 0  ;;  %s6627_s22 = smov (!%p29_p0, %s31_s22), %s5765_s18 }
   0x9   : > { %s67_s24 = ssub.s32 %s5761_s17, %s6625_s21  ;;  %p80_p2 = scmp.eq.s32.totalorder %s5769_s19, 0 }
   0xa   : > { %p33_p3 = scmp.ge.s32.totalorder %s6627_s22, 2  ;;  %p85_p4 = scmp.ne.s32.totalorder %s5745_s13, %s5741_s12 }
   0xb   : > { %p5847_p5 = por %p80_p2, %p79_p1  ;;  %p86_p6 = scmp.eq.s32.totalorder %s4265_s20, 0 }
   0xc   : > { %s6629_s22 = smov (%p33_p3, %s6627_s22), 0  ;;  %p4820_p8 = scmp.lt.s32.totalorder %s5769_s19, 16 }
   0xd   : > { %p5853_p7 = por %p86_p6, %p85_p4  ;;  %s68_s27 = ssub.s32 %s5765_s18, %s6629_s22 }
   0xe   : > { %s69_s28 = sor.u32 %s68_s27, %s67_s24  ;;  %s176_s29 = sand.u32 1, %s5749_s14  }
   0xf   : > { %p70_p9 = scmp.eq.s32.totalorder %s69_s28, 0  ;;  %s4269_s30 = sshll.u32 %s176_s29, 12 }
  0x10   : > { %s4271_s4 = sshll.u32 %s5765_s18, 2  ;;  %s4813_s6 = sshll.u32 %s5761_s17, 11 }
  0x11   : > { %s5863_s5 = scalar_select %p70_p9, %s5749_s14, %s72_s23  }
  0x12   : > { %s187_s7 = sadd.s32 %s4813_s6, %s4271_s4  ;;  %s180_s8 = scalar_lea.vmem [#allocation3], %s4269_s30 }
  0x13   : > { %s190_s9 = sshll.u32 %s180_s8, 4  ;;  %s4273_s10 = sshll.u32 %s187_s7, 6  ;;  %s5866_s9 = int_to_ptr.vmem [resolvable:$true] %s190_s9 }
  0x14   : > { %s5871_s20 = scalar_lea.hbm %s6611_s1, %s4273_s10  ;;  %p5877_p10 = pnand %p4820_p8, %p5847_p5 }
  0x15   : > { %s5881_s24 = scalar_lea.sflag [#allocation4], %s176_s29  ;;  %s5673_s27 = scalar_lea.hbm %s5871_s20, 65536 }
  0x16   : > { %p5674_p11 = scmp.ne.s32.totalorder %s5871_s20, %s5673_s27  ;;  %p5675_p12 = pneg %p5877_p10 }
  0x17   : > { %s5678_s30 = scalar_lea.hbm %s6611_s1, 1048576  ;;  %p5679_p1 = scmp.lt.u32.totalorder %s5871_s20, %s6611_s1 }
  0x18   : > { %p5676_p13 = pnand %p5675_p12, %p5674_p11  ;;  %p5680_p2 = scmp.lt.u32.totalorder %s5678_s30, %s5673_s27 }
  0x19   : > { %p5682_p4 = scmp.lt.u32.totalorder %s5673_s27, %s5871_s20 }
  0x1a   : > { %p5677_p0 = pneg %p5676_p13  ;;  %p5681_p3 = por %p5680_p2, %p5679_p1 }
  0x1c   : > { %p5683_p5 = por %p5682_p4, %p5681_p3 }
  0x1e   : > { %p5684_p6 = pnand %p5683_p5, %p5677_p0 }
  0x20   : > { %5687 = shalt.err (!%p5684_p6)
}
  0x21   : > { %s5688_s29 = scalar_lea.vmem %s5866_s9, 65536  ;;  %s5771_s7 = smov [#allocation3]  }
  0x22   : > { %p5689_p8 = scmp.ne.s32.totalorder %s5866_s9, %s5688_s29  ;;  %s5693_s8 = sshll.u32 %s5771_s7, 4  ;;  %s5694_s8 = int_to_ptr.vmem [resolvable:$false] %s5693_s8 }
  0x23   : > { %s5695_s10 = scalar_lea.vmem %s5694_s8, 131072  ;;  %p5696_p13 = scmp.lt.s32.totalorder %s5866_s9, %s5694_s8 }
  0x24   : > { %p5691_p9 = pnand %p5689_p8, %p5675_p12  ;;  %p5697_p1 = scmp.lt.s32.totalorder %s5695_s10, %s5688_s29 }
  0x26   : > { %p5692_p11 = pneg %p5691_p9  ;;  %p5698_p2 = por %p5697_p1, %p5696_p13 }
  0x28   : > { %p5699_p3 = pnand %p5698_p2, %p5692_p11 }
  0x2a   : > { %5702 = shalt.err (!%p5699_p3)
}
  0x2b   : > { %s5772_s11 = smov 512   ;;  %s5773_s12 = smov 256  }
  0x2c   : > { %s5774_s27 = smov 16   ;;  %p4274_p12 = scmp.ge.s32.totalorder %s5769_s19, 1 }
  0x2d   : > { %4819 = dma.hbm_to_vmem [thread:$0]  (!%p5877_p10), %s5871_s20, 65536, %s5866_s9, %s5881_s24, %s5772_s11, %s5773_s12, %s5774_s27  }
  0x2e   : > { %p206_p0 = scmp.lt.s32.totalorder %s5769_s19, 17 }
  0x30   : > { %p207_p4 = pnand %p4274_p12, %p206_p0 }
  0x31   : > { %s212_s25 = sand.u32 (!%p207_p4), 1, %s5745_s13  }
  0x32   : > { %210 = sbr.rel (%p207_p4) target bundleno = 816 (0x330), region = 32  ;;  %s4275_s28 = sshll.u32 (!%p207_p4), %s212_s25, 12 }
  0x33   : > { %s213_s30 = scalar_lea.sflag (!%p207_p4), [#allocation4], %s212_s25  ;;  %s5912_s4 = scalar_lea.vmem (!%p207_p4), [#allocation3], %s4275_s28 }
  0x39   : > { %5736 = dma.done.wait (%p5853_p7), %s213_s30, 65536  }
  0x3a   : > { %5738 = vsyncadd (%p5853_p7), %s213_s30, 4294901760  ;;  %s4276_s23 = sshll.u32 %s5753_s15, 4  ;;  %s4278_s9 = sshll.u32 %s5757_s16, 2 }
  0x3b   : > { %p259_p10 = scmp.lt.s32.totalorder %s4276_s23, 127  ;;  %p269_p5 = scmp.lt.s32.totalorder %s4278_s9, 7 }
  0x3c   : > { %p4281_p7 = scmp.ne.s32.totalorder %s5753_s15, 0 }
  0x3d   : > { %s6631_s23 = smov (!%p259_p10, %s4276_s23), 127  ;;  %s6633_s9 = smov (!%p269_p5, %s4278_s9), 7 }
  0x3e   : > { %s4277_s20 = sshll.u32 %s6631_s23, 2  ;;  %s271_s8 = scalar_lea.vmem %s6612_s2, %s6633_s9  ;;  %v5775_v0 = vmov (!%p4281_p7), 0.0  }
  0x3f   : > { %s5925_s29 = scalar_lea.vmem %s6610_s0, %s4277_s20  ;;  %s4280_s10 = sshll.u32 %s6633_s9, 3  ;;  %287 = vst [vmem:[#allocation2] sm:$0xff] (!%p4281_p7), %v5775_v0  ;;  %288 = vst [vmem:[#allocation2 + $0x8] sm:$0xff] (!%p4281_p7), %v5775_v0 }
  0x40   : > { %s5935_s12 = scalar_lea.vmem %s6613_s3, %s4280_s10  ;;  %286 = sbr.rel (%p4281_p7) target bundleno = 71 (0x47), region = 40  ;;  %289 = vst [vmem:[#allocation2 + $0x10] sm:$0xff] (!%p4281_p7), %v5775_v0  ;;  %290 = vst [vmem:[#allocation2 + $0x18] sm:$0xff] (!%p4281_p7), %v5775_v0 }
  0x47 PF: > { %v4889_v1 = vld [vmem:[%s5912_s4 + $0x4] ss:$16 sps:$4 sm:$0xff]   ;;  %v4893_v3 = vld [vmem:[%s5912_s4] ss:$16 sps:$4 sm:$0xff]   ;;  %v296_v49 = vld [vmem:[%s5925_s29 + $0x8] sm:$0xff]  ;;  %p4810_p6 = scmp.ne.s32.totalorder %s5753_s15, 7 }
  0x48   : > { %v4891_v2 = vld [vmem:[%s5912_s4 + $0x204] ss:$16 sps:$4 sm:$0xff]   ;;  %3431 = vmatprep.subr.bf16.mxu0 %v4889_v1  ;;  %v4894_v4 = vld [vmem:[%s5912_s4 + $0x200] ss:$16 sps:$4 sm:$0xff]   ;;  %v5990_v52 = vcombine.high %v296_v49, %v296_v49 }
  0x49   : > { %3472 = vmatprep.subr.bf16.mxu1 %v4891_v2  ;;  %v4895_v5 = vld [vmem:[%s5912_s4 + $0x24] ss:$16 sps:$4 sm:$0xff]   ;;  %3432 = vmatpush1.bf16.msra.mxu0 %v4893_v3  ;;  %v4899_v7 = vld [vmem:[%s5912_s4 + $0x20] ss:$16 sps:$4 sm:$0xff]  }
  0x4a   : > { %3473 = vmatpush1.bf16.msra.mxu1 %v4894_v4  ;;  %v4897_v6 = vld [vmem:[%s5912_s4 + $0x224] ss:$16 sps:$4 sm:$0xff]   ;;  %3433 = vmatprep.subr.bf16.mxu0 %v4895_v5  ;;  %v4900_v8 = vld [vmem:[%s5912_s4 + $0x220] ss:$16 sps:$4 sm:$0xff]  }
  0x4b   : > { %3474 = vmatprep.subr.bf16.mxu1 %v4897_v6  ;;  %v4901_v9 = vld [vmem:[%s5912_s4 + $0x44] ss:$16 sps:$4 sm:$0xff]   ;;  %v4905_v11 = vld [vmem:[%s5912_s4 + $0x40] ss:$16 sps:$4 sm:$0xff]   ;;  %3504 = vmatprep.mubr.bf16.mxu1 %v5990_v52 }
  0x4c   : > { %v4903_v10 = vld [vmem:[%s5912_s4 + $0x244] ss:$16 sps:$4 sm:$0xff]   ;;  %v4906_v12 = vld [vmem:[%s5912_s4 + $0x240] ss:$16 sps:$4 sm:$0xff]  }
  0x4d   : > { %3434 = vmatpush1.bf16.msra.mxu0 %v4899_v7  ;;  %v4907_v13 = vld [vmem:[%s5912_s4 + $0x64] ss:$16 sps:$4 sm:$0xff]   ;;  %v4911_v15 = vld [vmem:[%s5912_s4 + $0x60] ss:$16 sps:$4 sm:$0xff]  }
  0x4e   : > { %3475 = vmatpush1.bf16.msra.mxu1 %v4900_v8  ;;  %3435 = vmatprep.subr.bf16.mxu0 %v4901_v9  ;;  %v4909_v14 = vld [vmem:[%s5912_s4 + $0x264] ss:$16 sps:$4 sm:$0xff]   ;;  %v4912_v16 = vld [vmem:[%s5912_s4 + $0x260] ss:$16 sps:$4 sm:$0xff]   ;;  %v6014_v8 = vcombine.low %v296_v49, %v296_v49 }
  0x4f   : > { %3476 = vmatprep.subr.bf16.mxu1 %v4903_v10  ;;  %v4913_v17 = vld [vmem:[%s5912_s4 + $0x84] ss:$16 sps:$4 sm:$0xff]   ;;  %v4917_v19 = vld [vmem:[%s5912_s4 + $0x80] ss:$16 sps:$4 sm:$0xff]  }
  0x50   : > { %v4915_v18 = vld [vmem:[%s5912_s4 + $0x284] ss:$16 sps:$4 sm:$0xff]   ;;  %v4918_v20 = vld [vmem:[%s5912_s4 + $0x280] ss:$16 sps:$4 sm:$0xff]  }
  0x51   : > { %3436 = vmatpush1.bf16.msra.mxu0 %v4905_v11  ;;  %v4919_v21 = vld [vmem:[%s5912_s4 + $0xa4] ss:$16 sps:$4 sm:$0xff]   ;;  %v4923_v23 = vld [vmem:[%s5912_s4 + $0xa0] ss:$16 sps:$4 sm:$0xff]  }
  0x52   : > { %3477 = vmatpush1.bf16.msra.mxu1 %v4906_v12  ;;  %3437 = vmatprep.subr.bf16.mxu0 %v4907_v13  ;;  %v4921_v22 = vld [vmem:[%s5912_s4 + $0x2a4] ss:$16 sps:$4 sm:$0xff]   ;;  %v4924_v24 = vld [vmem:[%s5912_s4 + $0x2a0] ss:$16 sps:$4 sm:$0xff]  }
  0x53   : > { %3478 = vmatprep.subr.bf16.mxu1 %v4909_v14  ;;  %v4925_v25 = vld [vmem:[%s5912_s4 + $0xc4] ss:$16 sps:$4 sm:$0xff]   ;;  %v4929_v27 = vld [vmem:[%s5912_s4 + $0xc0] ss:$16 sps:$4 sm:$0xff]  }
  0x54   : > { %v4927_v26 = vld [vmem:[%s5912_s4 + $0x2c4] ss:$16 sps:$4 sm:$0xff]   ;;  %v4930_v28 = vld [vmem:[%s5912_s4 + $0x2c0] ss:$16 sps:$4 sm:$0xff]  }
  0x55   : > { %3438 = vmatpush1.bf16.msra.mxu0 %v4911_v15  ;;  %v4931_v29 = vld [vmem:[%s5912_s4 + $0xe4] ss:$16 sps:$4 sm:$0xff]   ;;  %v4935_v31 = vld [vmem:[%s5912_s4 + $0xe0] ss:$16 sps:$4 sm:$0xff]  }
  0x56   : > { %3479 = vmatpush1.bf16.msra.mxu1 %v4912_v16  ;;  %3439 = vmatprep.subr.bf16.mxu0 %v4913_v17  ;;  %v4933_v30 = vld [vmem:[%s5912_s4 + $0x2e4] ss:$16 sps:$4 sm:$0xff]   ;;  %v4936_v32 = vld [vmem:[%s5912_s4 + $0x2e0] ss:$16 sps:$4 sm:$0xff]  }
  0x57   : > { %3480 = vmatprep.subr.bf16.mxu1 %v4915_v18  ;;  %v4937_v33 = vld [vmem:[%s5912_s4 + $0x104] ss:$16 sps:$4 sm:$0xff]   ;;  %v4941_v35 = vld [vmem:[%s5912_s4 + $0x100] ss:$16 sps:$4 sm:$0xff]  }
  0x58   : > { %v4939_v34 = vld [vmem:[%s5912_s4 + $0x304] ss:$16 sps:$4 sm:$0xff]   ;;  %v4942_v36 = vld [vmem:[%s5912_s4 + $0x300] ss:$16 sps:$4 sm:$0xff]  }
  0x59   : > { %3440 = vmatpush1.bf16.msra.mxu0 %v4917_v19  ;;  %v4943_v37 = vld [vmem:[%s5912_s4 + $0x124] ss:$16 sps:$4 sm:$0xff]   ;;  %v4947_v39 = vld [vmem:[%s5912_s4 + $0x120] ss:$16 sps:$4 sm:$0xff]  }
  0x5a   : > { %3481 = vmatpush1.bf16.msra.mxu1 %v4918_v20  ;;  %3441 = vmatprep.subr.bf16.mxu0 %v4919_v21  ;;  %v4945_v38 = vld [vmem:[%s5912_s4 + $0x324] ss:$16 sps:$4 sm:$0xff]   ;;  %v4948_v40 = vld [vmem:[%s5912_s4 + $0x320] ss:$16 sps:$4 sm:$0xff]  }
  0x5b   : > { %3482 = vmatprep.subr.bf16.mxu1 %v4921_v22  ;;  %v4949_v41 = vld [vmem:[%s5912_s4 + $0x144] ss:$16 sps:$4 sm:$0xff]   ;;  %v4953_v43 = vld [vmem:[%s5912_s4 + $0x140] ss:$16 sps:$4 sm:$0xff]  }
  0x5c   : > { %v4951_v42 = vld [vmem:[%s5912_s4 + $0x344] ss:$16 sps:$4 sm:$0xff]   ;;  %v4954_v44 = vld [vmem:[%s5912_s4 + $0x340] ss:$16 sps:$4 sm:$0xff]  }
  0x5d   : > { %3442 = vmatpush1.bf16.msra.mxu0 %v4923_v23  ;;  %v4955_v45 = vld [vmem:[%s5912_s4 + $0x164] ss:$16 sps:$4 sm:$0xff]   ;;  %v4959_v50 = vld [vmem:[%s5912_s4 + $0x160] ss:$16 sps:$4 sm:$0xff]  }
  0x5e   : > { %3483 = vmatpush1.bf16.msra.mxu1 %v4924_v24  ;;  %3443 = vmatprep.subr.bf16.mxu0 %v4925_v25  ;;  %v4957_v46 = vld [vmem:[%s5912_s4 + $0x364] ss:$16 sps:$4 sm:$0xff]   ;;  %v4960_v51 = vld [vmem:[%s5912_s4 + $0x360] ss:$16 sps:$4 sm:$0xff]  }
  0x5f   : > { %3484 = vmatprep.subr.bf16.mxu1 %v4927_v26  ;;  %v295_v47 = vld [vmem:[%s5925_s29] sm:$0xff] }
  0x60   : > { %v5985_v48 = vcombine.high %v295_v47, %v295_v47  ;;  %v4961_v53 = vld [vmem:[%s5912_s4 + $0x184] ss:$16 sps:$4 sm:$0xff]   ;;  %v4965_v55 = vld [vmem:[%s5912_s4 + $0x180] ss:$16 sps:$4 sm:$0xff]   ;;  %v6012_v7 = vcombine.low %v295_v47, %v295_v47 }
  0x61   : > { %3444 = vmatpush1.bf16.msra.mxu0 %v4929_v27  ;;  %v4963_v54 = vld [vmem:[%s5912_s4 + $0x384] ss:$16 sps:$4 sm:$0xff]   ;;  %v4966_v56 = vld [vmem:[%s5912_s4 + $0x380] ss:$16 sps:$4 sm:$0xff]  }
  0x62   : > { %3485 = vmatpush1.bf16.msra.mxu1 %v4930_v28  ;;  %3445 = vmatprep.subr.bf16.mxu0 %v4931_v29  ;;  %v4967_v57 = vld [vmem:[%s5912_s4 + $0x1a4] ss:$16 sps:$4 sm:$0xff]   ;;  %v4971_v59 = vld [vmem:[%s5912_s4 + $0x1a0] ss:$16 sps:$4 sm:$0xff]  }
  0x63   : > { %3486 = vmatprep.subr.bf16.mxu1 %v4933_v30  ;;  %3463 = vmatprep.mubr.bf16.mxu0 %v5985_v48  ;;  %v4969_v58 = vld [vmem:[%s5912_s4 + $0x3a4] ss:$16 sps:$4 sm:$0xff]   ;;  %v4972_v60 = vld [vmem:[%s5912_s4 + $0x3a0] ss:$16 sps:$4 sm:$0xff]  }
  0x64   : > { %v4973_v61 = vld [vmem:[%s5912_s4 + $0x1c4] ss:$16 sps:$4 sm:$0xff]   ;;  %v4977_v63 = vld [vmem:[%s5912_s4 + $0x1c0] ss:$16 sps:$4 sm:$0xff]  }
  0x65   : > { %3446 = vmatpush1.bf16.msra.mxu0 %v4935_v31  ;;  %v4975_v62 = vld [vmem:[%s5912_s4 + $0x3c4] ss:$16 sps:$4 sm:$0xff]   ;;  %v4978_v0 = vld [vmem:[%s5912_s4 + $0x3c0] ss:$16 sps:$4 sm:$0xff]  }
  0x66   : > { %3487 = vmatpush1.bf16.msra.mxu1 %v4936_v32  ;;  %3447 = vmatprep.subr.bf16.mxu0 %v4937_v33  ;;  %v4979_v1 = vld [vmem:[%s5912_s4 + $0x1e4] ss:$16 sps:$4 sm:$0xff]   ;;  %v4983_v3 = vld [vmem:[%s5912_s4 + $0x1e0] ss:$16 sps:$4 sm:$0xff]  }
  0x67   : > { %3488 = vmatprep.subr.bf16.mxu1 %v4939_v34  ;;  %v4981_v2 = vld [vmem:[%s5912_s4 + $0x3e4] ss:$16 sps:$4 sm:$0xff]   ;;  %v4984_v4 = vld [vmem:[%s5912_s4 + $0x3e0] ss:$16 sps:$4 sm:$0xff]   ;;  %v6046_v34 = vld [vmem:[%s5925_s29 + $0x18] sm:$0xff] }
  0x68   : > { %v4991_v5 = vld [vmem:[%s5912_s4 + $0x404] ss:$16 sps:$4 sm:$0xff]   ;;  %v4989_v9 = vld [vmem:[%s5912_s4 + $0x400] ss:$16 sps:$4 sm:$0xff]  }
  0x69   : > { %3448 = vmatpush1.bf16.msra.mxu0 %v4941_v35  ;;  %v4994_v6 = vld [vmem:[%s5912_s4 + $0x604] ss:$16 sps:$4 sm:$0xff]   ;;  %v4992_v10 = vld [vmem:[%s5912_s4 + $0x600] ss:$16 sps:$4 sm:$0xff]  }
  0x6a   : > { %3489 = vmatpush1.bf16.msra.mxu1 %v4942_v36  ;;  %3449 = vmatprep.subr.bf16.mxu0 %v4943_v37  ;;  %v4997_v11 = vld [vmem:[%s5912_s4 + $0x424] ss:$16 sps:$4 sm:$0xff]   ;;  %v4995_v13 = vld [vmem:[%s5912_s4 + $0x420] ss:$16 sps:$4 sm:$0xff]  }
  0x6b   : > { %3490 = vmatprep.subr.bf16.mxu1 %v4945_v38  ;;  %v5000_v12 = vld [vmem:[%s5912_s4 + $0x624] ss:$16 sps:$4 sm:$0xff]   ;;  %v4998_v14 = vld [vmem:[%s5912_s4 + $0x620] ss:$16 sps:$4 sm:$0xff]   ;;  %v6056_v38 = vcombine.high %v6046_v34, %v6046_v34 }
  0x6c   : > { %v5003_v15 = vld [vmem:[%s5912_s4 + $0x444] ss:$16 sps:$4 sm:$0xff]   ;;  %v5001_v17 = vld [vmem:[%s5912_s4 + $0x440] ss:$16 sps:$4 sm:$0xff]  }
  0x6d   : > { %3450 = vmatpush1.bf16.msra.mxu0 %v4947_v39  ;;  %v5006_v16 = vld [vmem:[%s5912_s4 + $0x644] ss:$16 sps:$4 sm:$0xff]   ;;  %v5004_v18 = vld [vmem:[%s5912_s4 + $0x640] ss:$16 sps:$4 sm:$0xff]  }
  0x6e   : > { %3491 = vmatpush1.bf16.msra.mxu1 %v4948_v40  ;;  %3451 = vmatprep.subr.bf16.mxu0 %v4949_v41  ;;  %v5009_v19 = vld [vmem:[%s5912_s4 + $0x464] ss:$16 sps:$4 sm:$0xff]   ;;  %v5007_v21 = vld [vmem:[%s5912_s4 + $0x460] ss:$16 sps:$4 sm:$0xff]  }
  0x6f   : > { %3492 = vmatprep.subr.bf16.mxu1 %v4951_v42  ;;  %v5012_v20 = vld [vmem:[%s5912_s4 + $0x664] ss:$16 sps:$4 sm:$0xff]   ;;  %v5010_v22 = vld [vmem:[%s5912_s4 + $0x660] ss:$16 sps:$4 sm:$0xff]  }
  0x70   : > { %v5015_v23 = vld [vmem:[%s5912_s4 + $0x484] ss:$16 sps:$4 sm:$0xff]   ;;  %v5013_v25 = vld [vmem:[%s5912_s4 + $0x480] ss:$16 sps:$4 sm:$0xff]  }
  0x71   : > { %3452 = vmatpush1.bf16.msra.mxu0 %v4953_v43  ;;  %v5018_v24 = vld [vmem:[%s5912_s4 + $0x684] ss:$16 sps:$4 sm:$0xff]   ;;  %v5016_v26 = vld [vmem:[%s5912_s4 + $0x680] ss:$16 sps:$4 sm:$0xff]  }
  0x72   : > { %3493 = vmatpush1.bf16.msra.mxu1 %v4954_v44  ;;  %3453 = vmatprep.subr.bf16.mxu0 %v4955_v45  ;;  %v5021_v27 = vld [vmem:[%s5912_s4 + $0x4a4] ss:$16 sps:$4 sm:$0xff]   ;;  %v5019_v29 = vld [vmem:[%s5912_s4 + $0x4a0] ss:$16 sps:$4 sm:$0xff]  }
  0x73   : > { %3494 = vmatprep.subr.bf16.mxu1 %v4957_v46  ;;  %v5024_v28 = vld [vmem:[%s5912_s4 + $0x6a4] ss:$16 sps:$4 sm:$0xff]   ;;  %v5022_v30 = vld [vmem:[%s5912_s4 + $0x6a0] ss:$16 sps:$4 sm:$0xff]  }
  0x74   : > { %v5027_v31 = vld [vmem:[%s5912_s4 + $0x4c4] ss:$16 sps:$4 sm:$0xff]   ;;  %v5025_v35 = vld [vmem:[%s5912_s4 + $0x4c0] ss:$16 sps:$4 sm:$0xff]  }
  0x75   : > { %3454 = vmatpush1.bf16.msra.mxu0 %v4959_v50  ;;  %v5030_v32 = vld [vmem:[%s5912_s4 + $0x6c4] ss:$16 sps:$4 sm:$0xff]   ;;  %v5028_v36 = vld [vmem:[%s5912_s4 + $0x6c0] ss:$16 sps:$4 sm:$0xff]  }
  0x76   : > { %3495 = vmatpush1.bf16.msra.mxu1 %v4960_v51  ;;  %3455 = vmatprep.subr.bf16.mxu0 %v4961_v53  ;;  %v6043_v33 = vld [vmem:[%s5925_s29 + $0x10] sm:$0xff] }
  0x77   : > { %3496 = vmatprep.subr.bf16.mxu1 %v4963_v54  ;;  %v6052_v37 = vcombine.high %v6043_v33, %v6043_v33  ;;  %v5033_v39 = vld [vmem:[%s5912_s4 + $0x4e4] ss:$16 sps:$4 sm:$0xff]   ;;  %v5031_v41 = vld [vmem:[%s5912_s4 + $0x4e0] ss:$16 sps:$4 sm:$0xff]  }
  0x78   : > { %v5036_v40 = vld [vmem:[%s5912_s4 + $0x6e4] ss:$16 sps:$4 sm:$0xff]   ;;  %v5034_v42 = vld [vmem:[%s5912_s4 + $0x6e0] ss:$16 sps:$4 sm:$0xff]  }
  0x79   : > { %3456 = vmatpush1.bf16.msra.mxu0 %v4965_v55  ;;  %v5039_v43 = vld [vmem:[%s5912_s4 + $0x504] ss:$16 sps:$4 sm:$0xff]   ;;  %v5037_v45 = vld [vmem:[%s5912_s4 + $0x500] ss:$16 sps:$4 sm:$0xff]  }
  0x7a   : > { %3497 = vmatpush1.bf16.msra.mxu1 %v4966_v56  ;;  %3457 = vmatprep.subr.bf16.mxu0 %v4967_v57  ;;  %v5042_v44 = vld [vmem:[%s5912_s4 + $0x704] ss:$16 sps:$4 sm:$0xff]   ;;  %v5040_v46 = vld [vmem:[%s5912_s4 + $0x700] ss:$16 sps:$4 sm:$0xff]  }
  0x7b   : > { %3498 = vmatprep.subr.bf16.mxu1 %v4969_v58  ;;  %v5045_v47 = vld [vmem:[%s5912_s4 + $0x524] ss:$16 sps:$4 sm:$0xff]   ;;  %v5043_v50 = vld [vmem:[%s5912_s4 + $0x520] ss:$16 sps:$4 sm:$0xff]  }
  0x7c   : > { %v5048_v49 = vld [vmem:[%s5912_s4 + $0x724] ss:$16 sps:$4 sm:$0xff]   ;;  %v5046_v51 = vld [vmem:[%s5912_s4 + $0x720] ss:$16 sps:$4 sm:$0xff]  }
  0x7d   : > { %3458 = vmatpush1.bf16.msra.mxu0 %v4971_v59  ;;  %v5051_v53 = vld [vmem:[%s5912_s4 + $0x544] ss:$16 sps:$4 sm:$0xff]   ;;  %v5049_v55 = vld [vmem:[%s5912_s4 + $0x540] ss:$16 sps:$4 sm:$0xff]  }
  0x7e   : > { %3499 = vmatpush1.bf16.msra.mxu1 %v4972_v60  ;;  %3459 = vmatprep.subr.bf16.mxu0 %v4973_v61  ;;  %v5054_v54 = vld [vmem:[%s5912_s4 + $0x744] ss:$16 sps:$4 sm:$0xff]   ;;  %v5052_v56 = vld [vmem:[%s5912_s4 + $0x740] ss:$16 sps:$4 sm:$0xff]  }
  0x7f   : > { %3500 = vmatprep.subr.bf16.mxu1 %v4975_v62  ;;  %v5057_v57 = vld [vmem:[%s5912_s4 + $0x564] ss:$16 sps:$4 sm:$0xff]   ;;  %v5055_v59 = vld [vmem:[%s5912_s4 + $0x560] ss:$16 sps:$4 sm:$0xff]  }
  0x80   : > { %v5060_v58 = vld [vmem:[%s5912_s4 + $0x764] ss:$16 sps:$4 sm:$0xff]   ;;  %v5058_v60 = vld [vmem:[%s5912_s4 + $0x760] ss:$16 sps:$4 sm:$0xff]  }
  0x81   : > { %3460 = vmatpush1.bf16.msra.mxu0 %v4977_v63  ;;  %v5063_v61 = vld [vmem:[%s5912_s4 + $0x584] ss:$16 sps:$4 sm:$0xff]   ;;  %v5061_v63 = vld [vmem:[%s5912_s4 + $0x580] ss:$16 sps:$4 sm:$0xff]  }
  0x82   : > { %3501 = vmatpush1.bf16.msra.mxu1 %v4978_v0  ;;  %3461 = vmatprep.subr.bf16.mxu0 %v4979_v1  ;;  %v5066_v62 = vld [vmem:[%s5912_s4 + $0x784] ss:$16 sps:$4 sm:$0xff]   ;;  %v5064_v0 = vld [vmem:[%s5912_s4 + $0x780] ss:$16 sps:$4 sm:$0xff]  }
  0x83   : > { %3502 = vmatprep.subr.bf16.mxu1 %v4981_v2  ;;  %v5069_v1 = vld [vmem:[%s5912_s4 + $0x5a4] ss:$16 sps:$4 sm:$0xff]  }
  0x84   : > { %v5072_v2 = vld [vmem:[%s5912_s4 + $0x7a4] ss:$16 sps:$4 sm:$0xff]  }
  0x85   : > { %3462 = vmatpush1.bf16.msra.mxu0 %v4983_v3  ;;  %v5067_v3 = vld [vmem:[%s5912_s4 + $0x5a0] ss:$16 sps:$4 sm:$0xff]  }
  0x86   : > { %3503 = vmatpush1.bf16.msra.mxu1 %v4984_v4  ;;  %3513 = vmatprep.subr.bf16.mxu0 %v4991_v5  ;;  %v5070_v4 = vld [vmem:[%s5912_s4 + $0x7a0] ss:$16 sps:$4 sm:$0xff]   ;;  %v5075_v5 = vld [vmem:[%s5912_s4 + $0x5c4] ss:$16 sps:$4 sm:$0xff]  }
  0x87   : > { %3554 = vmatprep.subr.bf16.mxu1 %v4994_v6  ;;  %v5078_v6 = vld [vmem:[%s5912_s4 + $0x7c4] ss:$16 sps:$4 sm:$0xff]  }
  0x88   : > { %3464 = vmatmul.mubr.bf16.vlgmr.msra.gmra.mrb[0].mxu0 %v6012_v7 }
  0x89   : > { %3505 = vmatmul.mubr.bf16.vlgmr.msra.gmra.mrb[0].mxu1 %v6014_v8  ;;  %3514 = vmatpush1.bf16.msra.mxu0 %v4989_v9  ;;  %v5073_v9 = vld [vmem:[%s5912_s4 + $0x5c0] ss:$16 sps:$4 sm:$0xff]  }
  0x8a   : > { %3555 = vmatpush1.bf16.msra.mxu1 %v4992_v10  ;;  %3515 = vmatprep.subr.bf16.mxu0 %v4997_v11  ;;  %v5076_v10 = vld [vmem:[%s5912_s4 + $0x7c0] ss:$16 sps:$4 sm:$0xff]   ;;  %v5081_v11 = vld [vmem:[%s5912_s4 + $0x5e4] ss:$16 sps:$4 sm:$0xff]  }
  0x8b   : > { %3556 = vmatprep.subr.bf16.mxu1 %v5000_v12  ;;  %3545 = vmatprep.mubr.bf16.mxu0 %v6052_v37  ;;  %v5084_v12 = vld [vmem:[%s5912_s4 + $0x7e4] ss:$16 sps:$4 sm:$0xff]  }
  0x8c   : > { %3586 = vmatprep.mubr.bf16.mxu1 %v6056_v38 }
  0x8d   : > { %3516 = vmatpush1.bf16.msra.mxu0 %v4995_v13  ;;  %v5079_v13 = vld [vmem:[%s5912_s4 + $0x5e0] ss:$16 sps:$4 sm:$0xff]  }
  0x8e   : > { %3557 = vmatpush1.bf16.msra.mxu1 %v4998_v14  ;;  %3517 = vmatprep.subr.bf16.mxu0 %v5003_v15  ;;  %v5082_v14 = vld [vmem:[%s5912_s4 + $0x7e0] ss:$16 sps:$4 sm:$0xff]   ;;  %v5091_v15 = vld [vmem:[%s5912_s4 + $0x804] ss:$16 sps:$4 sm:$0xff]  }
  0x8f   : > { %3558 = vmatprep.subr.bf16.mxu1 %v5006_v16  ;;  %v5094_v16 = vld [vmem:[%s5912_s4 + $0xa04] ss:$16 sps:$4 sm:$0xff]  }
  0x91   : > { %3518 = vmatpush1.bf16.msra.mxu0 %v5001_v17  ;;  %v6100_v17 = vcombine.low %v6043_v33, %v6043_v33  ;;  %v5109_v33 = vld [vmem:[%s5912_s4 + $0x864] ss:$16 sps:$4 sm:$0xff]  }
  0x92   : > { %3559 = vmatpush1.bf16.msra.mxu1 %v5004_v18  ;;  %3519 = vmatprep.subr.bf16.mxu0 %v5009_v19  ;;  %v6104_v18 = vcombine.low %v6046_v34, %v6046_v34  ;;  %v5089_v19 = vld [vmem:[%s5912_s4 + $0x800] ss:$16 sps:$4 sm:$0xff]   ;;  %v5112_v34 = vld [vmem:[%s5912_s4 + $0xa64] ss:$16 sps:$4 sm:$0xff]  }
  0x93   : > { %3560 = vmatprep.subr.bf16.mxu1 %v5012_v20  ;;  %v5092_v20 = vld [vmem:[%s5912_s4 + $0xa00] ss:$16 sps:$4 sm:$0xff]  }
  0x95   : > { %3520 = vmatpush1.bf16.msra.mxu0 %v5007_v21  ;;  %v5097_v21 = vld [vmem:[%s5912_s4 + $0x824] ss:$16 sps:$4 sm:$0xff]  }
  0x96   : > { %3561 = vmatpush1.bf16.msra.mxu1 %v5010_v22  ;;  %3521 = vmatprep.subr.bf16.mxu0 %v5015_v23  ;;  %v5100_v22 = vld [vmem:[%s5912_s4 + $0xa24] ss:$16 sps:$4 sm:$0xff]  }
  0x97   : > { %3562 = vmatprep.subr.bf16.mxu1 %v5018_v24  ;;  %v6111_v23 = vld [vmem:[%s5925_s29 + $0x20] sm:$0xff]  ;;  %v6114_v24 = vld [vmem:[%s5925_s29 + $0x28] sm:$0xff] }
  0x99   : > { %3522 = vmatpush1.bf16.msra.mxu0 %v5013_v25  ;;  %v6118_v25 = vcombine.high %v6111_v23, %v6111_v23 }
  0x9a   : > { %3563 = vmatpush1.bf16.msra.mxu1 %v5016_v26  ;;  %3523 = vmatprep.subr.bf16.mxu0 %v5021_v27  ;;  %v6122_v26 = vcombine.high %v6114_v24, %v6114_v24  ;;  %v5095_v27 = vld [vmem:[%s5912_s4 + $0x820] ss:$16 sps:$4 sm:$0xff]  }
  0x9b   : > { %3564 = vmatprep.subr.bf16.mxu1 %v5024_v28  ;;  %v5098_v28 = vld [vmem:[%s5912_s4 + $0xa20] ss:$16 sps:$4 sm:$0xff]  }
  0x9d   : > { %3524 = vmatpush1.bf16.msra.mxu0 %v5019_v29  ;;  %v5103_v29 = vld [vmem:[%s5912_s4 + $0x844] ss:$16 sps:$4 sm:$0xff]  }
  0x9e   : > { %3565 = vmatpush1.bf16.msra.mxu1 %v5022_v30  ;;  %3525 = vmatprep.subr.bf16.mxu0 %v5027_v31  ;;  %v5106_v30 = vld [vmem:[%s5912_s4 + $0xa44] ss:$16 sps:$4 sm:$0xff]   ;;  %v5101_v31 = vld [vmem:[%s5912_s4 + $0x840] ss:$16 sps:$4 sm:$0xff]  }
  0x9f   : > { %3566 = vmatprep.subr.bf16.mxu1 %v5030_v32  ;;  %v5104_v32 = vld [vmem:[%s5912_s4 + $0xa40] ss:$16 sps:$4 sm:$0xff]  }
  0xa1   : > { %3526 = vmatpush1.bf16.msra.mxu0 %v5025_v35  ;;  %v5107_v35 = vld [vmem:[%s5912_s4 + $0x860] ss:$16 sps:$4 sm:$0xff]  }
  0xa2   : > { %3567 = vmatpush1.bf16.msra.mxu1 %v5028_v36  ;;  %3527 = vmatprep.subr.bf16.mxu0 %v5033_v39  ;;  %v5110_v36 = vld [vmem:[%s5912_s4 + $0xa60] ss:$16 sps:$4 sm:$0xff]   ;;  %v5115_v39 = vld [vmem:[%s5912_s4 + $0x884] ss:$16 sps:$4 sm:$0xff]  }
  0xa3   : > { %3568 = vmatprep.subr.bf16.mxu1 %v5036_v40  ;;  %v5118_v40 = vld [vmem:[%s5912_s4 + $0xa84] ss:$16 sps:$4 sm:$0xff]  }
  0xa5   : > { %3528 = vmatpush1.bf16.msra.mxu0 %v5031_v41  ;;  %v5113_v41 = vld [vmem:[%s5912_s4 + $0x880] ss:$16 sps:$4 sm:$0xff]  }
  0xa6   : > { %3569 = vmatpush1.bf16.msra.mxu1 %v5034_v42  ;;  %3529 = vmatprep.subr.bf16.mxu0 %v5039_v43  ;;  %v5116_v42 = vld [vmem:[%s5912_s4 + $0xa80] ss:$16 sps:$4 sm:$0xff]   ;;  %v5121_v43 = vld [vmem:[%s5912_s4 + $0x8a4] ss:$16 sps:$4 sm:$0xff]  }
  0xa7   : > { %3570 = vmatprep.subr.bf16.mxu1 %v5042_v44  ;;  %v5124_v44 = vld [vmem:[%s5912_s4 + $0xaa4] ss:$16 sps:$4 sm:$0xff]  }
  0xa9   : > { %3530 = vmatpush1.bf16.msra.mxu0 %v5037_v45  ;;  %v5119_v45 = vld [vmem:[%s5912_s4 + $0x8a0] ss:$16 sps:$4 sm:$0xff]  }
  0xaa   : > { %3571 = vmatpush1.bf16.msra.mxu1 %v5040_v46  ;;  %3531 = vmatprep.subr.bf16.mxu0 %v5045_v47  ;;  %v5122_v46 = vld [vmem:[%s5912_s4 + $0xaa0] ss:$16 sps:$4 sm:$0xff]   ;;  %v5127_v47 = vld [vmem:[%s5912_s4 + $0x8c4] ss:$16 sps:$4 sm:$0xff]  }
  0xab   : > { %3572 = vmatprep.subr.bf16.mxu1 %v5048_v49  ;;  %v5130_v49 = vld [vmem:[%s5912_s4 + $0xac4] ss:$16 sps:$4 sm:$0xff]  }
  0xad   : > { %3532 = vmatpush1.bf16.msra.mxu0 %v5043_v50  ;;  %v5125_v50 = vld [vmem:[%s5912_s4 + $0x8c0] ss:$16 sps:$4 sm:$0xff]  }
  0xae   : > { %3573 = vmatpush1.bf16.msra.mxu1 %v5046_v51  ;;  %3533 = vmatprep.subr.bf16.mxu0 %v5051_v53  ;;  %v5128_v51 = vld [vmem:[%s5912_s4 + $0xac0] ss:$16 sps:$4 sm:$0xff]   ;;  %v5133_v53 = vld [vmem:[%s5912_s4 + $0x8e4] ss:$16 sps:$4 sm:$0xff]  }
  0xaf   : > { %3574 = vmatprep.subr.bf16.mxu1 %v5054_v54  ;;  %v5136_v54 = vld [vmem:[%s5912_s4 + $0xae4] ss:$16 sps:$4 sm:$0xff]  }
  0xb1   : > { %3534 = vmatpush1.bf16.msra.mxu0 %v5049_v55  ;;  %v5131_v55 = vld [vmem:[%s5912_s4 + $0x8e0] ss:$16 sps:$4 sm:$0xff]  }
  0xb2   : > { %3575 = vmatpush1.bf16.msra.mxu1 %v5052_v56  ;;  %3535 = vmatprep.subr.bf16.mxu0 %v5057_v57  ;;  %v5134_v56 = vld [vmem:[%s5912_s4 + $0xae0] ss:$16 sps:$4 sm:$0xff]   ;;  %v5139_v57 = vld [vmem:[%s5912_s4 + $0x904] ss:$16 sps:$4 sm:$0xff]  }
  0xb3   : > { %3576 = vmatprep.subr.bf16.mxu1 %v5060_v58  ;;  %v5142_v58 = vld [vmem:[%s5912_s4 + $0xb04] ss:$16 sps:$4 sm:$0xff]  }
  0xb5   : > { %3536 = vmatpush1.bf16.msra.mxu0 %v5055_v59  ;;  %v5137_v59 = vld [vmem:[%s5912_s4 + $0x900] ss:$16 sps:$4 sm:$0xff]  }
  0xb6   : > { %3577 = vmatpush1.bf16.msra.mxu1 %v5058_v60  ;;  %3537 = vmatprep.subr.bf16.mxu0 %v5063_v61  ;;  %v5140_v60 = vld [vmem:[%s5912_s4 + $0xb00] ss:$16 sps:$4 sm:$0xff]   ;;  %v5145_v61 = vld [vmem:[%s5912_s4 + $0x924] ss:$16 sps:$4 sm:$0xff]  }
  0xb7   : > { %3578 = vmatprep.subr.bf16.mxu1 %v5066_v62  ;;  %v5148_v62 = vld [vmem:[%s5912_s4 + $0xb24] ss:$16 sps:$4 sm:$0xff]  }
  0xb9   : > { %3538 = vmatpush1.bf16.msra.mxu0 %v5061_v63  ;;  %v5143_v63 = vld [vmem:[%s5912_s4 + $0x920] ss:$16 sps:$4 sm:$0xff]  }
  0xba   : > { %3579 = vmatpush1.bf16.msra.mxu1 %v5064_v0  ;;  %3539 = vmatprep.subr.bf16.mxu0 %v5069_v1  ;;  %v5146_v0 = vld [vmem:[%s5912_s4 + $0xb20] ss:$16 sps:$4 sm:$0xff]   ;;  %v5151_v1 = vld [vmem:[%s5912_s4 + $0x944] ss:$16 sps:$4 sm:$0xff]  }
  0xbb   : > { %3580 = vmatprep.subr.bf16.mxu1 %v5072_v2  ;;  %v5154_v2 = vld [vmem:[%s5912_s4 + $0xb44] ss:$16 sps:$4 sm:$0xff]  }
  0xbd   : > { %3540 = vmatpush1.bf16.msra.mxu0 %v5067_v3  ;;  %v5149_v3 = vld [vmem:[%s5912_s4 + $0x940] ss:$16 sps:$4 sm:$0xff]  }
  0xbe   : > { %3581 = vmatpush1.bf16.msra.mxu1 %v5070_v4  ;;  %3541 = vmatprep.subr.bf16.mxu0 %v5075_v5  ;;  %v5152_v4 = vld [vmem:[%s5912_s4 + $0xb40] ss:$16 sps:$4 sm:$0xff]   ;;  %v5157_v5 = vld [vmem:[%s5912_s4 + $0x964] ss:$16 sps:$4 sm:$0xff]  }
  0xbf   : > { %3582 = vmatprep.subr.bf16.mxu1 %v5078_v6  ;;  %v5160_v6 = vld [vmem:[%s5912_s4 + $0xb64] ss:$16 sps:$4 sm:$0xff]  }
  0xc1   : > { %3542 = vmatpush1.bf16.msra.mxu0 %v5073_v9  ;;  %v5155_v9 = vld [vmem:[%s5912_s4 + $0x960] ss:$16 sps:$4 sm:$0xff]  }
  0xc2   : > { %3583 = vmatpush1.bf16.msra.mxu1 %v5076_v10  ;;  %3543 = vmatprep.subr.bf16.mxu0 %v5081_v11  ;;  %v5158_v10 = vld [vmem:[%s5912_s4 + $0xb60] ss:$16 sps:$4 sm:$0xff]   ;;  %v5163_v11 = vld [vmem:[%s5912_s4 + $0x984] ss:$16 sps:$4 sm:$0xff]  }
  0xc3   : > { %3584 = vmatprep.subr.bf16.mxu1 %v5084_v12  ;;  %v5166_v12 = vld [vmem:[%s5912_s4 + $0xb84] ss:$16 sps:$4 sm:$0xff]  }
  0xc5   : > { %3544 = vmatpush1.bf16.msra.mxu0 %v5079_v13  ;;  %v5161_v13 = vld [vmem:[%s5912_s4 + $0x980] ss:$16 sps:$4 sm:$0xff]  }
  0xc6   : > { %3585 = vmatpush1.bf16.msra.mxu1 %v5082_v14  ;;  %3595 = vmatprep.subr.bf16.mxu0 %v5091_v15  ;;  %v5164_v14 = vld [vmem:[%s5912_s4 + $0xb80] ss:$16 sps:$4 sm:$0xff]   ;;  %v5169_v15 = vld [vmem:[%s5912_s4 + $0x9a4] ss:$16 sps:$4 sm:$0xff]  }
  0xc7   : > { %3636 = vmatprep.subr.bf16.mxu1 %v5094_v16  ;;  %v5172_v16 = vld [vmem:[%s5912_s4 + $0xba4] ss:$16 sps:$4 sm:$0xff]  }
  0xc8   : > { %3546 = vmatmul.mubr.bf16.vlgmr.msra.gmra.mrb[4].mxu0 %v6100_v17 }
  0xc9   : > { %3587 = vmatmul.mubr.bf16.vlgmr.msra.gmra.mrb[4].mxu1 %v6104_v18  ;;  %3596 = vmatpush1.bf16.msra.mxu0 %v5089_v19  ;;  %v5167_v19 = vld [vmem:[%s5912_s4 + $0x9a0] ss:$16 sps:$4 sm:$0xff]  }
  0xca   : > { %3637 = vmatpush1.bf16.msra.mxu1 %v5092_v20  ;;  %3597 = vmatprep.subr.bf16.mxu0 %v5097_v21  ;;  %v5170_v20 = vld [vmem:[%s5912_s4 + $0xba0] ss:$16 sps:$4 sm:$0xff]   ;;  %v5175_v21 = vld [vmem:[%s5912_s4 + $0x9c4] ss:$16 sps:$4 sm:$0xff]  }
  0xcb   : > { %3638 = vmatprep.subr.bf16.mxu1 %v5100_v22  ;;  %3627 = vmatprep.mubr.bf16.mxu0 %v6118_v25  ;;  %v5178_v22 = vld [vmem:[%s5912_s4 + $0xbc4] ss:$16 sps:$4 sm:$0xff]  }
  0xcc   : > { %3668 = vmatprep.mubr.bf16.mxu1 %v6122_v26 }
  0xcd   : > { %3598 = vmatpush1.bf16.msra.mxu0 %v5095_v27  ;;  %v5173_v27 = vld [vmem:[%s5912_s4 + $0x9c0] ss:$16 sps:$4 sm:$0xff]  }
  0xce   : > { %3639 = vmatpush1.bf16.msra.mxu1 %v5098_v28  ;;  %3599 = vmatprep.subr.bf16.mxu0 %v5103_v29  ;;  %v5176_v28 = vld [vmem:[%s5912_s4 + $0xbc0] ss:$16 sps:$4 sm:$0xff]   ;;  %v5181_v29 = vld [vmem:[%s5912_s4 + $0x9e4] ss:$16 sps:$4 sm:$0xff]  }
  0xcf   : > { %3640 = vmatprep.subr.bf16.mxu1 %v5106_v30  ;;  %v5184_v30 = vld [vmem:[%s5912_s4 + $0xbe4] ss:$16 sps:$4 sm:$0xff]  }
  0xd1   : > { %3600 = vmatpush1.bf16.msra.mxu0 %v5101_v31  ;;  %v5179_v31 = vld [vmem:[%s5912_s4 + $0x9e0] ss:$16 sps:$4 sm:$0xff]  }
  0xd2   : > { %3641 = vmatpush1.bf16.msra.mxu1 %v5104_v32  ;;  %3601 = vmatprep.subr.bf16.mxu0 %v5109_v33  ;;  %v5182_v32 = vld [vmem:[%s5912_s4 + $0xbe0] ss:$16 sps:$4 sm:$0xff]   ;;  %v5191_v33 = vld [vmem:[%s5912_s4 + $0xc04] ss:$16 sps:$4 sm:$0xff]  }
  0xd3   : > { %3642 = vmatprep.subr.bf16.mxu1 %v5112_v34  ;;  %v5194_v34 = vld [vmem:[%s5912_s4 + $0xe04] ss:$16 sps:$4 sm:$0xff]  }
  0xd5   : > { %3602 = vmatpush1.bf16.msra.mxu0 %v5107_v35  ;;  %v5189_v35 = vld [vmem:[%s5912_s4 + $0xc00] ss:$16 sps:$4 sm:$0xff]  }
  0xd6   : > { %3643 = vmatpush1.bf16.msra.mxu1 %v5110_v36  ;;  %3603 = vmatprep.subr.bf16.mxu0 %v5115_v39  ;;  %v5192_v36 = vld [vmem:[%s5912_s4 + $0xe00] ss:$16 sps:$4 sm:$0xff]   ;;  %v6192_v39 = vcombine.low %v6111_v23, %v6111_v23 }
  0xd7   : > { %3644 = vmatprep.subr.bf16.mxu1 %v5118_v40  ;;  %v6196_v40 = vcombine.low %v6114_v24, %v6114_v24 }
  0xd9   : > { %3604 = vmatpush1.bf16.msra.mxu0 %v5113_v41  ;;  %v6199_v41 = vld [vmem:[%s5925_s29 + $0x30] sm:$0xff] }
  0xda   : > { %3645 = vmatpush1.bf16.msra.mxu1 %v5116_v42  ;;  %3605 = vmatprep.subr.bf16.mxu0 %v5121_v43  ;;  %v6202_v42 = vld [vmem:[%s5925_s29 + $0x38] sm:$0xff]  ;;  %v5197_v43 = vld [vmem:[%s5912_s4 + $0xc24] ss:$16 sps:$4 sm:$0xff]   ;;  %v6208_v23 = vcombine.high %v6199_v41, %v6199_v41 }
  0xdb   : > { %3646 = vmatprep.subr.bf16.mxu1 %v5124_v44  ;;  %v5200_v44 = vld [vmem:[%s5912_s4 + $0xe24] ss:$16 sps:$4 sm:$0xff]   ;;  %v6212_v24 = vcombine.high %v6202_v42, %v6202_v42 }
  0xdd   : > { %3606 = vmatpush1.bf16.msra.mxu0 %v5119_v45  ;;  %v5195_v45 = vld [vmem:[%s5912_s4 + $0xc20] ss:$16 sps:$4 sm:$0xff]  }
  0xde   : > { %3647 = vmatpush1.bf16.msra.mxu1 %v5122_v46  ;;  %3607 = vmatprep.subr.bf16.mxu0 %v5127_v47  ;;  %v5198_v46 = vld [vmem:[%s5912_s4 + $0xe20] ss:$16 sps:$4 sm:$0xff]   ;;  %v5203_v47 = vld [vmem:[%s5912_s4 + $0xc44] ss:$16 sps:$4 sm:$0xff]  }
  0xdf   : > { %3648 = vmatprep.subr.bf16.mxu1 %v5130_v49  ;;  %v5206_v49 = vld [vmem:[%s5912_s4 + $0xe44] ss:$16 sps:$4 sm:$0xff]  }
  0xe1   : > { %3608 = vmatpush1.bf16.msra.mxu0 %v5125_v50  ;;  %v5201_v50 = vld [vmem:[%s5912_s4 + $0xc40] ss:$16 sps:$4 sm:$0xff]  }
  0xe2   : > { %3649 = vmatpush1.bf16.msra.mxu1 %v5128_v51  ;;  %3609 = vmatprep.subr.bf16.mxu0 %v5133_v53  ;;  %v5204_v51 = vld [vmem:[%s5912_s4 + $0xe40] ss:$16 sps:$4 sm:$0xff]   ;;  %v5209_v53 = vld [vmem:[%s5912_s4 + $0xc64] ss:$16 sps:$4 sm:$0xff]  }
  0xe3   : > { %3650 = vmatprep.subr.bf16.mxu1 %v5136_v54  ;;  %v5212_v54 = vld [vmem:[%s5912_s4 + $0xe64] ss:$16 sps:$4 sm:$0xff]  }
  0xe5   : > { %3610 = vmatpush1.bf16.msra.mxu0 %v5131_v55  ;;  %v5207_v55 = vld [vmem:[%s5912_s4 + $0xc60] ss:$16 sps:$4 sm:$0xff]  }
  0xe6   : > { %3651 = vmatpush1.bf16.msra.mxu1 %v5134_v56  ;;  %3611 = vmatprep.subr.bf16.mxu0 %v5139_v57  ;;  %v5210_v56 = vld [vmem:[%s5912_s4 + $0xe60] ss:$16 sps:$4 sm:$0xff]   ;;  %v5215_v57 = vld [vmem:[%s5912_s4 + $0xc84] ss:$16 sps:$4 sm:$0xff]  }
  0xe7   : > { %3652 = vmatprep.subr.bf16.mxu1 %v5142_v58  ;;  %v5218_v58 = vld [vmem:[%s5912_s4 + $0xe84] ss:$16 sps:$4 sm:$0xff]  }
  0xe9   : > { %3612 = vmatpush1.bf16.msra.mxu0 %v5137_v59  ;;  %v5213_v59 = vld [vmem:[%s5912_s4 + $0xc80] ss:$16 sps:$4 sm:$0xff]  }
  0xea   : > { %3653 = vmatpush1.bf16.msra.mxu1 %v5140_v60  ;;  %3613 = vmatprep.subr.bf16.mxu0 %v5145_v61  ;;  %v5216_v60 = vld [vmem:[%s5912_s4 + $0xe80] ss:$16 sps:$4 sm:$0xff]   ;;  %v5221_v61 = vld [vmem:[%s5912_s4 + $0xca4] ss:$16 sps:$4 sm:$0xff]  }
  0xeb   : > { %3654 = vmatprep.subr.bf16.mxu1 %v5148_v62  ;;  %v5224_v62 = vld [vmem:[%s5912_s4 + $0xea4] ss:$16 sps:$4 sm:$0xff]  }
  0xed   : > { %3614 = vmatpush1.bf16.msra.mxu0 %v5143_v63  ;;  %v5219_v63 = vld [vmem:[%s5912_s4 + $0xca0] ss:$16 sps:$4 sm:$0xff]  }
  0xee   : > { %3655 = vmatpush1.bf16.msra.mxu1 %v5146_v0  ;;  %3615 = vmatprep.subr.bf16.mxu0 %v5151_v1  ;;  %v5222_v0 = vld [vmem:[%s5912_s4 + $0xea0] ss:$16 sps:$4 sm:$0xff]   ;;  %v5227_v1 = vld [vmem:[%s5912_s4 + $0xcc4] ss:$16 sps:$4 sm:$0xff]  }
  0xef   : > { %3656 = vmatprep.subr.bf16.mxu1 %v5154_v2  ;;  %v5230_v2 = vld [vmem:[%s5912_s4 + $0xec4] ss:$16 sps:$4 sm:$0xff]  }
  0xf1   : > { %3616 = vmatpush1.bf16.msra.mxu0 %v5149_v3  ;;  %v5225_v3 = vld [vmem:[%s5912_s4 + $0xcc0] ss:$16 sps:$4 sm:$0xff]  }
  0xf2   : > { %3657 = vmatpush1.bf16.msra.mxu1 %v5152_v4  ;;  %3617 = vmatprep.subr.bf16.mxu0 %v5157_v5  ;;  %v5228_v4 = vld [vmem:[%s5912_s4 + $0xec0] ss:$16 sps:$4 sm:$0xff]   ;;  %v5233_v5 = vld [vmem:[%s5912_s4 + $0xce4] ss:$16 sps:$4 sm:$0xff]  }
  0xf3   : > { %3658 = vmatprep.subr.bf16.mxu1 %v5160_v6  ;;  %v5236_v6 = vld [vmem:[%s5912_s4 + $0xee4] ss:$16 sps:$4 sm:$0xff]  }
  0xf5   : > { %3618 = vmatpush1.bf16.msra.mxu0 %v5155_v9  ;;  %v5231_v9 = vld [vmem:[%s5912_s4 + $0xce0] ss:$16 sps:$4 sm:$0xff]  }
  0xf6   : > { %3659 = vmatpush1.bf16.msra.mxu1 %v5158_v10  ;;  %3619 = vmatprep.subr.bf16.mxu0 %v5163_v11  ;;  %v5234_v10 = vld [vmem:[%s5912_s4 + $0xee0] ss:$16 sps:$4 sm:$0xff]   ;;  %v5239_v11 = vld [vmem:[%s5912_s4 + $0xd04] ss:$16 sps:$4 sm:$0xff]  }
  0xf7   : > { %3660 = vmatprep.subr.bf16.mxu1 %v5166_v12  ;;  %v5242_v12 = vld [vmem:[%s5912_s4 + $0xf04] ss:$16 sps:$4 sm:$0xff]  }
  0xf9   : > { %3620 = vmatpush1.bf16.msra.mxu0 %v5161_v13  ;;  %v5237_v13 = vld [vmem:[%s5912_s4 + $0xd00] ss:$16 sps:$4 sm:$0xff]  }
  0xfa   : > { %3661 = vmatpush1.bf16.msra.mxu1 %v5164_v14  ;;  %3621 = vmatprep.subr.bf16.mxu0 %v5169_v15  ;;  %v5240_v14 = vld [vmem:[%s5912_s4 + $0xf00] ss:$16 sps:$4 sm:$0xff]   ;;  %v5245_v15 = vld [vmem:[%s5912_s4 + $0xd24] ss:$16 sps:$4 sm:$0xff]  }
  0xfb   : > { %3662 = vmatprep.subr.bf16.mxu1 %v5172_v16  ;;  %v5248_v16 = vld [vmem:[%s5912_s4 + $0xf24] ss:$16 sps:$4 sm:$0xff]  }
  0xfd   : > { %3622 = vmatpush1.bf16.msra.mxu0 %v5167_v19  ;;  %v5243_v19 = vld [vmem:[%s5912_s4 + $0xd20] ss:$16 sps:$4 sm:$0xff]  }
  0xfe   : > { %3663 = vmatpush1.bf16.msra.mxu1 %v5170_v20  ;;  %3623 = vmatprep.subr.bf16.mxu0 %v5175_v21  ;;  %v5246_v20 = vld [vmem:[%s5912_s4 + $0xf20] ss:$16 sps:$4 sm:$0xff]   ;;  %v5251_v21 = vld [vmem:[%s5912_s4 + $0xd44] ss:$16 sps:$4 sm:$0xff]  }
  0xff   : > { %3664 = vmatprep.subr.bf16.mxu1 %v5178_v22  ;;  %v5254_v22 = vld [vmem:[%s5912_s4 + $0xf44] ss:$16 sps:$4 sm:$0xff]  }
 0x101   : > { %3624 = vmatpush1.bf16.msra.mxu0 %v5173_v27  ;;  %v5249_v27 = vld [vmem:[%s5912_s4 + $0xd40] ss:$16 sps:$4 sm:$0xff]  }
 0x102   : > { %3665 = vmatpush1.bf16.msra.mxu1 %v5176_v28  ;;  %3625 = vmatprep.subr.bf16.mxu0 %v5181_v29  ;;  %v5252_v28 = vld [vmem:[%s5912_s4 + $0xf40] ss:$16 sps:$4 sm:$0xff]   ;;  %v5257_v29 = vld [vmem:[%s5912_s4 + $0xd64] ss:$16 sps:$4 sm:$0xff]  }
 0x103   : > { %3666 = vmatprep.subr.bf16.mxu1 %v5184_v30  ;;  %v5260_v30 = vld [vmem:[%s5912_s4 + $0xf64] ss:$16 sps:$4 sm:$0xff]  }
 0x105   : > { %3626 = vmatpush1.bf16.msra.mxu0 %v5179_v31  ;;  %v5255_v31 = vld [vmem:[%s5912_s4 + $0xd60] ss:$16 sps:$4 sm:$0xff]  }
 0x106   : > { %3667 = vmatpush1.bf16.msra.mxu1 %v5182_v32  ;;  %3677 = vmatprep.subr.bf16.mxu0 %v5191_v33  ;;  %v5258_v32 = vld [vmem:[%s5912_s4 + $0xf60] ss:$16 sps:$4 sm:$0xff]   ;;  %v5263_v33 = vld [vmem:[%s5912_s4 + $0xd84] ss:$16 sps:$4 sm:$0xff]  }
 0x107   : > { %3718 = vmatprep.subr.bf16.mxu1 %v5194_v34  ;;  %v5266_v34 = vld [vmem:[%s5912_s4 + $0xf84] ss:$16 sps:$4 sm:$0xff]  }
 0x108   : > { %3628 = vmatmul.mubr.bf16.vlgmr.msra.gmra.mrb[8].mxu0 %v6192_v39 }
 0x109   : > { %3669 = vmatmul.mubr.bf16.vlgmr.msra.gmra.mrb[8].mxu1 %v6196_v40  ;;  %3678 = vmatpush1.bf16.msra.mxu0 %v5189_v35  ;;  %v5261_v35 = vld [vmem:[%s5912_s4 + $0xd80] ss:$16 sps:$4 sm:$0xff]  }
 0x10a   : > { %3719 = vmatpush1.bf16.msra.mxu1 %v5192_v36  ;;  %3679 = vmatprep.subr.bf16.mxu0 %v5197_v43  ;;  %v5264_v36 = vld [vmem:[%s5912_s4 + $0xf80] ss:$16 sps:$4 sm:$0xff]   ;;  %v5269_v43 = vld [vmem:[%s5912_s4 + $0xda4] ss:$16 sps:$4 sm:$0xff]  }
 0x10b   : > { %3720 = vmatprep.subr.bf16.mxu1 %v5200_v44  ;;  %3709 = vmatprep.mubr.bf16.mxu0 %v6208_v23  ;;  %v5272_v44 = vld [vmem:[%s5912_s4 + $0xfa4] ss:$16 sps:$4 sm:$0xff]  }
 0x10c   : > { %3750 = vmatprep.mubr.bf16.mxu1 %v6212_v24 }
 0x10d   : > { %3680 = vmatpush1.bf16.msra.mxu0 %v5195_v45  ;;  %v5267_v45 = vld [vmem:[%s5912_s4 + $0xda0] ss:$16 sps:$4 sm:$0xff]  }
 0x10e   : > { %3721 = vmatpush1.bf16.msra.mxu1 %v5198_v46  ;;  %3681 = vmatprep.subr.bf16.mxu0 %v5203_v47  ;;  %v5270_v46 = vld [vmem:[%s5912_s4 + $0xfa0] ss:$16 sps:$4 sm:$0xff]   ;;  %v5275_v47 = vld [vmem:[%s5912_s4 + $0xdc4] ss:$16 sps:$4 sm:$0xff]  }
 0x10f   : > { %3722 = vmatprep.subr.bf16.mxu1 %v5206_v49  ;;  %v5278_v49 = vld [vmem:[%s5912_s4 + $0xfc4] ss:$16 sps:$4 sm:$0xff]  }
 0x111   : > { %3682 = vmatpush1.bf16.msra.mxu0 %v5201_v50  ;;  %v5273_v50 = vld [vmem:[%s5912_s4 + $0xdc0] ss:$16 sps:$4 sm:$0xff]  }
 0x112   : > { %3723 = vmatpush1.bf16.msra.mxu1 %v5204_v51  ;;  %3683 = vmatprep.subr.bf16.mxu0 %v5209_v53  ;;  %v5276_v51 = vld [vmem:[%s5912_s4 + $0xfc0] ss:$16 sps:$4 sm:$0xff]   ;;  %v5281_v53 = vld [vmem:[%s5912_s4 + $0xde4] ss:$16 sps:$4 sm:$0xff]  }
 0x113   : > { %3724 = vmatprep.subr.bf16.mxu1 %v5212_v54  ;;  %v5284_v54 = vld [vmem:[%s5912_s4 + $0xfe4] ss:$16 sps:$4 sm:$0xff]  }
 0x115   : > { %3684 = vmatpush1.bf16.msra.mxu0 %v5207_v55  ;;  %v5279_v55 = vld [vmem:[%s5912_s4 + $0xde0] ss:$16 sps:$4 sm:$0xff]  }
 0x116   : > { %3725 = vmatpush1.bf16.msra.mxu1 %v5210_v56  ;;  %3685 = vmatprep.subr.bf16.mxu0 %v5215_v57  ;;  %v5282_v56 = vld [vmem:[%s5912_s4 + $0xfe0] ss:$16 sps:$4 sm:$0xff]   ;;  %v5291_v57 = vld [vmem:[%s5912_s4 + $0xc] ss:$16 sps:$4 sm:$0xff]  }
 0x117   : > { %3726 = vmatprep.subr.bf16.mxu1 %v5218_v58  ;;  %v5294_v58 = vld [vmem:[%s5912_s4 + $0x20c] ss:$16 sps:$4 sm:$0xff]  }
 0x119   : > { %3686 = vmatpush1.bf16.msra.mxu0 %v5213_v59  ;;  %v6280_v59 = vcombine.low %v6199_v41, %v6199_v41  ;;  %v5295_v41 = vld [vmem:[%s5912_s4 + $0x28] ss:$16 sps:$4 sm:$0xff]  }
 0x11a   : > { %3727 = vmatpush1.bf16.msra.mxu1 %v5216_v60  ;;  %3687 = vmatprep.subr.bf16.mxu0 %v5221_v61  ;;  %v6284_v60 = vcombine.low %v6202_v42, %v6202_v42  ;;  %v5289_v61 = vld [vmem:[%s5912_s4 + $0x8] ss:$16 sps:$4 sm:$0xff]   ;;  %v5303_v42 = vld [vmem:[%s5912_s4 + $0x4c] ss:$16 sps:$4 sm:$0xff]  }
 0x11b   : > { %3728 = vmatprep.subr.bf16.mxu1 %v5224_v62  ;;  %v5292_v62 = vld [vmem:[%s5912_s4 + $0x208] ss:$16 sps:$4 sm:$0xff]  }
 0x11d   : > { %3688 = vmatpush1.bf16.msra.mxu0 %v5219_v63  ;;  %v5297_v63 = vld [vmem:[%s5912_s4 + $0x2c] ss:$16 sps:$4 sm:$0xff]  }
 0x11e   : > { %3729 = vmatpush1.bf16.msra.mxu1 %v5222_v0  ;;  %3689 = vmatprep.subr.bf16.mxu0 %v5227_v1  ;;  %v5300_v0 = vld [vmem:[%s5912_s4 + $0x22c] ss:$16 sps:$4 sm:$0xff]   ;;  %v5298_v1 = vld [vmem:[%s5912_s4 + $0x228] ss:$16 sps:$4 sm:$0xff]  }
 0x11f   : > { %3730 = vmatprep.subr.bf16.mxu1 %v5230_v2  ;;  %v5306_v2 = vld [vmem:[%s5912_s4 + $0x24c] ss:$16 sps:$4 sm:$0xff]  }
 0x121   : > { %3690 = vmatpush1.bf16.msra.mxu0 %v5225_v3  ;;  %v5301_v3 = vld [vmem:[%s5912_s4 + $0x48] ss:$16 sps:$4 sm:$0xff]  }
 0x122   : > { %3731 = vmatpush1.bf16.msra.mxu1 %v5228_v4  ;;  %3691 = vmatprep.subr.bf16.mxu0 %v5233_v5  ;;  %v5304_v4 = vld [vmem:[%s5912_s4 + $0x248] ss:$16 sps:$4 sm:$0xff]   ;;  %v5309_v5 = vld [vmem:[%s5912_s4 + $0x6c] ss:$16 sps:$4 sm:$0xff]  }
 0x123   : > { %3732 = vmatprep.subr.bf16.mxu1 %v5236_v6  ;;  %v5312_v6 = vld [vmem:[%s5912_s4 + $0x26c] ss:$16 sps:$4 sm:$0xff]  }
 0x125   : > { %3692 = vmatpush1.bf16.msra.mxu0 %v5231_v9  ;;  %v5310_v9 = vld [vmem:[%s5912_s4 + $0x268] ss:$16 sps:$4 sm:$0xff]  }
 0x126   : > { %3733 = vmatpush1.bf16.msra.mxu1 %v5234_v10  ;;  %3693 = vmatprep.subr.bf16.mxu0 %v5239_v11  ;;  %v5318_v10 = vld [vmem:[%s5912_s4 + $0x28c] ss:$16 sps:$4 sm:$0xff]   ;;  %v5313_v11 = vld [vmem:[%s5912_s4 + $0x88] ss:$16 sps:$4 sm:$0xff]  }
 0x127   : > { %3734 = vmatprep.subr.bf16.mxu1 %v5242_v12  ;;  %v5316_v12 = vld [vmem:[%s5912_s4 + $0x288] ss:$16 sps:$4 sm:$0xff]  }
 0x129   : > { %3694 = vmatpush1.bf16.msra.mxu0 %v5237_v13  ;;  %v5321_v13 = vld [vmem:[%s5912_s4 + $0xac] ss:$16 sps:$4 sm:$0xff]  }
 0x12a   : > { %3735 = vmatpush1.bf16.msra.mxu1 %v5240_v14  ;;  %3695 = vmatprep.subr.bf16.mxu0 %v5245_v15  ;;  %v5324_v14 = vld [vmem:[%s5912_s4 + $0x2ac] ss:$16 sps:$4 sm:$0xff]   ;;  %v5319_v15 = vld [vmem:[%s5912_s4 + $0xa8] ss:$16 sps:$4 sm:$0xff]  }
 0x12b   : > { %3736 = vmatprep.subr.bf16.mxu1 %v5248_v16  ;;  %v5322_v16 = vld [vmem:[%s5912_s4 + $0x2a8] ss:$16 sps:$4 sm:$0xff]  }
 0x12d   : > { %3696 = vmatpush1.bf16.msra.mxu0 %v5243_v19  ;;  %v5327_v19 = vld [vmem:[%s5912_s4 + $0xcc] ss:$16 sps:$4 sm:$0xff]  }
 0x12e   : > { %3737 = vmatpush1.bf16.msra.mxu1 %v5246_v20  ;;  %3697 = vmatprep.subr.bf16.mxu0 %v5251_v21  ;;  %v5330_v20 = vld [vmem:[%s5912_s4 + $0x2cc] ss:$16 sps:$4 sm:$0xff]  }
 0x12f   : > { %3738 = vmatprep.subr.bf16.mxu1 %v5254_v22 }
 0x131   : > { %3698 = vmatpush1.bf16.msra.mxu0 %v5249_v27  ;;  %v5325_v27 = vld [vmem:[%s5912_s4 + $0xc8] ss:$16 sps:$4 sm:$0xff]  }
 0x132   : > { %3739 = vmatpush1.bf16.msra.mxu1 %v5252_v28  ;;  %3699 = vmatprep.subr.bf16.mxu0 %v5257_v29  ;;  %v5328_v28 = vld [vmem:[%s5912_s4 + $0x2c8] ss:$16 sps:$4 sm:$0xff]  }
 0x133   : > { %3740 = vmatprep.subr.bf16.mxu1 %v5260_v30 }
 0x135   : > { %3700 = vmatpush1.bf16.msra.mxu0 %v5255_v31 }
 0x136   : > { %3741 = vmatpush1.bf16.msra.mxu1 %v5258_v32  ;;  %3701 = vmatprep.subr.bf16.mxu0 %v5263_v33 }
 0x137   : > { %3742 = vmatprep.subr.bf16.mxu1 %v5266_v34 }
 0x139   : > { %3702 = vmatpush1.bf16.msra.mxu0 %v5261_v35 }
 0x13a   : > { %3743 = vmatpush1.bf16.msra.mxu1 %v5264_v36  ;;  %3703 = vmatprep.subr.bf16.mxu0 %v5269_v43  ;;  %v5333_v43 = vld [vmem:[%s5912_s4 + $0xec] ss:$16 sps:$4 sm:$0xff]  }
 0x13b   : > { %3744 = vmatprep.subr.bf16.mxu1 %v5272_v44  ;;  %v5336_v44 = vld [vmem:[%s5912_s4 + $0x2ec] ss:$16 sps:$4 sm:$0xff]  }
 0x13d   : > { %3704 = vmatpush1.bf16.msra.mxu0 %v5267_v45  ;;  %v5331_v45 = vld [vmem:[%s5912_s4 + $0xe8] ss:$16 sps:$4 sm:$0xff]  }
 0x13e   : > { %3745 = vmatpush1.bf16.msra.mxu1 %v5270_v46  ;;  %3705 = vmatprep.subr.bf16.mxu0 %v5275_v47  ;;  %v5334_v46 = vld [vmem:[%s5912_s4 + $0x2e8] ss:$16 sps:$4 sm:$0xff]   ;;  %v5339_v47 = vld [vmem:[%s5912_s4 + $0x10c] ss:$16 sps:$4 sm:$0xff]  }
 0x13f   : > { %3746 = vmatprep.subr.bf16.mxu1 %v5278_v49  ;;  %v5342_v49 = vld [vmem:[%s5912_s4 + $0x30c] ss:$16 sps:$4 sm:$0xff]  }
 0x141   : > { %3706 = vmatpush1.bf16.msra.mxu0 %v5273_v50  ;;  %v5337_v50 = vld [vmem:[%s5912_s4 + $0x108] ss:$16 sps:$4 sm:$0xff]  }
 0x142   : > { %3747 = vmatpush1.bf16.msra.mxu1 %v5276_v51  ;;  %3707 = vmatprep.subr.bf16.mxu0 %v5281_v53  ;;  %v5340_v51 = vld [vmem:[%s5912_s4 + $0x308] ss:$16 sps:$4 sm:$0xff]   ;;  %v5345_v53 = vld [vmem:[%s5912_s4 + $0x12c] ss:$16 sps:$4 sm:$0xff]  }
 0x143   : > { %3748 = vmatprep.subr.bf16.mxu1 %v5284_v54  ;;  %v5348_v54 = vld [vmem:[%s5912_s4 + $0x32c] ss:$16 sps:$4 sm:$0xff]  }
 0x145   : > { %3708 = vmatpush1.bf16.msra.mxu0 %v5279_v55  ;;  %v5343_v55 = vld [vmem:[%s5912_s4 + $0x128] ss:$16 sps:$4 sm:$0xff]  }
 0x146   : > { %3749 = vmatpush1.bf16.msra.mxu1 %v5282_v56  ;;  %3759 = vmatprep.subr.bf16.mxu0 %v5291_v57  ;;  %v5346_v56 = vld [vmem:[%s5912_s4 + $0x328] ss:$16 sps:$4 sm:$0xff]   ;;  %v5351_v57 = vld [vmem:[%s5912_s4 + $0x14c] ss:$16 sps:$4 sm:$0xff]  }
 0x147   : > { %3800 = vmatprep.subr.bf16.mxu1 %v5294_v58  ;;  %v5354_v58 = vld [vmem:[%s5912_s4 + $0x34c] ss:$16 sps:$4 sm:$0xff]  }
 0x148   : > { %3710 = vmatmul.mubr.bf16.vlgmr.msra.gmra.mrb[12].mxu0 %v6280_v59 }
 0x149   : > { %3751 = vmatmul.mubr.bf16.vlgmr.msra.gmra.mrb[12].mxu1 %v6284_v60  ;;  %3760 = vmatpush1.bf16.msra.mxu0 %v5289_v61  ;;  %v5349_v61 = vld [vmem:[%s5912_s4 + $0x148] ss:$16 sps:$4 sm:$0xff]  }
 0x14a   : > { %3801 = vmatpush1.bf16.msra.mxu1 %v5292_v62  ;;  %3761 = vmatprep.subr.bf16.mxu0 %v5297_v63  ;;  %v5352_v62 = vld [vmem:[%s5912_s4 + $0x348] ss:$16 sps:$4 sm:$0xff]   ;;  %v5357_v63 = vld [vmem:[%s5912_s4 + $0x16c] ss:$16 sps:$4 sm:$0xff]  }
 0x14b   : > { %3802 = vmatprep.subr.bf16.mxu1 %v5300_v0  ;;  %3791 = vmatprep.mubr.bf16.mxu0 %v5985_v48  ;;  %v5307_v48 = vld [vmem:[%s5912_s4 + $0x68] ss:$16 sps:$4 sm:$0xff]   ;;  %v5360_v0 = vld [vmem:[%s5912_s4 + $0x36c] ss:$16 sps:$4 sm:$0xff]  }
 0x14c   : > { %3832 = vmatprep.mubr.bf16.mxu1 %v5990_v52  ;;  %v5315_v52 = vld [vmem:[%s5912_s4 + $0x8c] ss:$16 sps:$4 sm:$0xff]  }
 0x14d   : > { %3762 = vmatpush1.bf16.msra.mxu0 %v5295_v41  ;;  %v5355_v41 = vld [vmem:[%s5912_s4 + $0x168] ss:$16 sps:$4 sm:$0xff]  }
 0x14e   : > { %3803 = vmatpush1.bf16.msra.mxu1 %v5298_v1  ;;  %3763 = vmatprep.subr.bf16.mxu0 %v5303_v42  ;;  %v5358_v1 = vld [vmem:[%s5912_s4 + $0x368] ss:$16 sps:$4 sm:$0xff]   ;;  %v5363_v42 = vld [vmem:[%s5912_s4 + $0x18c] ss:$16 sps:$4 sm:$0xff]  }
 0x14f   : > { %3804 = vmatprep.subr.bf16.mxu1 %v5306_v2  ;;  %v5366_v2 = vld [vmem:[%s5912_s4 + $0x38c] ss:$16 sps:$4 sm:$0xff]  }
 0x151   : > { %3764 = vmatpush1.bf16.msra.mxu0 %v5301_v3  ;;  %v5361_v3 = vld [vmem:[%s5912_s4 + $0x188] ss:$16 sps:$4 sm:$0xff]  }
 0x152   : > { %3805 = vmatpush1.bf16.msra.mxu1 %v5304_v4  ;;  %3765 = vmatprep.subr.bf16.mxu0 %v5309_v5  ;;  %v5364_v4 = vld [vmem:[%s5912_s4 + $0x388] ss:$16 sps:$4 sm:$0xff]   ;;  %v5369_v5 = vld [vmem:[%s5912_s4 + $0x1ac] ss:$16 sps:$4 sm:$0xff]  }
 0x153   : > { %3806 = vmatprep.subr.bf16.mxu1 %v5312_v6  ;;  %v5372_v6 = vld [vmem:[%s5912_s4 + $0x3ac] ss:$16 sps:$4 sm:$0xff]  }
 0x155   : > { %3766 = vmatpush1.bf16.msra.mxu0 %v5307_v48  ;;  %v5367_v48 = vld [vmem:[%s5912_s4 + $0x1a8] ss:$16 sps:$4 sm:$0xff]  }
 0x156   : > { %3807 = vmatpush1.bf16.msra.mxu1 %v5310_v9  ;;  %3767 = vmatprep.subr.bf16.mxu0 %v5315_v52  ;;  %v5370_v9 = vld [vmem:[%s5912_s4 + $0x3a8] ss:$16 sps:$4 sm:$0xff]   ;;  %v5375_v52 = vld [vmem:[%s5912_s4 + $0x1cc] ss:$16 sps:$4 sm:$0xff]  }
 0x157   : > { %3808 = vmatprep.subr.bf16.mxu1 %v5318_v10  ;;  %v5378_v10 = vld [vmem:[%s5912_s4 + $0x3cc] ss:$16 sps:$4 sm:$0xff]  }
 0x159   : > { %3768 = vmatpush1.bf16.msra.mxu0 %v5313_v11  ;;  %v5373_v11 = vld [vmem:[%s5912_s4 + $0x1c8] ss:$16 sps:$4 sm:$0xff]  }
 0x15a   : > { %3809 = vmatpush1.bf16.msra.mxu1 %v5316_v12  ;;  %3769 = vmatprep.subr.bf16.mxu0 %v5321_v13  ;;  %v5376_v12 = vld [vmem:[%s5912_s4 + $0x3c8] ss:$16 sps:$4 sm:$0xff]   ;;  %v5381_v13 = vld [vmem:[%s5912_s4 + $0x1ec] ss:$16 sps:$4 sm:$0xff]  }
 0x15b   : > { %3810 = vmatprep.subr.bf16.mxu1 %v5324_v14  ;;  %v3465_v21 = vpop.f32.mrb[0].mxu0  ;;  %v5384_v14 = vld [vmem:[%s5912_s4 + $0x3ec] ss:$16 sps:$4 sm:$0xff]  }
 0x15c   : > { %v3506_v22 = vpop.f32.mrb[0].mxu1  ;;  %v3467_v30 = vpop.f32.mrb[1].mxu0 }
 0x15d   : > { %v6316_v29 = vadd.f32 %v3506_v22, %v3465_v21  ;;  %v3508_v31 = vpop.f32.mrb[1].mxu1  ;;  %v3469_v33 = vpop.f32.mrb[2].mxu0  ;;  %3770 = vmatpush1.bf16.msra.mxu0 %v5319_v15  ;;  %v5379_v15 = vld [vmem:[%s5912_s4 + $0x1e8] ss:$16 sps:$4 sm:$0xff]  }
 0x15e   : > { %v6318_v32 = vadd.f32 %v3508_v31, %v3467_v30  ;;  %v3510_v34 = vpop.f32.mrb[2].mxu1  ;;  %3811 = vmatpush1.bf16.msra.mxu1 %v5322_v16  ;;  %v3470_v35 = vpop.f32.mrb[3].mxu0  ;;  %3771 = vmatprep.subr.bf16.mxu0 %v5327_v19  ;;  %v5382_v16 = vld [vmem:[%s5912_s4 + $0x3e8] ss:$16 sps:$4 sm:$0xff]   ;;  %v5387_v19 = vld [vmem:[%s5912_s4 + $0x40c] ss:$16 sps:$4 sm:$0xff]  }
 0x15f   : > { %v3511_v36 = vpop.f32.mrb[3].mxu1  ;;  %3812 = vmatprep.subr.bf16.mxu1 %v5330_v20  ;;  %v5390_v20 = vld [vmem:[%s5912_s4 + $0x60c] ss:$16 sps:$4 sm:$0xff]   ;;  %v5385_v21 = vld [vmem:[%s5912_s4 + $0x408] ss:$16 sps:$4 sm:$0xff]  }
 0x160   : > { %v5388_v22 = vld [vmem:[%s5912_s4 + $0x608] ss:$16 sps:$4 sm:$0xff]   ;;  %v5399_v33 = vld [vmem:[%s5912_s4 + $0x44c] ss:$16 sps:$4 sm:$0xff]  }
 0x161   : > { %3772 = vmatpush1.bf16.msra.mxu0 %v5325_v27  ;;  %v5393_v27 = vld [vmem:[%s5912_s4 + $0x42c] ss:$16 sps:$4 sm:$0xff]   ;;  %v5391_v30 = vld [vmem:[%s5912_s4 + $0x428] ss:$16 sps:$4 sm:$0xff]  }
 0x162   : > { %3813 = vmatpush1.bf16.msra.mxu1 %v5328_v28  ;;  %3773 = vmatprep.subr.bf16.mxu0 %v5333_v43  ;;  %v5396_v28 = vld [vmem:[%s5912_s4 + $0x62c] ss:$16 sps:$4 sm:$0xff]   ;;  %v5394_v31 = vld [vmem:[%s5912_s4 + $0x628] ss:$16 sps:$4 sm:$0xff]  }
 0x163   : > { %3814 = vmatprep.subr.bf16.mxu1 %v5336_v44  ;;  %v5402_v34 = vld [vmem:[%s5912_s4 + $0x64c] ss:$16 sps:$4 sm:$0xff]   ;;  %v5403_v43 = vld [vmem:[%s5912_s4 + $0x468] ss:$16 sps:$4 sm:$0xff]  }
 0x164   : > { %v5405_v35 = vld [vmem:[%s5912_s4 + $0x46c] ss:$16 sps:$4 sm:$0xff]  }
 0x165   : > { %3774 = vmatpush1.bf16.msra.mxu0 %v5331_v45  ;;  %v5408_v36 = vld [vmem:[%s5912_s4 + $0x66c] ss:$16 sps:$4 sm:$0xff]   ;;  %v5409_v45 = vld [vmem:[%s5912_s4 + $0x488] ss:$16 sps:$4 sm:$0xff]  }
 0x166   : > { %3815 = vmatpush1.bf16.msra.mxu1 %v5334_v46  ;;  %3775 = vmatprep.subr.bf16.mxu0 %v5339_v47  ;;  %v5414_v44 = vld [vmem:[%s5912_s4 + $0x68c] ss:$16 sps:$4 sm:$0xff]   ;;  %v5412_v46 = vld [vmem:[%s5912_s4 + $0x688] ss:$16 sps:$4 sm:$0xff]  }
 0x167   : > { %3816 = vmatprep.subr.bf16.mxu1 %v5342_v49  ;;  %v5417_v47 = vld [vmem:[%s5912_s4 + $0x4ac] ss:$16 sps:$4 sm:$0xff]  }
 0x168   : > { %v5420_v49 = vld [vmem:[%s5912_s4 + $0x6ac] ss:$16 sps:$4 sm:$0xff]  }
 0x169   : > { %3776 = vmatpush1.bf16.msra.mxu0 %v5337_v50  ;;  %v5415_v50 = vld [vmem:[%s5912_s4 + $0x4a8] ss:$16 sps:$4 sm:$0xff]  }
 0x16a   : > { %3817 = vmatpush1.bf16.msra.mxu1 %v5340_v51  ;;  %3777 = vmatprep.subr.bf16.mxu0 %v5345_v53  ;;  %v5418_v51 = vld [vmem:[%s5912_s4 + $0x6a8] ss:$16 sps:$4 sm:$0xff]   ;;  %v5423_v53 = vld [vmem:[%s5912_s4 + $0x4cc] ss:$16 sps:$4 sm:$0xff]  }
 0x16b   : > { %3818 = vmatprep.subr.bf16.mxu1 %v5348_v54  ;;  %v5426_v54 = vld [vmem:[%s5912_s4 + $0x6cc] ss:$16 sps:$4 sm:$0xff]  }
 0x16d   : > { %3778 = vmatpush1.bf16.msra.mxu0 %v5343_v55 }
 0x16e   : > { %3819 = vmatpush1.bf16.msra.mxu1 %v5346_v56  ;;  %3779 = vmatprep.subr.bf16.mxu0 %v5351_v57 }
 0x16f   : > { %3820 = vmatprep.subr.bf16.mxu1 %v5354_v58 }
 0x171   : > { %3780 = vmatpush1.bf16.msra.mxu0 %v5349_v61 }
 0x172   : > { %3821 = vmatpush1.bf16.msra.mxu1 %v5352_v62  ;;  %3781 = vmatprep.subr.bf16.mxu0 %v5357_v63 }
 0x173   : > { %3822 = vmatprep.subr.bf16.mxu1 %v5360_v0 }
 0x175   : > { %3782 = vmatpush1.bf16.msra.mxu0 %v5355_v41  ;;  %v5421_v41 = vld [vmem:[%s5912_s4 + $0x4c8] ss:$16 sps:$4 sm:$0xff]  }
 0x176   : > { %3823 = vmatpush1.bf16.msra.mxu1 %v5358_v1  ;;  %3783 = vmatprep.subr.bf16.mxu0 %v5363_v42  ;;  %v5424_v1 = vld [vmem:[%s5912_s4 + $0x6c8] ss:$16 sps:$4 sm:$0xff]  }
 0x177   : > { %3824 = vmatprep.subr.bf16.mxu1 %v5366_v2 }
 0x179   : > { %3784 = vmatpush1.bf16.msra.mxu0 %v5361_v3 }
 0x17a   : > { %3825 = vmatpush1.bf16.msra.mxu1 %v5364_v4  ;;  %3785 = vmatprep.subr.bf16.mxu0 %v5369_v5  ;;  %v5427_v5 = vld [vmem:[%s5912_s4 + $0x4e8] ss:$16 sps:$4 sm:$0xff]  }
 0x17b   : > { %3826 = vmatprep.subr.bf16.mxu1 %v5372_v6  ;;  %v5430_v6 = vld [vmem:[%s5912_s4 + $0x6e8] ss:$16 sps:$4 sm:$0xff]  }
 0x17d   : > { %3786 = vmatpush1.bf16.msra.mxu0 %v5367_v48  ;;  %v5435_v48 = vld [vmem:[%s5912_s4 + $0x50c] ss:$16 sps:$4 sm:$0xff]  }
 0x17e   : > { %3827 = vmatpush1.bf16.msra.mxu1 %v5370_v9  ;;  %3787 = vmatprep.subr.bf16.mxu0 %v5375_v52  ;;  %v5438_v9 = vld [vmem:[%s5912_s4 + $0x70c] ss:$16 sps:$4 sm:$0xff]   ;;  %v5433_v52 = vld [vmem:[%s5912_s4 + $0x508] ss:$16 sps:$4 sm:$0xff]  }
 0x17f   : > { %3828 = vmatprep.subr.bf16.mxu1 %v5378_v10  ;;  %v5436_v10 = vld [vmem:[%s5912_s4 + $0x708] ss:$16 sps:$4 sm:$0xff]  }
 0x181   : > { %3788 = vmatpush1.bf16.msra.mxu0 %v5373_v11  ;;  %v5441_v11 = vld [vmem:[%s5912_s4 + $0x52c] ss:$16 sps:$4 sm:$0xff]  }
 0x182   : > { %3829 = vmatpush1.bf16.msra.mxu1 %v5376_v12  ;;  %3789 = vmatprep.subr.bf16.mxu0 %v5381_v13  ;;  %v5444_v12 = vld [vmem:[%s5912_s4 + $0x72c] ss:$16 sps:$4 sm:$0xff]   ;;  %v5439_v13 = vld [vmem:[%s5912_s4 + $0x528] ss:$16 sps:$4 sm:$0xff]  }
 0x183   : > { %3830 = vmatprep.subr.bf16.mxu1 %v5384_v14  ;;  %v5442_v14 = vld [vmem:[%s5912_s4 + $0x728] ss:$16 sps:$4 sm:$0xff]  }
 0x185   : > { %3790 = vmatpush1.bf16.msra.mxu0 %v5379_v15  ;;  %v5447_v15 = vld [vmem:[%s5912_s4 + $0x54c] ss:$16 sps:$4 sm:$0xff]  }
 0x186   : > { %3831 = vmatpush1.bf16.msra.mxu1 %v5382_v16  ;;  %3841 = vmatprep.subr.bf16.mxu0 %v5387_v19  ;;  %v5450_v16 = vld [vmem:[%s5912_s4 + $0x74c] ss:$16 sps:$4 sm:$0xff]   ;;  %v5445_v19 = vld [vmem:[%s5912_s4 + $0x548] ss:$16 sps:$4 sm:$0xff]  }
 0x187   : > { %3882 = vmatprep.subr.bf16.mxu1 %v5390_v20  ;;  %v5448_v20 = vld [vmem:[%s5912_s4 + $0x748] ss:$16 sps:$4 sm:$0xff]  }
 0x188   : > { %3792 = vmatmul.mubr.bf16.vlgmr.msra.gmra.mrb[16].mxu0 %v6012_v7  ;;  %v5397_v7 = vld [vmem:[%s5912_s4 + $0x448] ss:$16 sps:$4 sm:$0xff]  }
 0x189   : > { %3833 = vmatmul.mubr.bf16.vlgmr.msra.gmra.mrb[16].mxu1 %v6014_v8  ;;  %3842 = vmatpush1.bf16.msra.mxu0 %v5385_v21  ;;  %v5400_v8 = vld [vmem:[%s5912_s4 + $0x648] ss:$16 sps:$4 sm:$0xff]   ;;  %v5453_v21 = vld [vmem:[%s5912_s4 + $0x56c] ss:$16 sps:$4 sm:$0xff]  }
 0x18a   : > { %3883 = vmatpush1.bf16.msra.mxu1 %v5388_v22  ;;  %3843 = vmatprep.subr.bf16.mxu0 %v5393_v27  ;;  %v5456_v22 = vld [vmem:[%s5912_s4 + $0x76c] ss:$16 sps:$4 sm:$0xff]   ;;  %v5451_v27 = vld [vmem:[%s5912_s4 + $0x568] ss:$16 sps:$4 sm:$0xff]  }
 0x18b   : > { %3884 = vmatprep.subr.bf16.mxu1 %v5396_v28  ;;  %3873 = vmatprep.mubr.bf16.mxu0 %v6052_v37  ;;  %v5406_v37 = vld [vmem:[%s5912_s4 + $0x668] ss:$16 sps:$4 sm:$0xff]  }
 0x18c   : > { %3914 = vmatprep.mubr.bf16.mxu1 %v6056_v38  ;;  %v5411_v38 = vld [vmem:[%s5912_s4 + $0x48c] ss:$16 sps:$4 sm:$0xff]   ;;  %v5454_v28 = vld [vmem:[%s5912_s4 + $0x768] ss:$16 sps:$4 sm:$0xff]  }
 0x18d   : > { %3844 = vmatpush1.bf16.msra.mxu0 %v5391_v30  ;;  %v5459_v30 = vld [vmem:[%s5912_s4 + $0x58c] ss:$16 sps:$4 sm:$0xff]  }
 0x18e   : > { %3885 = vmatpush1.bf16.msra.mxu1 %v5394_v31  ;;  %3845 = vmatprep.subr.bf16.mxu0 %v5399_v33  ;;  %v5462_v31 = vld [vmem:[%s5912_s4 + $0x78c] ss:$16 sps:$4 sm:$0xff]   ;;  %v5457_v33 = vld [vmem:[%s5912_s4 + $0x588] ss:$16 sps:$4 sm:$0xff]  }
 0x18f   : > { %3886 = vmatprep.subr.bf16.mxu1 %v5402_v34  ;;  %v5460_v34 = vld [vmem:[%s5912_s4 + $0x788] ss:$16 sps:$4 sm:$0xff]  }
 0x191   : > { %3846 = vmatpush1.bf16.msra.mxu0 %v5397_v7  ;;  %v5465_v7 = vld [vmem:[%s5912_s4 + $0x5ac] ss:$16 sps:$4 sm:$0xff]  }
 0x192   : > { %3887 = vmatpush1.bf16.msra.mxu1 %v5400_v8  ;;  %3847 = vmatprep.subr.bf16.mxu0 %v5405_v35  ;;  %v5468_v8 = vld [vmem:[%s5912_s4 + $0x7ac] ss:$16 sps:$4 sm:$0xff]   ;;  %v5463_v35 = vld [vmem:[%s5912_s4 + $0x5a8] ss:$16 sps:$4 sm:$0xff]  }
 0x193   : > { %3888 = vmatprep.subr.bf16.mxu1 %v5408_v36  ;;  %v5466_v36 = vld [vmem:[%s5912_s4 + $0x7a8] ss:$16 sps:$4 sm:$0xff]  }
 0x195   : > { %3848 = vmatpush1.bf16.msra.mxu0 %v5403_v43  ;;  %v5471_v43 = vld [vmem:[%s5912_s4 + $0x5cc] ss:$16 sps:$4 sm:$0xff]  }
 0x196   : > { %3889 = vmatpush1.bf16.msra.mxu1 %v5406_v37  ;;  %3849 = vmatprep.subr.bf16.mxu0 %v5411_v38  ;;  %v5474_v37 = vld [vmem:[%s5912_s4 + $0x7cc] ss:$16 sps:$4 sm:$0xff]   ;;  %v5469_v38 = vld [vmem:[%s5912_s4 + $0x5c8] ss:$16 sps:$4 sm:$0xff]  }
 0x197   : > { %3890 = vmatprep.subr.bf16.mxu1 %v5414_v44  ;;  %v5472_v44 = vld [vmem:[%s5912_s4 + $0x7c8] ss:$16 sps:$4 sm:$0xff]  }
 0x199   : > { %3850 = vmatpush1.bf16.msra.mxu0 %v5409_v45  ;;  %v5477_v45 = vld [vmem:[%s5912_s4 + $0x5ec] ss:$16 sps:$4 sm:$0xff]  }
 0x19a   : > { %3891 = vmatpush1.bf16.msra.mxu1 %v5412_v46  ;;  %3851 = vmatprep.subr.bf16.mxu0 %v5417_v47  ;;  %v5480_v46 = vld [vmem:[%s5912_s4 + $0x7ec] ss:$16 sps:$4 sm:$0xff]   ;;  %v5475_v47 = vld [vmem:[%s5912_s4 + $0x5e8] ss:$16 sps:$4 sm:$0xff]  }
 0x19b   : > { %3892 = vmatprep.subr.bf16.mxu1 %v5420_v49  ;;  %v3547_v55 = vpop.f32.mrb[4].mxu0  ;;  %v5478_v49 = vld [vmem:[%s5912_s4 + $0x7e8] ss:$16 sps:$4 sm:$0xff]  }
 0x19c   : > { %v3588_v56 = vpop.f32.mrb[4].mxu1  ;;  %v3548_v57 = vadd.f32 %v3547_v55, %v6316_v29  ;;  %v3549_v58 = vpop.f32.mrb[5].mxu0  ;;  %v5429_v29 = vld [vmem:[%s5912_s4 + $0x4ec] ss:$16 sps:$4 sm:$0xff]  }
 0x19d   : > { %v3590_v61 = vpop.f32.mrb[5].mxu1  ;;  %v3550_v62 = vadd.f32 %v3549_v58, %v6318_v32  ;;  %v3551_v63 = vpop.f32.mrb[6].mxu0  ;;  %3852 = vmatpush1.bf16.msra.mxu0 %v5415_v50  ;;  %v5432_v32 = vld [vmem:[%s5912_s4 + $0x6ec] ss:$16 sps:$4 sm:$0xff]   ;;  %v5490_v58 = vld [vmem:[%s5912_s4 + $0xa28] ss:$16 sps:$4 sm:$0xff]  }
 0x19e   : > { %v3592_v0 = vpop.f32.mrb[6].mxu1  ;;  %3893 = vmatpush1.bf16.msra.mxu1 %v5418_v51  ;;  %v6390_v42 = vadd.f32 %v3588_v56, %v3548_v57  ;;  %v3552_v2 = vpop.f32.mrb[7].mxu0  ;;  %3853 = vmatprep.subr.bf16.mxu0 %v5423_v53  ;;  %v5483_v50 = vld [vmem:[%s5912_s4 + $0x80c] ss:$16 sps:$4 sm:$0xff]   ;;  %v5481_v53 = vld [vmem:[%s5912_s4 + $0x808] ss:$16 sps:$4 sm:$0xff]  }
 0x19f   : > { %v3593_v3 = vpop.f32.mrb[7].mxu1  ;;  %3894 = vmatprep.subr.bf16.mxu1 %v5426_v54  ;;  %v6394_v4 = vadd.f32 %v3590_v61, %v3550_v62  ;;  %v5486_v51 = vld [vmem:[%s5912_s4 + $0xa0c] ss:$16 sps:$4 sm:$0xff]   ;;  %v5484_v54 = vld [vmem:[%s5912_s4 + $0xa08] ss:$16 sps:$4 sm:$0xff]  }
 0x1a0   : > { %v5489_v55 = vld [vmem:[%s5912_s4 + $0x82c] ss:$16 sps:$4 sm:$0xff]   ;;  %v5487_v57 = vld [vmem:[%s5912_s4 + $0x828] ss:$16 sps:$4 sm:$0xff]  }
 0x1a1   : > { %3854 = vmatpush1.bf16.msra.mxu0 %v5421_v41  ;;  %v5492_v56 = vld [vmem:[%s5912_s4 + $0xa2c] ss:$16 sps:$4 sm:$0xff]   ;;  %v5499_v41 = vld [vmem:[%s5912_s4 + $0x868] ss:$16 sps:$4 sm:$0xff]  }
 0x1a2   : > { %3895 = vmatpush1.bf16.msra.mxu1 %v5424_v1  ;;  %3855 = vmatprep.subr.bf16.mxu0 %v5429_v29  ;;  %v5495_v61 = vld [vmem:[%s5912_s4 + $0x84c] ss:$16 sps:$4 sm:$0xff]   ;;  %v5505_v2 = vld [vmem:[%s5912_s4 + $0x888] ss:$16 sps:$4 sm:$0xff]  }
 0x1a3   : > { %3896 = vmatprep.subr.bf16.mxu1 %v5432_v32  ;;  %v5498_v62 = vld [vmem:[%s5912_s4 + $0xa4c] ss:$16 sps:$4 sm:$0xff]   ;;  %v5508_v3 = vld [vmem:[%s5912_s4 + $0xa88] ss:$16 sps:$4 sm:$0xff]  }
 0x1a4   : > { %v5501_v63 = vld [vmem:[%s5912_s4 + $0x86c] ss:$16 sps:$4 sm:$0xff]  }
 0x1a5   : > { %3856 = vmatpush1.bf16.msra.mxu0 %v5427_v5  ;;  %v5504_v0 = vld [vmem:[%s5912_s4 + $0xa6c] ss:$16 sps:$4 sm:$0xff]   ;;  %v5511_v5 = vld [vmem:[%s5912_s4 + $0x8a8] ss:$16 sps:$4 sm:$0xff]  }
 0x1a6   : > { %3897 = vmatpush1.bf16.msra.mxu1 %v5430_v6  ;;  %3857 = vmatprep.subr.bf16.mxu0 %v5435_v48  ;;  %v5510_v1 = vld [vmem:[%s5912_s4 + $0xa8c] ss:$16 sps:$4 sm:$0xff]   ;;  %v5514_v6 = vld [vmem:[%s5912_s4 + $0xaa8] ss:$16 sps:$4 sm:$0xff]  }
 0x1a7   : > { %3898 = vmatprep.subr.bf16.mxu1 %v5438_v9  ;;  %v5513_v29 = vld [vmem:[%s5912_s4 + $0x8ac] ss:$16 sps:$4 sm:$0xff]  }
 0x1a8   : > { %v5516_v32 = vld [vmem:[%s5912_s4 + $0xaac] ss:$16 sps:$4 sm:$0xff]  }
 0x1a9   : > { %3858 = vmatpush1.bf16.msra.mxu0 %v5433_v52  ;;  %v5519_v48 = vld [vmem:[%s5912_s4 + $0x8cc] ss:$16 sps:$4 sm:$0xff]  }
 0x1aa   : > { %3899 = vmatpush1.bf16.msra.mxu1 %v5436_v10  ;;  %3859 = vmatprep.subr.bf16.mxu0 %v5441_v11  ;;  %v5522_v9 = vld [vmem:[%s5912_s4 + $0xacc] ss:$16 sps:$4 sm:$0xff]  }
 0x1ab   : > { %3900 = vmatprep.subr.bf16.mxu1 %v5444_v12 }
 0x1ad   : > { %3860 = vmatpush1.bf16.msra.mxu0 %v5439_v13 }
 0x1ae   : > { %3901 = vmatpush1.bf16.msra.mxu1 %v5442_v14  ;;  %3861 = vmatprep.subr.bf16.mxu0 %v5447_v15 }
 0x1af   : > { %3902 = vmatprep.subr.bf16.mxu1 %v5450_v16 }
 0x1b1   : > { %3862 = vmatpush1.bf16.msra.mxu0 %v5445_v19  ;;  %v5517_v19 = vld [vmem:[%s5912_s4 + $0x8c8] ss:$16 sps:$4 sm:$0xff]  }
 0x1b2   : > { %3903 = vmatpush1.bf16.msra.mxu1 %v5448_v20  ;;  %3863 = vmatprep.subr.bf16.mxu0 %v5453_v21  ;;  %v5520_v20 = vld [vmem:[%s5912_s4 + $0xac8] ss:$16 sps:$4 sm:$0xff]  }
 0x1b3   : > { %3904 = vmatprep.subr.bf16.mxu1 %v5456_v22 }
 0x1b5   : > { %3864 = vmatpush1.bf16.msra.mxu0 %v5451_v27 }
 0x1b6   : > { %3905 = vmatpush1.bf16.msra.mxu1 %v5454_v28  ;;  %3865 = vmatprep.subr.bf16.mxu0 %v5459_v30  ;;  %v5523_v30 = vld [vmem:[%s5912_s4 + $0x8e8] ss:$16 sps:$4 sm:$0xff]  }
 0x1b7   : > { %3906 = vmatprep.subr.bf16.mxu1 %v5462_v31  ;;  %v5526_v31 = vld [vmem:[%s5912_s4 + $0xae8] ss:$16 sps:$4 sm:$0xff]  }
 0x1b9   : > { %3866 = vmatpush1.bf16.msra.mxu0 %v5457_v33  ;;  %v5531_v33 = vld [vmem:[%s5912_s4 + $0x90c] ss:$16 sps:$4 sm:$0xff]  }
 0x1ba   : > { %3907 = vmatpush1.bf16.msra.mxu1 %v5460_v34  ;;  %3867 = vmatprep.subr.bf16.mxu0 %v5465_v7  ;;  %v5534_v34 = vld [vmem:[%s5912_s4 + $0xb0c] ss:$16 sps:$4 sm:$0xff]   ;;  %v5529_v7 = vld [vmem:[%s5912_s4 + $0x908] ss:$16 sps:$4 sm:$0xff]  }
 0x1bb   : > { %3908 = vmatprep.subr.bf16.mxu1 %v5468_v8  ;;  %v5532_v8 = vld [vmem:[%s5912_s4 + $0xb08] ss:$16 sps:$4 sm:$0xff]  }
 0x1bd   : > { %3868 = vmatpush1.bf16.msra.mxu0 %v5463_v35  ;;  %v5537_v35 = vld [vmem:[%s5912_s4 + $0x92c] ss:$16 sps:$4 sm:$0xff]  }
 0x1be   : > { %3909 = vmatpush1.bf16.msra.mxu1 %v5466_v36  ;;  %3869 = vmatprep.subr.bf16.mxu0 %v5471_v43  ;;  %v5540_v36 = vld [vmem:[%s5912_s4 + $0xb2c] ss:$16 sps:$4 sm:$0xff]   ;;  %v5535_v43 = vld [vmem:[%s5912_s4 + $0x928] ss:$16 sps:$4 sm:$0xff]  }
 0x1bf   : > { %3910 = vmatprep.subr.bf16.mxu1 %v5474_v37  ;;  %v5538_v37 = vld [vmem:[%s5912_s4 + $0xb28] ss:$16 sps:$4 sm:$0xff]  }
 0x1c1   : > { %3870 = vmatpush1.bf16.msra.mxu0 %v5469_v38  ;;  %v5543_v38 = vld [vmem:[%s5912_s4 + $0x94c] ss:$16 sps:$4 sm:$0xff]  }
 0x1c2   : > { %3911 = vmatpush1.bf16.msra.mxu1 %v5472_v44  ;;  %3871 = vmatprep.subr.bf16.mxu0 %v5477_v45  ;;  %v5546_v44 = vld [vmem:[%s5912_s4 + $0xb4c] ss:$16 sps:$4 sm:$0xff]   ;;  %v5541_v45 = vld [vmem:[%s5912_s4 + $0x948] ss:$16 sps:$4 sm:$0xff]  }
 0x1c3   : > { %3912 = vmatprep.subr.bf16.mxu1 %v5480_v46  ;;  %v5544_v46 = vld [vmem:[%s5912_s4 + $0xb48] ss:$16 sps:$4 sm:$0xff]  }
 0x1c5   : > { %3872 = vmatpush1.bf16.msra.mxu0 %v5475_v47  ;;  %v5549_v47 = vld [vmem:[%s5912_s4 + $0x96c] ss:$16 sps:$4 sm:$0xff]  }
 0x1c6   : > { %3913 = vmatpush1.bf16.msra.mxu1 %v5478_v49  ;;  %3923 = vmatprep.subr.bf16.mxu0 %v5483_v50  ;;  %v5552_v49 = vld [vmem:[%s5912_s4 + $0xb6c] ss:$16 sps:$4 sm:$0xff]   ;;  %v5547_v50 = vld [vmem:[%s5912_s4 + $0x968] ss:$16 sps:$4 sm:$0xff]  }
 0x1c7   : > { %3964 = vmatprep.subr.bf16.mxu1 %v5486_v51  ;;  %v5550_v51 = vld [vmem:[%s5912_s4 + $0xb68] ss:$16 sps:$4 sm:$0xff]  }
 0x1c8   : > { %3874 = vmatmul.mubr.bf16.vlgmr.msra.gmra.mrb[20].mxu0 %v6100_v17  ;;  %v5493_v17 = vld [vmem:[%s5912_s4 + $0x848] ss:$16 sps:$4 sm:$0xff]  }
 0x1c9   : > { %3915 = vmatmul.mubr.bf16.vlgmr.msra.gmra.mrb[20].mxu1 %v6104_v18  ;;  %3924 = vmatpush1.bf16.msra.mxu0 %v5481_v53  ;;  %v5496_v18 = vld [vmem:[%s5912_s4 + $0xa48] ss:$16 sps:$4 sm:$0xff]   ;;  %v5555_v53 = vld [vmem:[%s5912_s4 + $0x98c] ss:$16 sps:$4 sm:$0xff]  }
 0x1ca   : > { %3965 = vmatpush1.bf16.msra.mxu1 %v5484_v54  ;;  %3925 = vmatprep.subr.bf16.mxu0 %v5489_v55  ;;  %v5558_v54 = vld [vmem:[%s5912_s4 + $0xb8c] ss:$16 sps:$4 sm:$0xff]   ;;  %v5553_v55 = vld [vmem:[%s5912_s4 + $0x988] ss:$16 sps:$4 sm:$0xff]  }
 0x1cb   : > { %3966 = vmatprep.subr.bf16.mxu1 %v5492_v56  ;;  %3955 = vmatprep.mubr.bf16.mxu0 %v6118_v25  ;;  %v5502_v25 = vld [vmem:[%s5912_s4 + $0xa68] ss:$16 sps:$4 sm:$0xff]  }
 0x1cc   : > { %3996 = vmatprep.mubr.bf16.mxu1 %v6122_v26  ;;  %v5507_v26 = vld [vmem:[%s5912_s4 + $0x88c] ss:$16 sps:$4 sm:$0xff]   ;;  %v5556_v56 = vld [vmem:[%s5912_s4 + $0xb88] ss:$16 sps:$4 sm:$0xff]  }
 0x1cd   : > { %3926 = vmatpush1.bf16.msra.mxu0 %v5487_v57  ;;  %v5561_v57 = vld [vmem:[%s5912_s4 + $0x9ac] ss:$16 sps:$4 sm:$0xff]  }
 0x1ce   : > { %3967 = vmatpush1.bf16.msra.mxu1 %v5490_v58  ;;  %3927 = vmatprep.subr.bf16.mxu0 %v5495_v61  ;;  %v5564_v58 = vld [vmem:[%s5912_s4 + $0xbac] ss:$16 sps:$4 sm:$0xff]   ;;  %v5559_v61 = vld [vmem:[%s5912_s4 + $0x9a8] ss:$16 sps:$4 sm:$0xff]  }
 0x1cf   : > { %3968 = vmatprep.subr.bf16.mxu1 %v5498_v62  ;;  %v5562_v62 = vld [vmem:[%s5912_s4 + $0xba8] ss:$16 sps:$4 sm:$0xff]  }
 0x1d1   : > { %3928 = vmatpush1.bf16.msra.mxu0 %v5493_v17  ;;  %v5567_v17 = vld [vmem:[%s5912_s4 + $0x9cc] ss:$16 sps:$4 sm:$0xff]  }
 0x1d2   : > { %3969 = vmatpush1.bf16.msra.mxu1 %v5496_v18  ;;  %3929 = vmatprep.subr.bf16.mxu0 %v5501_v63  ;;  %v5570_v18 = vld [vmem:[%s5912_s4 + $0xbcc] ss:$16 sps:$4 sm:$0xff]   ;;  %v5565_v63 = vld [vmem:[%s5912_s4 + $0x9c8] ss:$16 sps:$4 sm:$0xff]  }
 0x1d3   : > { %3970 = vmatprep.subr.bf16.mxu1 %v5504_v0  ;;  %v5568_v0 = vld [vmem:[%s5912_s4 + $0xbc8] ss:$16 sps:$4 sm:$0xff]  }
 0x1d5   : > { %3930 = vmatpush1.bf16.msra.mxu0 %v5499_v41  ;;  %v5573_v41 = vld [vmem:[%s5912_s4 + $0x9ec] ss:$16 sps:$4 sm:$0xff]  }
 0x1d6   : > { %3971 = vmatpush1.bf16.msra.mxu1 %v5502_v25  ;;  %3931 = vmatprep.subr.bf16.mxu0 %v5507_v26  ;;  %v5576_v25 = vld [vmem:[%s5912_s4 + $0xbec] ss:$16 sps:$4 sm:$0xff]   ;;  %v5571_v26 = vld [vmem:[%s5912_s4 + $0x9e8] ss:$16 sps:$4 sm:$0xff]  }
 0x1d7   : > { %3972 = vmatprep.subr.bf16.mxu1 %v5510_v1  ;;  %v5574_v1 = vld [vmem:[%s5912_s4 + $0xbe8] ss:$16 sps:$4 sm:$0xff]  }
 0x1d9   : > { %3932 = vmatpush1.bf16.msra.mxu0 %v5505_v2  ;;  %v5579_v2 = vld [vmem:[%s5912_s4 + $0xc0c] ss:$16 sps:$4 sm:$0xff]  }
 0x1da   : > { %3973 = vmatpush1.bf16.msra.mxu1 %v5508_v3  ;;  %3933 = vmatprep.subr.bf16.mxu0 %v5513_v29  ;;  %v5582_v3 = vld [vmem:[%s5912_s4 + $0xe0c] ss:$16 sps:$4 sm:$0xff]   ;;  %v5577_v29 = vld [vmem:[%s5912_s4 + $0xc08] ss:$16 sps:$4 sm:$0xff]  }
 0x1db   : > { %3974 = vmatprep.subr.bf16.mxu1 %v5516_v32  ;;  %v3629_v52 = vpop.f32.mrb[8].mxu0  ;;  %v5580_v32 = vld [vmem:[%s5912_s4 + $0xe08] ss:$16 sps:$4 sm:$0xff]  }
 0x1dc   : > { %v3670_v10 = vpop.f32.mrb[8].mxu1  ;;  %v3630_v11 = vadd.f32 %v3629_v52, %v6390_v42  ;;  %v3631_v12 = vpop.f32.mrb[9].mxu0  ;;  %v5525_v42 = vld [vmem:[%s5912_s4 + $0x8ec] ss:$16 sps:$4 sm:$0xff]  }
 0x1dd   : > { %v3672_v13 = vpop.f32.mrb[9].mxu1  ;;  %v3632_v14 = vadd.f32 %v3631_v12, %v6394_v4  ;;  %v3633_v15 = vpop.f32.mrb[10].mxu0  ;;  %3934 = vmatpush1.bf16.msra.mxu0 %v5511_v5  ;;  %v5528_v4 = vld [vmem:[%s5912_s4 + $0xaec] ss:$16 sps:$4 sm:$0xff]  }
 0x1de   : > { %v3674_v16 = vpop.f32.mrb[10].mxu1  ;;  %3975 = vmatpush1.bf16.msra.mxu1 %v5514_v6  ;;  %v6464_v21 = vadd.f32 %v3670_v10, %v3630_v11  ;;  %v3634_v22 = vpop.f32.mrb[11].mxu0  ;;  %3935 = vmatprep.subr.bf16.mxu0 %v5519_v48  ;;  %v5585_v5 = vld [vmem:[%s5912_s4 + $0xc2c] ss:$16 sps:$4 sm:$0xff]   ;;  %v5583_v48 = vld [vmem:[%s5912_s4 + $0xc28] ss:$16 sps:$4 sm:$0xff]  }
 0x1df   : > { %v3675_v27 = vpop.f32.mrb[11].mxu1  ;;  %3976 = vmatprep.subr.bf16.mxu1 %v5522_v9  ;;  %v6468_v28 = vadd.f32 %v3672_v13, %v3632_v14  ;;  %v5588_v6 = vld [vmem:[%s5912_s4 + $0xe2c] ss:$16 sps:$4 sm:$0xff]   ;;  %v5586_v9 = vld [vmem:[%s5912_s4 + $0xe28] ss:$16 sps:$4 sm:$0xff]  }
 0x1e0   : > { %v5591_v52 = vld [vmem:[%s5912_s4 + $0xc4c] ss:$16 sps:$4 sm:$0xff]   ;;  %v5595_v13 = vld [vmem:[%s5912_s4 + $0xc68] ss:$16 sps:$4 sm:$0xff]  }
 0x1e1   : > { %3936 = vmatpush1.bf16.msra.mxu0 %v5517_v19  ;;  %v5594_v10 = vld [vmem:[%s5912_s4 + $0xe4c] ss:$16 sps:$4 sm:$0xff]   ;;  %v5601_v15 = vld [vmem:[%s5912_s4 + $0xc88] ss:$16 sps:$4 sm:$0xff]  }
 0x1e2   : > { %3977 = vmatpush1.bf16.msra.mxu1 %v5520_v20  ;;  %3937 = vmatprep.subr.bf16.mxu0 %v5525_v42  ;;  %v5597_v11 = vld [vmem:[%s5912_s4 + $0xc6c] ss:$16 sps:$4 sm:$0xff]   ;;  %v5604_v16 = vld [vmem:[%s5912_s4 + $0xe88] ss:$16 sps:$4 sm:$0xff]  }
 0x1e3   : > { %3978 = vmatprep.subr.bf16.mxu1 %v5528_v4  ;;  %v5600_v12 = vld [vmem:[%s5912_s4 + $0xe6c] ss:$16 sps:$4 sm:$0xff]   ;;  %v5607_v22 = vld [vmem:[%s5912_s4 + $0xca8] ss:$16 sps:$4 sm:$0xff]  }
 0x1e4   : > { %v5606_v14 = vld [vmem:[%s5912_s4 + $0xe8c] ss:$16 sps:$4 sm:$0xff]   ;;  %v5610_v27 = vld [vmem:[%s5912_s4 + $0xea8] ss:$16 sps:$4 sm:$0xff]  }
 0x1e5   : > { %3938 = vmatpush1.bf16.msra.mxu0 %v5523_v30  ;;  %v5609_v19 = vld [vmem:[%s5912_s4 + $0xcac] ss:$16 sps:$4 sm:$0xff]  }
 0x1e6   : > { %3979 = vmatpush1.bf16.msra.mxu1 %v5526_v31  ;;  %3939 = vmatprep.subr.bf16.mxu0 %v5531_v33  ;;  %v5612_v20 = vld [vmem:[%s5912_s4 + $0xeac] ss:$16 sps:$4 sm:$0xff]  }
 0x1e7   : > { %3980 = vmatprep.subr.bf16.mxu1 %v5534_v34  ;;  %v5615_v42 = vld [vmem:[%s5912_s4 + $0xccc] ss:$16 sps:$4 sm:$0xff]  }
 0x1e8   : > { %v5618_v4 = vld [vmem:[%s5912_s4 + $0xecc] ss:$16 sps:$4 sm:$0xff]  }
 0x1e9   : > { %3940 = vmatpush1.bf16.msra.mxu0 %v5529_v7 }
 0x1ea   : > { %3981 = vmatpush1.bf16.msra.mxu1 %v5532_v8  ;;  %3941 = vmatprep.subr.bf16.mxu0 %v5537_v35  ;;  %v5613_v8 = vld [vmem:[%s5912_s4 + $0xcc8] ss:$16 sps:$4 sm:$0xff]   ;;  %v291_v35 = vld [vmem:[#allocation2] sm:$0xff] }
 0x1eb   : > { %3982 = vmatprep.subr.bf16.mxu1 %v5540_v36 }
 0x1ed   : > { %3942 = vmatpush1.bf16.msra.mxu0 %v5535_v43  ;;  %v292_v43 = vld [vmem:[#allocation2 + $0x8] sm:$0xff] }
 0x1ee   : > { %3983 = vmatpush1.bf16.msra.mxu1 %v5538_v37  ;;  %3943 = vmatprep.subr.bf16.mxu0 %v5543_v38 }
 0x1ef   : > { %3984 = vmatprep.subr.bf16.mxu1 %v5546_v44  ;;  %v5616_v44 = vld [vmem:[%s5912_s4 + $0xec8] ss:$16 sps:$4 sm:$0xff]  }
 0x1f1   : > { %3944 = vmatpush1.bf16.msra.mxu0 %v5541_v45 }
 0x1f2   : > { %3985 = vmatpush1.bf16.msra.mxu1 %v5544_v46  ;;  %3945 = vmatprep.subr.bf16.mxu0 %v5549_v47  ;;  %v5621_v47 = vld [vmem:[%s5912_s4 + $0xcec] ss:$16 sps:$4 sm:$0xff]  }
 0x1f3   : > { %3986 = vmatprep.subr.bf16.mxu1 %v5552_v49  ;;  %v5624_v49 = vld [vmem:[%s5912_s4 + $0xeec] ss:$16 sps:$4 sm:$0xff]  }
 0x1f5   : > { %3946 = vmatpush1.bf16.msra.mxu0 %v5547_v50 }
 0x1f6   : > { %3987 = vmatpush1.bf16.msra.mxu1 %v5550_v51  ;;  %3947 = vmatprep.subr.bf16.mxu0 %v5555_v53  ;;  %v5619_v53 = vld [vmem:[%s5912_s4 + $0xce8] ss:$16 sps:$4 sm:$0xff]  }
 0x1f7   : > { %3988 = vmatprep.subr.bf16.mxu1 %v5558_v54  ;;  %v5622_v54 = vld [vmem:[%s5912_s4 + $0xee8] ss:$16 sps:$4 sm:$0xff]  }
 0x1f9   : > { %3948 = vmatpush1.bf16.msra.mxu0 %v5553_v55  ;;  %v5627_v55 = vld [vmem:[%s5912_s4 + $0xd0c] ss:$16 sps:$4 sm:$0xff]  }
 0x1fa   : > { %3989 = vmatpush1.bf16.msra.mxu1 %v5556_v56  ;;  %3949 = vmatprep.subr.bf16.mxu0 %v5561_v57  ;;  %v5630_v56 = vld [vmem:[%s5912_s4 + $0xf0c] ss:$16 sps:$4 sm:$0xff]   ;;  %v5625_v57 = vld [vmem:[%s5912_s4 + $0xd08] ss:$16 sps:$4 sm:$0xff]  }
 0x1fb   : > { %3990 = vmatprep.subr.bf16.mxu1 %v5564_v58  ;;  %v5628_v58 = vld [vmem:[%s5912_s4 + $0xf08] ss:$16 sps:$4 sm:$0xff]  }
 0x1fd   : > { %3950 = vmatpush1.bf16.msra.mxu0 %v5559_v61  ;;  %v5633_v61 = vld [vmem:[%s5912_s4 + $0xd2c] ss:$16 sps:$4 sm:$0xff]  }
 0x1fe   : > { %3991 = vmatpush1.bf16.msra.mxu1 %v5562_v62  ;;  %3951 = vmatprep.subr.bf16.mxu0 %v5567_v17  ;;  %v5636_v62 = vld [vmem:[%s5912_s4 + $0xf2c] ss:$16 sps:$4 sm:$0xff]   ;;  %v5631_v17 = vld [vmem:[%s5912_s4 + $0xd28] ss:$16 sps:$4 sm:$0xff]  }
 0x1ff   : > { %3992 = vmatprep.subr.bf16.mxu1 %v5570_v18  ;;  %v5634_v18 = vld [vmem:[%s5912_s4 + $0xf28] ss:$16 sps:$4 sm:$0xff]  }
 0x201   : > { %3952 = vmatpush1.bf16.msra.mxu0 %v5565_v63  ;;  %v5639_v63 = vld [vmem:[%s5912_s4 + $0xd4c] ss:$16 sps:$4 sm:$0xff]  }
 0x202   : > { %3993 = vmatpush1.bf16.msra.mxu1 %v5568_v0  ;;  %3953 = vmatprep.subr.bf16.mxu0 %v5573_v41  ;;  %v5642_v0 = vld [vmem:[%s5912_s4 + $0xf4c] ss:$16 sps:$4 sm:$0xff]   ;;  %v5637_v41 = vld [vmem:[%s5912_s4 + $0xd48] ss:$16 sps:$4 sm:$0xff]  }
 0x203   : > { %3994 = vmatprep.subr.bf16.mxu1 %v5576_v25  ;;  %v5640_v25 = vld [vmem:[%s5912_s4 + $0xf48] ss:$16 sps:$4 sm:$0xff]  }
 0x205   : > { %3954 = vmatpush1.bf16.msra.mxu0 %v5571_v26  ;;  %v5645_v26 = vld [vmem:[%s5912_s4 + $0xd6c] ss:$16 sps:$4 sm:$0xff]  }
 0x206   : > { %3995 = vmatpush1.bf16.msra.mxu1 %v5574_v1  ;;  %4005 = vmatprep.subr.bf16.mxu0 %v5579_v2  ;;  %v5648_v1 = vld [vmem:[%s5912_s4 + $0xf6c] ss:$16 sps:$4 sm:$0xff]   ;;  %v5643_v2 = vld [vmem:[%s5912_s4 + $0xd68] ss:$16 sps:$4 sm:$0xff]  }
 0x207   : > { %4046 = vmatprep.subr.bf16.mxu1 %v5582_v3  ;;  %v5646_v3 = vld [vmem:[%s5912_s4 + $0xf68] ss:$16 sps:$4 sm:$0xff]  }
 0x208   : > { %3956 = vmatmul.mubr.bf16.vlgmr.msra.gmra.mrb[24].mxu0 %v6192_v39  ;;  %v5589_v39 = vld [vmem:[%s5912_s4 + $0xc48] ss:$16 sps:$4 sm:$0xff]  }
 0x209   : > { %3997 = vmatmul.mubr.bf16.vlgmr.msra.gmra.mrb[24].mxu1 %v6196_v40  ;;  %4006 = vmatpush1.bf16.msra.mxu0 %v5577_v29  ;;  %v5592_v40 = vld [vmem:[%s5912_s4 + $0xe48] ss:$16 sps:$4 sm:$0xff]   ;;  %v5651_v29 = vld [vmem:[%s5912_s4 + $0xd8c] ss:$16 sps:$4 sm:$0xff]  }
 0x20a   : > { %4047 = vmatpush1.bf16.msra.mxu1 %v5580_v32  ;;  %4007 = vmatprep.subr.bf16.mxu0 %v5585_v5  ;;  %v5654_v32 = vld [vmem:[%s5912_s4 + $0xf8c] ss:$16 sps:$4 sm:$0xff]   ;;  %v5649_v5 = vld [vmem:[%s5912_s4 + $0xd88] ss:$16 sps:$4 sm:$0xff]  }
 0x20b   : > { %4048 = vmatprep.subr.bf16.mxu1 %v5588_v6  ;;  %4037 = vmatprep.mubr.bf16.mxu0 %v6208_v23  ;;  %v5598_v23 = vld [vmem:[%s5912_s4 + $0xe68] ss:$16 sps:$4 sm:$0xff]  }
 0x20c   : > { %4078 = vmatprep.mubr.bf16.mxu1 %v6212_v24  ;;  %v5603_v24 = vld [vmem:[%s5912_s4 + $0xc8c] ss:$16 sps:$4 sm:$0xff]   ;;  %v5652_v6 = vld [vmem:[%s5912_s4 + $0xf88] ss:$16 sps:$4 sm:$0xff]  }
 0x20d   : > { %4008 = vmatpush1.bf16.msra.mxu0 %v5583_v48  ;;  %v5657_v48 = vld [vmem:[%s5912_s4 + $0xdac] ss:$16 sps:$4 sm:$0xff]  }
 0x20e   : > { %4049 = vmatpush1.bf16.msra.mxu1 %v5586_v9  ;;  %4009 = vmatprep.subr.bf16.mxu0 %v5591_v52  ;;  %v5660_v9 = vld [vmem:[%s5912_s4 + $0xfac] ss:$16 sps:$4 sm:$0xff]   ;;  %v5655_v52 = vld [vmem:[%s5912_s4 + $0xda8] ss:$16 sps:$4 sm:$0xff]  }
 0x20f   : > { %4050 = vmatprep.subr.bf16.mxu1 %v5594_v10  ;;  %v5658_v10 = vld [vmem:[%s5912_s4 + $0xfa8] ss:$16 sps:$4 sm:$0xff]  }
 0x211   : > { %4010 = vmatpush1.bf16.msra.mxu0 %v5589_v39  ;;  %v5663_v39 = vld [vmem:[%s5912_s4 + $0xdcc] ss:$16 sps:$4 sm:$0xff]  }
 0x212   : > { %4051 = vmatpush1.bf16.msra.mxu1 %v5592_v40  ;;  %4011 = vmatprep.subr.bf16.mxu0 %v5597_v11  ;;  %v5666_v40 = vld [vmem:[%s5912_s4 + $0xfcc] ss:$16 sps:$4 sm:$0xff]   ;;  %v5661_v11 = vld [vmem:[%s5912_s4 + $0xdc8] ss:$16 sps:$4 sm:$0xff]  }
 0x213   : > { %4052 = vmatprep.subr.bf16.mxu1 %v5600_v12  ;;  %v5664_v12 = vld [vmem:[%s5912_s4 + $0xfc8] ss:$16 sps:$4 sm:$0xff]  }
 0x215   : > { %4012 = vmatpush1.bf16.msra.mxu0 %v5595_v13  ;;  %v5669_v13 = vld [vmem:[%s5912_s4 + $0xdec] ss:$16 sps:$4 sm:$0xff]  }
 0x216   : > { %4053 = vmatpush1.bf16.msra.mxu1 %v5598_v23  ;;  %4013 = vmatprep.subr.bf16.mxu0 %v5603_v24  ;;  %v5672_v23 = vld [vmem:[%s5912_s4 + $0xfec] ss:$16 sps:$4 sm:$0xff]   ;;  %v5667_v24 = vld [vmem:[%s5912_s4 + $0xde8] ss:$16 sps:$4 sm:$0xff]  }
 0x217   : > { %4054 = vmatprep.subr.bf16.mxu1 %v5606_v14  ;;  %v5670_v14 = vld [vmem:[%s5912_s4 + $0xfe8] ss:$16 sps:$4 sm:$0xff]  }
 0x219   : > { %4014 = vmatpush1.bf16.msra.mxu0 %v5601_v15 }
 0x21a   : > { %4055 = vmatpush1.bf16.msra.mxu1 %v5604_v16  ;;  %4015 = vmatprep.subr.bf16.mxu0 %v5609_v19 }
 0x21b   : > { %4056 = vmatprep.subr.bf16.mxu1 %v5612_v20  ;;  %v3711_v30 = vpop.f32.mrb[12].mxu0 }
 0x21c   : > { %v3752_v31 = vpop.f32.mrb[12].mxu1  ;;  %v3712_v33 = vadd.f32 %v3711_v30, %v6464_v21  ;;  %v3713_v34 = vpop.f32.mrb[13].mxu0 }
 0x21d   : > { %v3754_v7 = vpop.f32.mrb[13].mxu1  ;;  %v3714_v36 = vadd.f32 %v3713_v34, %v6468_v28  ;;  %v3715_v37 = vpop.f32.mrb[14].mxu0  ;;  %4016 = vmatpush1.bf16.msra.mxu0 %v5607_v22 }
 0x21e   : > { %v3756_v38 = vpop.f32.mrb[14].mxu1  ;;  %4057 = vmatpush1.bf16.msra.mxu1 %v5610_v27  ;;  %v3753_v45 = vadd.f32 %v3752_v31, %v3712_v33  ;;  %v3716_v46 = vpop.f32.mrb[15].mxu0  ;;  %4017 = vmatprep.subr.bf16.mxu0 %v5615_v42 }
 0x21f   : > { %v3757_v21 = vpop.f32.mrb[15].mxu1  ;;  %4058 = vmatprep.subr.bf16.mxu1 %v5618_v4  ;;  %v3755_v50 = vadd.f32 %v3754_v7, %v3714_v36 }
 0x220   : > { %v4087_v28 = vadd.f32 %v3753_v45, %v291_v35 }
 0x221   : > { %v4088_v51 = vadd.f32 %v3755_v50, %v292_v43  ;;  %4018 = vmatpush1.bf16.msra.mxu0 %v5613_v8 }
 0x222   : > { %4059 = vmatpush1.bf16.msra.mxu1 %v5616_v44  ;;  %4091 = vst [vmem:[#allocation2] sm:$0xff] %v4087_v28  ;;  %4019 = vmatprep.subr.bf16.mxu0 %v5621_v47 }
 0x223   : > { %4060 = vmatprep.subr.bf16.mxu1 %v5624_v49  ;;  %4092 = vst [vmem:[#allocation2 + $0x8] sm:$0xff] %v4088_v51 }
 0x225   : > { %4020 = vmatpush1.bf16.msra.mxu0 %v5619_v53 }
 0x226   : > { %4061 = vmatpush1.bf16.msra.mxu1 %v5622_v54  ;;  %4021 = vmatprep.subr.bf16.mxu0 %v5627_v55 }
 0x227   : > { %4062 = vmatprep.subr.bf16.mxu1 %v5630_v56 }
 0x229   : > { %4022 = vmatpush1.bf16.msra.mxu0 %v5625_v57 }
 0x22a   : > { %4063 = vmatpush1.bf16.msra.mxu1 %v5628_v58  ;;  %4023 = vmatprep.subr.bf16.mxu0 %v5633_v61 }
 0x22b   : > { %4064 = vmatprep.subr.bf16.mxu1 %v5636_v62 }
 0x22d   : > { %4024 = vmatpush1.bf16.msra.mxu0 %v5631_v17 }
 0x22e   : > { %4065 = vmatpush1.bf16.msra.mxu1 %v5634_v18  ;;  %4025 = vmatprep.subr.bf16.mxu0 %v5639_v63  ;;  %v293_v18 = vld [vmem:[#allocation2 + $0x10] sm:$0xff] }
 0x22f   : > { %4066 = vmatprep.subr.bf16.mxu1 %v5642_v0 }
 0x231   : > { %4026 = vmatpush1.bf16.msra.mxu0 %v5637_v41 }
 0x232   : > { %4067 = vmatpush1.bf16.msra.mxu1 %v5640_v25  ;;  %4027 = vmatprep.subr.bf16.mxu0 %v5645_v26  ;;  %v294_v26 = vld [vmem:[#allocation2 + $0x18] sm:$0xff] }
 0x233   : > { %4068 = vmatprep.subr.bf16.mxu1 %v5648_v1 }
 0x235   : > { %4028 = vmatpush1.bf16.msra.mxu0 %v5643_v2 }
 0x236   : > { %4069 = vmatpush1.bf16.msra.mxu1 %v5646_v3  ;;  %4029 = vmatprep.subr.bf16.mxu0 %v5651_v29 }
 0x237   : > { %4070 = vmatprep.subr.bf16.mxu1 %v5654_v32 }
 0x239   : > { %4030 = vmatpush1.bf16.msra.mxu0 %v5649_v5  ;;  %v4105_v5 = vlaneseq (!%p4810_p6) }
 0x23a   : > { %4071 = vmatpush1.bf16.msra.mxu1 %v5652_v6  ;;  %4031 = vmatprep.subr.bf16.mxu0 %v5657_v48  ;;  %v4103_v48 = vld [vmem:[%s271_s8] sm:$0xf] (!%p4810_p6) }
 0x23b   : > { %4072 = vmatprep.subr.bf16.mxu1 %v5660_v9  ;;  %v4106_v6 = vshrl.u32 (!%p4810_p6), %v4105_v5, 7  ;;  %v4099_v9 = vld [vmem:[#allocation2] sm:$0xff] (!%p4810_p6) }
 0x23d   : > { %4032 = vmatpush1.bf16.msra.mxu0 %v5655_v52  ;;  %v4107_v52 = vsub.s32 (!%p4810_p6), 0, %v4106_v6 }
 0x23e   : > { %4073 = vmatpush1.bf16.msra.mxu1 %v5658_v10  ;;  %4033 = vmatprep.subr.bf16.mxu0 %v5663_v39  ;;  %v4111_v10 = vsub.s32 (!%p4810_p6), 1, %v4106_v6  ;;  %v4115_v39 = vsub.s32 (!%p4810_p6), 2, %v4106_v6 }
 0x23f   : > { %4074 = vmatprep.subr.bf16.mxu1 %v5666_v40  ;;  %v4119_v40 = vsub.s32 (!%p4810_p6), 3, %v4106_v6 }
 0x241   : > { %4034 = vmatpush1.bf16.msra.mxu0 %v5661_v11  ;;  %v4100_v11 = vld [vmem:[#allocation2 + $0x8] sm:$0xff] (!%p4810_p6) }
 0x242   : > { %4075 = vmatpush1.bf16.msra.mxu1 %v5664_v12  ;;  %4035 = vmatprep.subr.bf16.mxu0 %v5669_v13 }
 0x243   : > { %4076 = vmatprep.subr.bf16.mxu1 %v5672_v23  ;;  %v4108_v23 = vrot.slane (!%p4810_p6), %v4103_v48, %v4107_v52 }
 0x245   : > { %4036 = vmatpush1.bf16.msra.mxu0 %v5667_v24  ;;  %v4112_v24 = vrot.slane (!%p4810_p6), %v4103_v48, %v4111_v10 }
 0x246   : > { %4077 = vmatpush1.bf16.msra.mxu1 %v5670_v14  ;;  %v4116_v14 = vrot.slane (!%p4810_p6), %v4103_v48, %v4115_v39 }
 0x248   : > { %4038 = vmatmul.mubr.bf16.vlgmr.msra.gmra.mrb[28].mxu0 %v6280_v59 }
 0x249   : > { %4079 = vmatmul.mubr.bf16.vlgmr.msra.gmra.mrb[28].mxu1 %v6284_v60 }
 0x25b   : > { %v3793_v15 = vpop.f32.mrb[16].mxu0 }
 0x25c   : > { %v3834_v16 = vpop.f32.mrb[16].mxu1  ;;  %v3795_v20 = vpop.f32.mrb[17].mxu0 }
 0x25d   : > { %v3835_v19 = vadd.f32 %v3834_v16, %v3793_v15  ;;  %v3836_v22 = vpop.f32.mrb[17].mxu1  ;;  %v3797_v42 = vpop.f32.mrb[18].mxu0  ;;  %v4120_v15 = vrot.slane (!%p4810_p6), %v4103_v48, %v4119_v40  ;;  %v4125_v16 = vadd.f32 (!%p4810_p6), %v4108_v23, %v4099_v9 }
 0x25e   : > { %v3837_v27 = vadd.f32 %v3836_v22, %v3795_v20  ;;  %v3838_v4 = vpop.f32.mrb[18].mxu1  ;;  %v3798_v30 = vpop.f32.mrb[19].mxu0 }
 0x25f   : > { %v3839_v31 = vpop.f32.mrb[19].mxu1 }
 0x29b   : > { %v3875_v33 = vpop.f32.mrb[20].mxu0 }
 0x29c   : > { %v3916_v34 = vpop.f32.mrb[20].mxu1  ;;  %v3876_v7 = vadd.f32 %v3875_v33, %v3835_v19  ;;  %v3877_v8 = vpop.f32.mrb[21].mxu0  ;;  %v4126_v19 = vadd.f32 (!%p4810_p6), %v4112_v24, %v4100_v11 }
 0x29d   : > { %v3918_v35 = vpop.f32.mrb[21].mxu1  ;;  %v3878_v36 = vadd.f32 %v3877_v8, %v3837_v27  ;;  %v3879_v43 = vpop.f32.mrb[22].mxu0  ;;  %v4129_v27 = vmax.f32 (!%p4810_p6), %v4125_v16, 0.0 }
 0x29e   : > { %v3920_v59 = vpop.f32.mrb[22].mxu1  ;;  %v3917_v37 = vadd.f32 %v3916_v34, %v3876_v7  ;;  %v3880_v60 = vpop.f32.mrb[23].mxu0  ;;  %v4130_v42 = vmax.f32 (!%p4810_p6), %v4126_v19, 0.0 }
 0x29f   : > { %v3921_v38 = vpop.f32.mrb[23].mxu1  ;;  %v3919_v44 = vadd.f32 %v3918_v35, %v3878_v36  ;;  %4133 = vst [vmem:[%s5935_s12] sm:$0xff] (!%p4810_p6), %v4129_v27 }
 0x2a0   : > { %4134 = vst [vmem:[%s5935_s12 + $0x8] sm:$0xff] (!%p4810_p6), %v4130_v42 }
 0x2db   : > { %v3957_v45 = vpop.f32.mrb[24].mxu0 }
 0x2dc   : > { %v3998_v46 = vpop.f32.mrb[24].mxu1  ;;  %v3958_v21 = vadd.f32 %v3957_v45, %v3917_v37  ;;  %v3959_v47 = vpop.f32.mrb[25].mxu0 }
 0x2dd   : > { %v4000_v49 = vpop.f32.mrb[25].mxu1  ;;  %v3960_v50 = vadd.f32 %v3959_v47, %v3919_v44  ;;  %v3961_v28 = vpop.f32.mrb[26].mxu0 }
 0x2de   : > { %v4002_v51 = vpop.f32.mrb[26].mxu1  ;;  %v3999_v53 = vadd.f32 %v3998_v46, %v3958_v21  ;;  %v3962_v54 = vpop.f32.mrb[27].mxu0 }
 0x2df   : > { %v4003_v55 = vpop.f32.mrb[27].mxu1  ;;  %v4001_v56 = vadd.f32 %v4000_v49, %v3960_v50 }
 0x31b   : > { %v4039_v57 = vpop.f32.mrb[28].mxu0 }
 0x31c   : > { %v4080_v58 = vpop.f32.mrb[28].mxu1  ;;  %v4040_v61 = vadd.f32 %v4039_v57, %v3999_v53  ;;  %v4041_v62 = vpop.f32.mrb[29].mxu0 }
 0x31d   : > { %v4082_v17 = vpop.f32.mrb[29].mxu1  ;;  %v4042_v63 = vadd.f32 %v4041_v62, %v4001_v56  ;;  %v4043_v0 = vpop.f32.mrb[30].mxu0  ;;  %4098 = sbr.rel (%p4810_p6) target bundleno = 816 (0x330), region = 44 }
 0x31e   : > { %v4084_v41 = vpop.f32.mrb[30].mxu1  ;;  %v4081_v25 = vadd.f32 %v4080_v58, %v4040_v61  ;;  %v4044_v1 = vpop.f32.mrb[31].mxu0 }
 0x31f   : > { %v4085_v2 = vpop.f32.mrb[31].mxu1  ;;  %v4083_v3 = vadd.f32 %v4082_v17, %v4042_v63 }
 0x320   : > { %v4089_v29 = vadd.f32 %v4081_v25, %v293_v18 }
 0x321   : > { %v4090_v32 = vadd.f32 %v4083_v3, %v294_v26 }
 0x322   : > { %4093 = vst [vmem:[#allocation2 + $0x10] sm:$0xff] %v4089_v29 }
 0x323   : > { %4094 = vst [vmem:[#allocation2 + $0x18] sm:$0xff] %v4090_v32 }
 0x329   : > { %v4101_v12 = vld [vmem:[#allocation2 + $0x10] sm:$0xff] }
 0x32a   : > { %v4102_v13 = vld [vmem:[#allocation2 + $0x18] sm:$0xff]  ;;  %v4127_v20 = vadd.f32 %v4116_v14, %v4101_v12 }
 0x32b   : > { %v4128_v22 = vadd.f32 %v4120_v15, %v4102_v13 }
 0x32c   : > { %v4131_v4 = vmax.f32 %v4127_v20, 0.0 }
 0x32d   : > { %v4132_v30 = vmax.f32 %v4128_v22, 0.0 }
 0x32e   : > { %4135 = vst [vmem:[%s5935_s12 + $0x10] sm:$0xff] %v4131_v4 }
 0x32f   : > { %4136 = vst [vmem:[%s5935_s12 + $0x18] sm:$0xff] %v4132_v30 }
 0x330 PF: > { %s16_s19 = sadd.s32 1, %s5769_s19   ;;  %s6617_s12 = smov %s5745_s13 }
 0x331   : > { %p13_p8 = scmp.ge.s32.totalorder %s16_s19, 18   ;;  %s6618_s13 = smov %s5749_s14 }
 0x332   : > { %s6619_s14 = smov %s5863_s5  ;;  %s6620_s15 = smov %s5761_s17 }
 0x333   : > { %s6621_s16 = smov %s5765_s18  ;;  %s6622_s17 = smov %s6625_s21 }
 0x334   : > { %s6623_s18 = smov %s6629_s22  ;;  %15 = sbr.rel (!%p13_p8) target bundleno = 5 (0x5), region = 86 }
 0x33b   :  { %4167 = vsyncpa [#allocation4], 1 }
 0x33c   :  { %4169 = vsyncpa [#allocation4 + $0x1], 1 }

// kernel: encoder_forward.7
= control target key start
LH: loop header
LB: loop body
LE: loop exit
PB: predicated region body
PF: predicated region fallthrough
CT: control target
= control target key end

     0   :  { %s1207_s1 = inlined_call_operand.vmem [shape: bf16[1024,128], index: 1, kind: input, shape index: {}]   ;;  %s1208_s0 = inlined_call_operand.vmem [shape: bf16[8,1024], index: 0, kind: input, shape index: {}]   ;;  %s1209_s2 = inlined_call_operand.vmem [shape: f32[1,128], index: 2, kind: input, shape index: {}]   ;;  %s1210_s3 = inlined_call_operand.vmem [shape: f32[8,128], index: 3, kind: output, shape index: {}]  }
   0x1   :  { %v905_v0 = vld [vmem:[%s1207_s1 + $0x40] sm:$0xff]   ;;  %v909_v4 = vld [vmem:[%s1207_s1 + $0x48] sm:$0xff]   ;;  %v913_v8 = vld [vmem:[%s1207_s1 + $0x50] sm:$0xff]  }
   0x2   :  { %v906_v1 = vld [vmem:[%s1207_s1 + $0xc0] sm:$0xff]   ;;  %817 = vmatprep.subr.bf16.mxu0 %v905_v0  ;;  %v910_v5 = vld [vmem:[%s1207_s1 + $0xc8] sm:$0xff]   ;;  %v914_v9 = vld [vmem:[%s1207_s1 + $0xd0] sm:$0xff]  }
   0x3   :  { %v907_v2 = vld [vmem:[%s1207_s1] sm:$0xff]   ;;  %839 = vmatprep.subr.bf16.mxu1 %v906_v1  ;;  %v911_v6 = vld [vmem:[%s1207_s1 + $0x8] sm:$0xff]   ;;  %v915_v10 = vld [vmem:[%s1207_s1 + $0x10] sm:$0xff]  }
   0x4   :  { %v908_v3 = vld [vmem:[%s1207_s1 + $0x80] sm:$0xff]   ;;  %818 = vmatpush3.bf16.msra.mxu0 %v907_v2  ;;  %v912_v7 = vld [vmem:[%s1207_s1 + $0x88] sm:$0xff]   ;;  %v916_v11 = vld [vmem:[%s1207_s1 + $0x90] sm:$0xff]  }
   0x5   :  { %840 = vmatpush3.bf16.msra.mxu1 %v908_v3  ;;  %819 = vmatprep.subr.bf16.mxu0 %v909_v4  ;;  %v917_v12 = vld [vmem:[%s1207_s1 + $0x58] sm:$0xff]   ;;  %v921_v16 = vld [vmem:[%s1207_s1 + $0x60] sm:$0xff]   ;;  %v925_v20 = vld [vmem:[%s1207_s1 + $0x68] sm:$0xff]  }
   0x6   :  { %841 = vmatprep.subr.bf16.mxu1 %v910_v5  ;;  %v918_v13 = vld [vmem:[%s1207_s1 + $0xd8] sm:$0xff]   ;;  %v922_v17 = vld [vmem:[%s1207_s1 + $0xe0] sm:$0xff]   ;;  %v926_v21 = vld [vmem:[%s1207_s1 + $0xe8] sm:$0xff]  }
   0x7   :  { %v919_v14 = vld [vmem:[%s1207_s1 + $0x18] sm:$0xff]   ;;  %v923_v18 = vld [vmem:[%s1207_s1 + $0x20] sm:$0xff]   ;;  %v927_v22 = vld [vmem:[%s1207_s1 + $0x28] sm:$0xff]  }
   0x8   :  { %820 = vmatpush3.bf16.msra.mxu0 %v911_v6  ;;  %v920_v15 = vld [vmem:[%s1207_s1 + $0x98] sm:$0xff]   ;;  %v924_v19 = vld [vmem:[%s1207_s1 + $0xa0] sm:$0xff]   ;;  %v928_v23 = vld [vmem:[%s1207_s1 + $0xa8] sm:$0xff]  }
   0x9   :  { %842 = vmatpush3.bf16.msra.mxu1 %v912_v7  ;;  %821 = vmatprep.subr.bf16.mxu0 %v913_v8  ;;  %v929_v24 = vld [vmem:[%s1207_s1 + $0x70] sm:$0xff]   ;;  %v933_v28 = vld [vmem:[%s1207_s1 + $0x78] sm:$0xff]   ;;  %v21_v32 = vld [vmem:[%s1208_s0] sm:$0xff] }
   0xa   :  { %843 = vmatprep.subr.bf16.mxu1 %v914_v9  ;;  %v930_v25 = vld [vmem:[%s1207_s1 + $0xf0] sm:$0xff]   ;;  %v934_v29 = vld [vmem:[%s1207_s1 + $0xf8] sm:$0xff]   ;;  %v22_v33 = vld [vmem:[%s1208_s0 + $0x8] sm:$0xff]  ;;  %v744_v34 = vcombine.low %v21_v32, %v21_v32  ;;  %v745_v35 = vcombine.high %v21_v32, %v21_v32 }
   0xb   :  { %v931_v26 = vld [vmem:[%s1207_s1 + $0x30] sm:$0xff]   ;;  %v935_v30 = vld [vmem:[%s1207_s1 + $0x38] sm:$0xff]   ;;  %v746_v36 = vcombine.low %v22_v33, %v22_v33  ;;  %v747_v37 = vcombine.high %v22_v33, %v22_v33  ;;  %v941_v38 = vld [vmem:[%s1207_s1 + $0x140] sm:$0xff]  }
   0xc   :  { %822 = vmatpush3.bf16.msra.mxu0 %v915_v10  ;;  %v932_v27 = vld [vmem:[%s1207_s1 + $0xb0] sm:$0xff]   ;;  %v936_v31 = vld [vmem:[%s1207_s1 + $0xb8] sm:$0xff]   ;;  %v942_v39 = vld [vmem:[%s1207_s1 + $0x1c0] sm:$0xff]   ;;  %597 = vmatprep.mubr.bf16.mxu0 %v745_v35 }
   0xd   :  { %844 = vmatpush3.bf16.msra.mxu1 %v916_v11  ;;  %823 = vmatprep.subr.bf16.mxu0 %v917_v12  ;;  %v943_v40 = vld [vmem:[%s1207_s1 + $0x100] sm:$0xff]   ;;  %v945_v42 = vld [vmem:[%s1207_s1 + $0x148] sm:$0xff]   ;;  %v949_v46 = vld [vmem:[%s1207_s1 + $0x150] sm:$0xff]  }
   0xe   :  { %845 = vmatprep.subr.bf16.mxu1 %v918_v13  ;;  %637 = vmatprep.mubr.bf16.mxu1 %v747_v37  ;;  %v944_v41 = vld [vmem:[%s1207_s1 + $0x180] sm:$0xff]   ;;  %v946_v43 = vld [vmem:[%s1207_s1 + $0x1c8] sm:$0xff]   ;;  %v950_v47 = vld [vmem:[%s1207_s1 + $0x1d0] sm:$0xff]  }
   0xf   :  { %v947_v44 = vld [vmem:[%s1207_s1 + $0x108] sm:$0xff]   ;;  %v951_v48 = vld [vmem:[%s1207_s1 + $0x110] sm:$0xff]   ;;  %v953_v50 = vld [vmem:[%s1207_s1 + $0x158] sm:$0xff]  }
  0x10   :  { %824 = vmatpush3.bf16.msra.mxu0 %v919_v14  ;;  %v948_v45 = vld [vmem:[%s1207_s1 + $0x188] sm:$0xff]   ;;  %v952_v49 = vld [vmem:[%s1207_s1 + $0x190] sm:$0xff]   ;;  %v954_v51 = vld [vmem:[%s1207_s1 + $0x1d8] sm:$0xff]  }
  0x11   :  { %846 = vmatpush3.bf16.msra.mxu1 %v920_v15  ;;  %825 = vmatprep.subr.bf16.mxu0 %v921_v16  ;;  %v955_v52 = vld [vmem:[%s1207_s1 + $0x118] sm:$0xff]   ;;  %v957_v54 = vld [vmem:[%s1207_s1 + $0x160] sm:$0xff]   ;;  %v961_v58 = vld [vmem:[%s1207_s1 + $0x168] sm:$0xff]  }
  0x12   :  { %847 = vmatprep.subr.bf16.mxu1 %v922_v17  ;;  %v956_v53 = vld [vmem:[%s1207_s1 + $0x198] sm:$0xff]   ;;  %v958_v55 = vld [vmem:[%s1207_s1 + $0x1e0] sm:$0xff]   ;;  %v962_v59 = vld [vmem:[%s1207_s1 + $0x1e8] sm:$0xff]  }
  0x13   :  { %v959_v56 = vld [vmem:[%s1207_s1 + $0x120] sm:$0xff]   ;;  %v963_v60 = vld [vmem:[%s1207_s1 + $0x128] sm:$0xff]   ;;  %v965_v62 = vld [vmem:[%s1207_s1 + $0x170] sm:$0xff]  }
  0x14   :  { %826 = vmatpush3.bf16.msra.mxu0 %v923_v18  ;;  %v960_v57 = vld [vmem:[%s1207_s1 + $0x1a0] sm:$0xff]   ;;  %v964_v61 = vld [vmem:[%s1207_s1 + $0x1a8] sm:$0xff]   ;;  %v966_v63 = vld [vmem:[%s1207_s1 + $0x1f0] sm:$0xff]  }
  0x15   :  { %848 = vmatpush3.bf16.msra.mxu1 %v924_v19  ;;  %827 = vmatprep.subr.bf16.mxu0 %v925_v20  ;;  %v967_v0 = vld [vmem:[%s1207_s1 + $0x130] sm:$0xff]   ;;  %v969_v2 = vld [vmem:[%s1207_s1 + $0x178] sm:$0xff]  }
  0x16   :  { %849 = vmatprep.subr.bf16.mxu1 %v926_v21  ;;  %v968_v1 = vld [vmem:[%s1207_s1 + $0x1b0] sm:$0xff]   ;;  %v970_v3 = vld [vmem:[%s1207_s1 + $0x1f8] sm:$0xff]  }
  0x17   :  { %v971_v4 = vld [vmem:[%s1207_s1 + $0x138] sm:$0xff]   ;;  %v23_v6 = vld [vmem:[%s1208_s0 + $0x10] sm:$0xff] }
  0x18   :  { %828 = vmatpush3.bf16.msra.mxu0 %v927_v22  ;;  %v972_v5 = vld [vmem:[%s1207_s1 + $0x1b8] sm:$0xff]   ;;  %v748_v7 = vcombine.low %v23_v6, %v23_v6  ;;  %v749_v8 = vcombine.high %v23_v6, %v23_v6 }
  0x19   :  { %850 = vmatpush3.bf16.msra.mxu1 %v928_v23  ;;  %829 = vmatprep.subr.bf16.mxu0 %v929_v24  ;;  %v24_v9 = vld [vmem:[%s1208_s0 + $0x18] sm:$0xff] }
  0x1a   :  { %851 = vmatprep.subr.bf16.mxu1 %v930_v25  ;;  %v750_v10 = vcombine.low %v24_v9, %v24_v9  ;;  %v751_v11 = vcombine.high %v24_v9, %v24_v9 }
  0x1c   :  { %830 = vmatpush3.bf16.msra.mxu0 %v931_v26 }
  0x1d   :  { %852 = vmatpush3.bf16.msra.mxu1 %v932_v27  ;;  %831 = vmatprep.subr.bf16.mxu0 %v933_v28 }
  0x1e   :  { %853 = vmatprep.subr.bf16.mxu1 %v934_v29 }
  0x20   :  { %832 = vmatpush3.bf16.msra.mxu0 %v935_v30 }
  0x21   :  { %854 = vmatpush3.bf16.msra.mxu1 %v936_v31  ;;  %861 = vmatprep.subr.bf16.mxu0 %v941_v38 }
  0x22   :  { %883 = vmatprep.subr.bf16.mxu1 %v942_v39 }
  0x23   :  { %598 = vmatmul.mubr.bf16.vlgmr.msra.gmra.mrb[0].mxu0 %v744_v34  ;;  %v816_v34 = vld [vmem:[%s1209_s2] ss:$0 sm:$0xff] }
  0x24   :  { %638 = vmatmul.mubr.bf16.vlgmr.msra.gmra.mrb[0].mxu1 %v746_v36  ;;  %862 = vmatpush3.bf16.msra.mxu0 %v943_v40 }
  0x25   :  { %884 = vmatpush3.bf16.msra.mxu1 %v944_v41  ;;  %863 = vmatprep.subr.bf16.mxu0 %v945_v42 }
  0x26   :  { %885 = vmatprep.subr.bf16.mxu1 %v946_v43  ;;  %677 = vmatprep.mubr.bf16.mxu0 %v749_v8 }
  0x27   :  { %717 = vmatprep.mubr.bf16.mxu1 %v751_v11 }
  0x28   :  { %864 = vmatpush3.bf16.msra.mxu0 %v947_v44 }
  0x29   :  { %886 = vmatpush3.bf16.msra.mxu1 %v948_v45  ;;  %865 = vmatprep.subr.bf16.mxu0 %v949_v46 }
  0x2a   :  { %887 = vmatprep.subr.bf16.mxu1 %v950_v47 }
  0x2c   :  { %866 = vmatpush3.bf16.msra.mxu0 %v951_v48 }
  0x2d   :  { %888 = vmatpush3.bf16.msra.mxu1 %v952_v49  ;;  %867 = vmatprep.subr.bf16.mxu0 %v953_v50 }
  0x2e   :  { %889 = vmatprep.subr.bf16.mxu1 %v954_v51 }
  0x30   :  { %868 = vmatpush3.bf16.msra.mxu0 %v955_v52 }
  0x31   :  { %890 = vmatpush3.bf16.msra.mxu1 %v956_v53  ;;  %869 = vmatprep.subr.bf16.mxu0 %v957_v54 }
  0x32   :  { %891 = vmatprep.subr.bf16.mxu1 %v958_v55 }
  0x34   :  { %870 = vmatpush3.bf16.msra.mxu0 %v959_v56 }
  0x35   :  { %892 = vmatpush3.bf16.msra.mxu1 %v960_v57  ;;  %871 = vmatprep.subr.bf16.mxu0 %v961_v58 }
  0x36   :  { %893 = vmatprep.subr.bf16.mxu1 %v962_v59 }
  0x38   :  { %872 = vmatpush3.bf16.msra.mxu0 %v963_v60 }
  0x39   :  { %894 = vmatpush3.bf16.msra.mxu1 %v964_v61  ;;  %873 = vmatprep.subr.bf16.mxu0 %v965_v62 }
  0x3a   :  { %895 = vmatprep.subr.bf16.mxu1 %v966_v63 }
  0x3c   :  { %874 = vmatpush3.bf16.msra.mxu0 %v967_v0 }
  0x3d   :  { %896 = vmatpush3.bf16.msra.mxu1 %v968_v1  ;;  %875 = vmatprep.subr.bf16.mxu0 %v969_v2 }
  0x3e   :  { %897 = vmatprep.subr.bf16.mxu1 %v970_v3 }
  0x40   :  { %876 = vmatpush3.bf16.msra.mxu0 %v971_v4 }
  0x41   :  { %898 = vmatpush3.bf16.msra.mxu1 %v972_v5 }
  0x43   :  { %678 = vmatmul.mubr.bf16.vlgmr.msra.gmra.mrb[4].mxu0 %v748_v7 }
  0x44   :  { %718 = vmatmul.mubr.bf16.vlgmr.msra.gmra.mrb[4].mxu1 %v750_v10 }
  0xf6   :  { %v833_v12 = vpop.f32.mrb[0].mxu0 }
  0xf7   :  { %v855_v13 = vpop.f32.mrb[0].mxu1  ;;  %v834_v14 = vpop.f32.mrb[1].mxu0 }
  0xf8   :  { %v856_v15 = vpop.f32.mrb[1].mxu1  ;;  %v835_v16 = vadd.f32 %v834_v14, %v833_v12  ;;  %v836_v18 = vpop.f32.mrb[2].mxu0 }
  0xf9   :  { %v857_v17 = vadd.f32 %v856_v15, %v855_v13  ;;  %v858_v19 = vpop.f32.mrb[2].mxu1  ;;  %v837_v20 = vpop.f32.mrb[3].mxu0 }
  0xfa   :  { %v859_v21 = vpop.f32.mrb[3].mxu1 }
  0xfb   :  { %v640_v22 = vadd.f32 %v857_v17, %v835_v16 }
 0x116   :  { %v877_v23 = vpop.f32.mrb[4].mxu0 }
 0x117   :  { %v899_v24 = vpop.f32.mrb[4].mxu1  ;;  %v878_v25 = vpop.f32.mrb[5].mxu0 }
 0x118   :  { %v900_v26 = vpop.f32.mrb[5].mxu1  ;;  %v879_v27 = vadd.f32 %v878_v25, %v877_v23  ;;  %v880_v29 = vpop.f32.mrb[6].mxu0 }
 0x119   :  { %v901_v28 = vadd.f32 %v900_v26, %v899_v24  ;;  %v902_v30 = vpop.f32.mrb[6].mxu1  ;;  %v881_v31 = vpop.f32.mrb[7].mxu0 }
 0x11a   :  { %v903_v32 = vpop.f32.mrb[7].mxu1  ;;  %v680_v33 = vadd.f32 %v879_v27, %v640_v22 }
 0x11c   :  { %v720_v35 = vadd.f32 %v901_v28, %v680_v33 }
 0x11e   :  { %v738_v36 = vadd.f32 %v816_v34, %v720_v35 }
 0x120   :  { %739 = vst [vmem:[%s1210_s3] sm:$0xff] %v738_v36 }

</bundles_post_ra>
